<compile_context>
chip_gen: v5e
topology: v5e:2x2
jax: 0.10.0
libtpu: 0.0.40
codegen_flags: <defaults>
</compile_context>

<pallas_src>
import functools
import jax
import jax.numpy as jnp
from jax.experimental import pallas as pl
from jax.experimental.pallas import tpu as pltpu


# ----------------------------------------------------------------------------
# In-kernel helpers (elementwise math kept in f32)
# ----------------------------------------------------------------------------
def _layer_norm(x, g, b, eps=1e-5):
    mu = jnp.mean(x, axis=-1, keepdims=True)
    var = jnp.mean(jnp.square(x - mu), axis=-1, keepdims=True)
    return (x - mu) * jax.lax.rsqrt(var + eps) * g + b


def _softmax(s):
    m = jnp.max(s, axis=-1, keepdims=True)
    e = jnp.exp(s - m)
    return e * pl.reciprocal(jnp.sum(e, axis=-1, keepdims=True), approx=True)


def _mha(q, k, v, bias, wo_ref, num_heads):
    """Multi-head attention with the head merge folded into the output projection.

    q: (Bb, Sq, D) f32 (scale already folded into Wq); k, v: (Bb, Skv, D) any float dtype;
    bias: (Bb, Sq, Skv) additive mask bias; wo_ref: (D, D) bf16 output-projection Ref.
    Returns (Bb, Sq, D) f32 = sum_h softmax(q_h k_h^T + bias) v_h @ Wo[h*dh:(h+1)*dh, :].
    """
    _, _, D = q.shape
    dh = D // num_heads
    bias_f = bias.astype(jnp.float32)
    out = None
    for h in range(num_heads):
        lo = h * dh
        qh = q[:, :, lo:lo + dh].astype(jnp.bfloat16)
        kh = k[:, :, lo:lo + dh].astype(jnp.bfloat16)
        vh = v[:, :, lo:lo + dh].astype(jnp.bfloat16)
        s = jnp.einsum('bqd,bkd->bqk', qh, kh, preferred_element_type=jnp.float32)
        p = _softmax(s + bias_f)
        oh = jnp.einsum('bqk,bkd->bqd', p.astype(jnp.bfloat16), vh,
                        preferred_element_type=jnp.float32)
        contrib = jnp.einsum('bqd,df->bqf', oh.astype(jnp.bfloat16), wo_ref[lo:lo + dh, :],
                             preferred_element_type=jnp.float32)
        out = contrib if out is None else out + contrib
    return out


# ----------------------------------------------------------------------------
# Fused kernel: all N (identical-weight) decoder layers + final LayerNorm
# ----------------------------------------------------------------------------
def fused_decoder_kernel(num_heads,
                         x_ref, mem_ref, tbias_ref, sbias_ref,
                         ln_g_ref, ln_b_ref,
                         wqkv_s_ref, bqkv_s_ref, wo_s_ref, bo_s_ref,
                         wq_c_ref, bq_c_ref, wkv_c_ref, bkv_c_ref, wo_c_ref, bo_c_ref,
                         w1_ref, b1_ref, w2_ref, b2_ref,
                         fg_ref, fb_ref,
                         out_ref,
                         kmem_acc, vmem_acc):
    n = pl.program_id(1)
    Bb, St, D = x_ref.shape
    Ss = mem_ref.shape[1]
    M = Bb * St

    # ---- per batch group: seed the resident output block, hoist memory K/V ---------------
    @pl.when(n == 0)
    def _init():
        out_ref[...] = x_ref[...]
        m_bf = mem_ref[...].reshape(Bb * Ss, D).astype(jnp.bfloat16)
        kv = jnp.dot(m_bf, wkv_c_ref[...],
                     preferred_element_type=jnp.float32) + bkv_c_ref[...]
        kmem_acc[...] = kv[:, :D].reshape(Bb, Ss, D).astype(jnp.bfloat16)
        vmem_acc[...] = kv[:, D:].reshape(Bb, Ss, D).astype(jnp.bfloat16)

    x = out_ref[...].reshape(M, D)          # (Bb*St, D) f32 activation slab
    tbias = tbias_ref[...]                  # (Bb, St, St) additive causal/target bias
    sbias = sbias_ref[...]                  # (Bb, St, Ss) additive source bias

    # ---- sublayer 0: masked self-attention (pre-norm residual) ---------------------------
    xn = _layer_norm(x, ln_g_ref[0], ln_b_ref[0])
    qkv = jnp.dot(xn.astype(jnp.bfloat16), wqkv_s_ref[...],
                  preferred_element_type=jnp.float32) + bqkv_s_ref[...]
    q = qkv[:, 0 * D:1 * D].reshape(Bb, St, D)
    k = qkv[:, 1 * D:2 * D].reshape(Bb, St, D)
    v = qkv[:, 2 * D:3 * D].reshape(Bb, St, D)
    attn = _mha(q, k, v, tbias, wo_s_ref, num_heads)
    x = x + attn.reshape(M, D) + bo_s_ref[...]

    # ---- sublayer 1: cross-attention over encoder memory (K/V reused from scratch) -------
    xn = _layer_norm(x, ln_g_ref[1], ln_b_ref[1])
    q = (jnp.dot(xn.astype(jnp.bfloat16), wq_c_ref[...],
                 preferred_element_type=jnp.float32) + bq_c_ref[...]).reshape(Bb, St, D)
    attn = _mha(q, kmem_acc[...], vmem_acc[...], sbias, wo_c_ref, num_heads)
    x = x + attn.reshape(M, D) + bo_c_ref[...]

    # ---- sublayer 2: position-wise feed-forward -------------------------------------------
    xn = _layer_norm(x, ln_g_ref[2], ln_b_ref[2])
    h1 = jnp.maximum(jnp.dot(xn.astype(jnp.bfloat16), w1_ref[...],
                             preferred_element_type=jnp.float32) + b1_ref[...], 0.0)
    x = x + jnp.dot(h1.astype(jnp.bfloat16), w2_ref[...],
                    preferred_element_type=jnp.float32) + b2_ref[...]

    out_ref[...] = x.reshape(Bb, St, D)

    # ---- Decoder's final LayerNorm, emitted only on the last layer ------------------------
    @pl.when(n == pl.num_programs(1) - 1)
    def _finalize():
        out_ref[...] = _layer_norm(x, fg_ref[...], fb_ref[...]).reshape(Bb, St, D)


# ----------------------------------------------------------------------------
# One-time weight preparation (hoisted out of the forward pass)
# ----------------------------------------------------------------------------
def prepare_decoder_params(params, num_heads):
    """Pack QKV, fold 1/sqrt(dh) into Wq/bq, cast weights to bf16. Call ONCE."""
    lp = params["layer"]
    D = lp["wsa"].shape[-1]
    dh = D // num_heads
    scale = jnp.float32(1.0 / (dh ** 0.5))
    wsa, bsa = lp["wsa"], lp["bsa"]          # (4, D, D) / (4, 1, D): q, k, v, o
    wca, bca = lp["wca"], lp["bca"]
    return {
        "ln_g": lp["ln_g"].astype(jnp.float32),
        "ln_b": lp["ln_b"].astype(jnp.float32),
        # self-attn: fused QKV (scale folded into the Q columns) + output proj
        "w_qkv_s": jnp.concatenate([wsa[0] * scale, wsa[1], wsa[2]], axis=1).astype(jnp.bfloat16),
        "b_qkv_s": jnp.concatenate([bsa[0] * scale, bsa[1], bsa[2]], axis=1).astype(jnp.float32),
        "wo_s": wsa[3].astype(jnp.bfloat16),
        "bo_s": bsa[3].astype(jnp.float32),
        # cross-attn: Q proj (scaled), fused KV proj (hoisted over memory), output proj
        "wq_c": (wca[0] * scale).astype(jnp.bfloat16),
        "bq_c": (bca[0] * scale).astype(jnp.float32),
        "w_kv_c": jnp.concatenate([wca[1], wca[2]], axis=1).astype(jnp.bfloat16),
        "b_kv_c": jnp.concatenate([bca[1], bca[2]], axis=1).astype(jnp.float32),
        "wo_c": wca[3].astype(jnp.bfloat16),
        "bo_c": bca[3].astype(jnp.float32),
        # FFN + final norm
        "w1": lp["w1"].astype(jnp.bfloat16), "b1": lp["b1"].astype(jnp.float32),
        "w2": lp["w2"].astype(jnp.bfloat16), "b2": lp["b2"].astype(jnp.float32),
        "fg": params["norm_g"].astype(jnp.float32),
        "fb": params["norm_b"].astype(jnp.float32),
    }


# ----------------------------------------------------------------------------
# Wrapper
# ----------------------------------------------------------------------------
def decoder_forward(x, memory, src_mask, tgt_mask, prepared, N, num_heads, block_b=None):
    """Pallas equivalent of Decoder.forward(x, memory, src_mask, tgt_mask)."""
    B, St, D = x.shape
    Ss = memory.shape[1]
    Dff = prepared["w1"].shape[1]

    # Block several batch elements per grid step so matmul M = block_b*St feeds MXU rows.
    if block_b is None:
        block_b = 1
        for d in range(1, B + 1):
            if B % d == 0 and d * St <= 256:
                block_b = d
    nb = B // block_b

    # Additive mask biases (no compare/select in-kernel; bf16 halves the mask DMA bytes).
    tgt_bias = ((tgt_mask.astype(jnp.float32) - 1.0) * jnp.float32(1e9)).astype(jnp.bfloat16)
    src_bias = ((src_mask.astype(jnp.float32) - 1.0) * jnp.float32(1e9)).astype(jnp.bfloat16)

    per_batch = lambda i, n: (i, 0, 0)   # constant in n -> resident across the layer axis
    const3 = lambda i, n: (0, 0, 0)      # weights resident across the whole grid
    const2 = lambda i, n: (0, 0)

    in_specs = [
        pl.BlockSpec((block_b, St, D),  per_batch),   # x
        pl.BlockSpec((block_b, Ss, D),  per_batch),   # memory
        pl.BlockSpec((block_b, St, St), per_batch),   # tgt additive bias (bf16)
        pl.BlockSpec((block_b, St, Ss), per_batch),   # src additive bias (bf16)
        pl.BlockSpec((3, 1, D),   const3),            # ln gammas (sublayers 0..2)
        pl.BlockSpec((3, 1, D),   const3),            # ln betas
        pl.BlockSpec((D, 3 * D),  const2),            # self-attn fused Wqkv (bf16)
        pl.BlockSpec((1, 3 * D),  const2),            # self-attn fused bqkv (f32)
        pl.BlockSpec((D, D),      const2),            # self-attn Wo (bf16)
        pl.BlockSpec((1, D),      const2),            # self-attn bo
        pl.BlockSpec((D, D),      const2),            # cross-attn Wq (bf16)
        pl.BlockSpec((1, D),      const2),            # cross-attn bq
        pl.BlockSpec((D, 2 * D),  const2),            # cross-attn fused Wkv (bf16)
        pl.BlockSpec((1, 2 * D),  const2),            # cross-attn fused bkv
        pl.BlockSpec((D, D),      const2),            # cross-attn Wo (bf16)
        pl.BlockSpec((1, D),      const2),            # cross-attn bo
        pl.BlockSpec((D, Dff),    const2),            # ffn W1 (bf16)
        pl.BlockSpec((1, Dff),    const2),            # ffn b1
        pl.BlockSpec((Dff, D),    const2),            # ffn W2 (bf16)
        pl.BlockSpec((1, D),      const2),            # ffn b2
        pl.BlockSpec((1, D),      const2),            # final norm gamma
        pl.BlockSpec((1, D),      const2),            # final norm beta
    ]

    return pl.pallas_call(
        functools.partial(fused_decoder_kernel, num_heads),
        out_shape=jax.ShapeDtypeStruct((B, St, D), jnp.float32),
        grid=(nb, N),                                 # layer axis innermost (sequential dep)
        in_specs=in_specs,
        out_specs=pl.BlockSpec((block_b, St, D), per_batch),
        scratch_shapes=[
            pltpu.VMEM((block_b, Ss, D), jnp.bfloat16),   # hoisted memory K (lane-dense)
            pltpu.VMEM((block_b, Ss, D), jnp.bfloat16),   # hoisted memory V (lane-dense)
        ],
        compiler_params=pltpu.CompilerParams(
            dimension_semantics=("parallel", "arbitrary"),
        ),
    )(x, memory, tgt_bias, src_bias,
      prepared["ln_g"], prepared["ln_b"],
      prepared["w_qkv_s"], prepared["b_qkv_s"], prepared["wo_s"], prepared["bo_s"],
      prepared["wq_c"], prepared["bq_c"], prepared["w_kv_c"], prepared["b_kv_c"],
      prepared["wo_c"], prepared["bo_c"],
      prepared["w1"], prepared["b1"], prepared["w2"], prepared["b2"],
      prepared["fg"], prepared["fb"])


# ----------------------------------------------------------------------------
# Deterministic parameter construction (logical / f32 params, PyTorch-like)
# ----------------------------------------------------------------------------
def make_params(key, D, Dff):
    ks = jax.random.split(key, 8)
    s = 0.02
    return {
        "layer": {
            "ln_g": jnp.ones((3, 1, D), jnp.float32),
            "ln_b": jnp.zeros((3, 1, D), jnp.float32),
            "wsa": s * jax.random.normal(ks[0], (4, D, D), jnp.float32),
            "bsa": jnp.zeros((4, 1, D), jnp.float32),
            "wca": s * jax.random.normal(ks[1], (4, D, D), jnp.float32),
            "bca": jnp.zeros((4, 1, D), jnp.float32),
            "w1": s * jax.random.normal(ks[2], (D, Dff), jnp.float32),
            "b1": jnp.zeros((1, Dff), jnp.float32),
            "w2": s * jax.random.normal(ks[3], (Dff, D), jnp.float32),
            "b2": jnp.zeros((1, D), jnp.float32),
        },
        "norm_g": jnp.ones((1, D), jnp.float32),
        "norm_b": jnp.zeros((1, D), jnp.float32),
    }


if __name__ == "__main__":
    # Small, lane-dense demo shapes (D a multiple of 128).
    B, St, Ss, D, Dff, H, N = 2, 8, 16, 128, 256, 4, 2

    key = jax.random.PRNGKey(0)
    kx, km, kp = jax.random.split(key, 3)

    x = jax.random.normal(kx, (B, St, D), jnp.float32)
    memory = jax.random.normal(km, (B, Ss, D), jnp.float32)
    # causal target mask, all-ones source mask (float 1/0), as the PyTorch module expects
    tgt_mask = jnp.broadcast_to(jnp.tril(jnp.ones((St, St), jnp.float32)), (B, St, St))
    src_mask = jnp.ones((B, St, Ss), jnp.float32)

    params = make_params(kp, D, Dff)
    prepared = prepare_decoder_params(params, H)   # one-time weight packing / casting

    out = decoder_forward(x, memory, src_mask, tgt_mask, prepared, N, H)
    out = jax.block_until_ready(out)
    assert out.shape == (B, St, D)
    assert bool(jnp.all(jnp.isfinite(out)))
    print("KERNEL_OK")
</pallas_src>

<mosaic_0001>
module attributes {stable_mosaic.version = 11 : i64} {
  func.func @fused_decoder_kernel(%arg0: i32, %arg1: i32, %arg2: memref<2x8x128xf32, #tpu.memory_space<vmem>>, %arg3: memref<2x16x128xf32, #tpu.memory_space<vmem>>, %arg4: memref<2x8x8xbf16, #tpu.memory_space<vmem>>, %arg5: memref<2x8x16xbf16, #tpu.memory_space<vmem>>, %arg6: memref<3x1x128xf32, #tpu.memory_space<vmem>>, %arg7: memref<3x1x128xf32, #tpu.memory_space<vmem>>, %arg8: memref<128x384xbf16, #tpu.memory_space<vmem>>, %arg9: memref<1x384xf32, #tpu.memory_space<vmem>>, %arg10: memref<128x128xbf16, #tpu.memory_space<vmem>>, %arg11: memref<1x128xf32, #tpu.memory_space<vmem>>, %arg12: memref<128x128xbf16, #tpu.memory_space<vmem>>, %arg13: memref<1x128xf32, #tpu.memory_space<vmem>>, %arg14: memref<128x256xbf16, #tpu.memory_space<vmem>>, %arg15: memref<1x256xf32, #tpu.memory_space<vmem>>, %arg16: memref<128x128xbf16, #tpu.memory_space<vmem>>, %arg17: memref<1x128xf32, #tpu.memory_space<vmem>>, %arg18: memref<128x256xbf16, #tpu.memory_space<vmem>>, %arg19: memref<1x256xf32, #tpu.memory_space<vmem>>, %arg20: memref<256x128xbf16, #tpu.memory_space<vmem>>, %arg21: memref<1x128xf32, #tpu.memory_space<vmem>>, %arg22: memref<1x128xf32, #tpu.memory_space<vmem>>, %arg23: memref<1x128xf32, #tpu.memory_space<vmem>>, %arg24: memref<2x8x128xf32, #tpu.memory_space<vmem>>, %arg25: memref<2x16x128xbf16, #tpu.memory_space<vmem>>, %arg26: memref<2x16x128xbf16, #tpu.memory_space<vmem>>) attributes {dimension_semantics = [#tpu.dimension_semantics<parallel>, #tpu.dimension_semantics<arbitrary>], iteration_bounds = array<i64: 1, 2>, scalar_prefetch = 0 : i64, scratch_operands = 2 : i64, tpu.core_type = #tpu.core_type<tc>, window_params = [{transform_indices = @transform_0, window_bounds = array<i64: 2, 8, 128>}, {transform_indices = @transform_1, window_bounds = array<i64: 2, 16, 128>}, {transform_indices = @transform_2, window_bounds = array<i64: 2, 8, 8>}, {transform_indices = @transform_3, window_bounds = array<i64: 2, 8, 16>}, {pipeline_mode = #tpu.pipeline_mode<synchronous>, transform_indices = @transform_4, window_bounds = array<i64: 3, 1, 128>}, {pipeline_mode = #tpu.pipeline_mode<synchronous>, transform_indices = @transform_5, window_bounds = array<i64: 3, 1, 128>}, {pipeline_mode = #tpu.pipeline_mode<synchronous>, transform_indices = @transform_6, window_bounds = array<i64: 128, 384>}, {pipeline_mode = #tpu.pipeline_mode<synchronous>, transform_indices = @transform_7, window_bounds = array<i64: 1, 384>}, {pipeline_mode = #tpu.pipeline_mode<synchronous>, transform_indices = @transform_8, window_bounds = array<i64: 128, 128>}, {pipeline_mode = #tpu.pipeline_mode<synchronous>, transform_indices = @transform_9, window_bounds = array<i64: 1, 128>}, {pipeline_mode = #tpu.pipeline_mode<synchronous>, transform_indices = @transform_10, window_bounds = array<i64: 128, 128>}, {pipeline_mode = #tpu.pipeline_mode<synchronous>, transform_indices = @transform_11, window_bounds = array<i64: 1, 128>}, {pipeline_mode = #tpu.pipeline_mode<synchronous>, transform_indices = @transform_12, window_bounds = array<i64: 128, 256>}, {pipeline_mode = #tpu.pipeline_mode<synchronous>, transform_indices = @transform_13, window_bounds = array<i64: 1, 256>}, {pipeline_mode = #tpu.pipeline_mode<synchronous>, transform_indices = @transform_14, window_bounds = array<i64: 128, 128>}, {pipeline_mode = #tpu.pipeline_mode<synchronous>, transform_indices = @transform_15, window_bounds = array<i64: 1, 128>}, {pipeline_mode = #tpu.pipeline_mode<synchronous>, transform_indices = @transform_16, window_bounds = array<i64: 128, 256>}, {pipeline_mode = #tpu.pipeline_mode<synchronous>, transform_indices = @transform_17, window_bounds = array<i64: 1, 256>}, {pipeline_mode = #tpu.pipeline_mode<synchronous>, transform_indices = @transform_18, window_bounds = array<i64: 256, 128>}, {pipeline_mode = #tpu.pipeline_mode<synchronous>, transform_indices = @transform_19, window_bounds = array<i64: 1, 128>}, {pipeline_mode = #tpu.pipeline_mode<synchronous>, transform_indices = @transform_20, window_bounds = array<i64: 1, 128>}, {pipeline_mode = #tpu.pipeline_mode<synchronous>, transform_indices = @transform_21, window_bounds = array<i64: 1, 128>}, {transform_indices = @transform_22, window_bounds = array<i64: 2, 8, 128>}]} {
    %c0_i32 = arith.constant 0 : i32
    %0 = arith.cmpi eq, %arg1, %c0_i32 : i32
    %1 = arith.extui %0 : i1 to i32
    %c0_i32_0 = arith.constant 0 : i32
    %2 = arith.cmpi ne, %1, %c0_i32_0 : i32
    scf.if %2 {
      %c0_127 = arith.constant 0 : index
      %c0_128 = arith.constant 0 : index
      %c0_129 = arith.constant 0 : index
      %320 = vector.load %arg2[%c0_127, %c0_128, %c0_129] : memref<2x8x128xf32, #tpu.memory_space<vmem>>, vector<2x8x128xf32>
      %c0_130 = arith.constant 0 : index
      %c0_131 = arith.constant 0 : index
      %c0_132 = arith.constant 0 : index
      %321 = vector.load %arg24[%c0_130, %c0_131, %c0_132] : memref<2x8x128xf32, #tpu.memory_space<vmem>>, vector<2x8x128xf32>
      tpu.vector_store %arg24[%c0_130, %c0_131, %c0_132], %320 {strides = array<i32>} : memref<2x8x128xf32, #tpu.memory_space<vmem>>, vector<2x8x128xf32>,
      %c0_133 = arith.constant 0 : index
      %c0_134 = arith.constant 0 : index
      %c0_135 = arith.constant 0 : index
      %322 = vector.load %arg3[%c0_133, %c0_134, %c0_135] : memref<2x16x128xf32, #tpu.memory_space<vmem>>, vector<2x16x128xf32>
      %323 = vector.shape_cast %322 : vector<2x16x128xf32> to vector<32x128xf32>
      %324 = arith.truncf %323 : vector<32x128xf32> to vector<32x128xbf16>
      %c0_136 = arith.constant 0 : index
      %c0_137 = arith.constant 0 : index
      %325 = vector.load %arg14[%c0_136, %c0_137] : memref<128x256xbf16, #tpu.memory_space<vmem>>, vector<128x256xbf16>
      %cst_138 = arith.constant dense<0.000000e+00> : vector<32x256xf32>
      %326 = tpu.matmul %324, %325, %cst_138 {dimension_numbers = #tpu.dot_dimension_numbers<[1], [0], [0], [1], [0, 0, 1, 1], [], []>} : vector<32x128xbf16>, vector<128x256xbf16>, vector<32x256xf32> -> vector<32x256xf32>
      %c0_139 = arith.constant 0 : index
      %c0_140 = arith.constant 0 : index
      %327 = vector.load %arg15[%c0_139, %c0_140] : memref<1x256xf32, #tpu.memory_space<vmem>>, vector<1x256xf32>
      %328 = vector.broadcast %327 : vector<1x256xf32> to vector<32x256xf32>
      %329 = arith.addf %326, %328 : vector<32x256xf32>
      %330 = vector.extract_strided_slice %329 {offsets = [0, 0], sizes = [32, 128], strides = [1, 1]} : vector<32x256xf32> to vector<32x128xf32>
      %331 = vector.shape_cast %330 : vector<32x128xf32> to vector<2x16x128xf32>
      %332 = arith.truncf %331 : vector<2x16x128xf32> to vector<2x16x128xbf16>
      %c0_141 = arith.constant 0 : index
      %c0_142 = arith.constant 0 : index
      %c0_143 = arith.constant 0 : index
      %333 = vector.load %arg25[%c0_141, %c0_142, %c0_143] : memref<2x16x128xbf16, #tpu.memory_space<vmem>>, vector<2x16x128xbf16>
      tpu.vector_store %arg25[%c0_141, %c0_142, %c0_143], %332 {strides = array<i32>} : memref<2x16x128xbf16, #tpu.memory_space<vmem>>, vector<2x16x128xbf16>,
      %334 = vector.extract_strided_slice %329 {offsets = [0, 128], sizes = [32, 128], strides = [1, 1]} : vector<32x256xf32> to vector<32x128xf32>
      %335 = vector.shape_cast %334 : vector<32x128xf32> to vector<2x16x128xf32>
      %336 = arith.truncf %335 : vector<2x16x128xf32> to vector<2x16x128xbf16>
      %c0_144 = arith.constant 0 : index
      %c0_145 = arith.constant 0 : index
      %c0_146 = arith.constant 0 : index
      %337 = vector.load %arg26[%c0_144, %c0_145, %c0_146] : memref<2x16x128xbf16, #tpu.memory_space<vmem>>, vector<2x16x128xbf16>
      tpu.vector_store %arg26[%c0_144, %c0_145, %c0_146], %336 {strides = array<i32>} : memref<2x16x128xbf16, #tpu.memory_space<vmem>>, vector<2x16x128xbf16>,
    } else {
    }
    %c0 = arith.constant 0 : index
    %c0_1 = arith.constant 0 : index
    %c0_2 = arith.constant 0 : index
    %3 = vector.load %arg24[%c0, %c0_1, %c0_2] : memref<2x8x128xf32, #tpu.memory_space<vmem>>, vector<2x8x128xf32>
    %4 = vector.shape_cast %3 : vector<2x8x128xf32> to vector<16x128xf32>
    %c0_3 = arith.constant 0 : index
    %c0_4 = arith.constant 0 : index
    %c0_5 = arith.constant 0 : index
    %5 = vector.load %arg4[%c0_3, %c0_4, %c0_5] : memref<2x8x8xbf16, #tpu.memory_space<vmem>>, vector<2x8x8xbf16>
    %c0_6 = arith.constant 0 : index
    %c0_7 = arith.constant 0 : index
    %c0_8 = arith.constant 0 : index
    %6 = vector.load %arg5[%c0_6, %c0_7, %c0_8] : memref<2x8x16xbf16, #tpu.memory_space<vmem>>, vector<2x8x16xbf16>
    %c0_9 = arith.constant 0 : index
    %c0_10 = arith.constant 0 : index
    %c0_11 = arith.constant 0 : index
    %7 = vector.load %arg6[%c0_9, %c0_10, %c0_11] : memref<3x1x128xf32, #tpu.memory_space<vmem>>, vector<1x1x128xf32>
    %8 = vector.shape_cast %7 : vector<1x1x128xf32> to vector<1x128xf32>
    %c0_12 = arith.constant 0 : index
    %c0_13 = arith.constant 0 : index
    %c0_14 = arith.constant 0 : index
    %9 = vector.load %arg7[%c0_12, %c0_13, %c0_14] : memref<3x1x128xf32, #tpu.memory_space<vmem>>, vector<1x1x128xf32>
    %10 = vector.shape_cast %9 : vector<1x1x128xf32> to vector<1x128xf32>
    %cst = arith.constant dense<0.000000e+00> : vector<16xf32>
    %11 = vector.multi_reduction <add>, %4, %cst [1] : vector<16x128xf32> to vector<16xf32>
    %12 = vector.shape_cast %11 : vector<16xf32> to vector<16x1xf32>
    %cst_15 = arith.constant 1.280000e+02 : f32
    %13 = vector.broadcast %cst_15 : f32 to vector<16x1xf32>
    %14 = arith.divf %12, %13 : vector<16x1xf32>
    %15 = vector.broadcast %14 : vector<16x1xf32> to vector<16x128xf32>
    %16 = arith.subf %4, %15 : vector<16x128xf32>
    %17 = arith.mulf %16, %16 : vector<16x128xf32>
    %cst_16 = arith.constant dense<0.000000e+00> : vector<16xf32>
    %18 = vector.multi_reduction <add>, %17, %cst_16 [1] : vector<16x128xf32> to vector<16xf32>
    %19 = vector.shape_cast %18 : vector<16xf32> to vector<16x1xf32>
    %cst_17 = arith.constant 1.280000e+02 : f32
    %20 = vector.broadcast %cst_17 : f32 to vector<16x1xf32>
    %21 = arith.divf %19, %20 : vector<16x1xf32>
    %22 = vector.broadcast %14 : vector<16x1xf32> to vector<16x128xf32>
    %23 = arith.subf %4, %22 : vector<16x128xf32>
    %cst_18 = arith.constant 9.99999974E-6 : f32
    %24 = vector.broadcast %cst_18 : f32 to vector<16x1xf32>
    %25 = arith.addf %21, %24 : vector<16x1xf32>
    %26 = math.rsqrt %25 : vector<16x1xf32>
    %27 = vector.broadcast %26 : vector<16x1xf32> to vector<16x128xf32>
    %28 = arith.mulf %23, %27 : vector<16x128xf32>
    %29 = vector.broadcast %8 : vector<1x128xf32> to vector<16x128xf32>
    %30 = arith.mulf %28, %29 : vector<16x128xf32>
    %31 = vector.broadcast %10 : vector<1x128xf32> to vector<16x128xf32>
    %32 = arith.addf %30, %31 : vector<16x128xf32>
    %33 = arith.truncf %32 : vector<16x128xf32> to vector<16x128xbf16>
    %c0_19 = arith.constant 0 : index
    %c0_20 = arith.constant 0 : index
    %34 = vector.load %arg8[%c0_19, %c0_20] : memref<128x384xbf16, #tpu.memory_space<vmem>>, vector<128x384xbf16>
    %cst_21 = arith.constant dense<0.000000e+00> : vector<16x384xf32>
    %35 = tpu.matmul %33, %34, %cst_21 {dimension_numbers = #tpu.dot_dimension_numbers<[1], [0], [0], [1], [0, 0, 1, 1], [], []>} : vector<16x128xbf16>, vector<128x384xbf16>, vector<16x384xf32> -> vector<16x384xf32>
    %c0_22 = arith.constant 0 : index
    %c0_23 = arith.constant 0 : index
    %36 = vector.load %arg9[%c0_22, %c0_23] : memref<1x384xf32, #tpu.memory_space<vmem>>, vector<1x384xf32>
    %37 = vector.broadcast %36 : vector<1x384xf32> to vector<16x384xf32>
    %38 = arith.addf %35, %37 : vector<16x384xf32>
    %39 = vector.extract_strided_slice %38 {offsets = [0, 0], sizes = [16, 128], strides = [1, 1]} : vector<16x384xf32> to vector<16x128xf32>
    %40 = vector.shape_cast %39 : vector<16x128xf32> to vector<2x8x128xf32>
    %41 = vector.extract_strided_slice %38 {offsets = [0, 128], sizes = [16, 128], strides = [1, 1]} : vector<16x384xf32> to vector<16x128xf32>
    %42 = vector.shape_cast %41 : vector<16x128xf32> to vector<2x8x128xf32>
    %43 = vector.extract_strided_slice %38 {offsets = [0, 256], sizes = [16, 128], strides = [1, 1]} : vector<16x384xf32> to vector<16x128xf32>
    %44 = vector.shape_cast %43 : vector<16x128xf32> to vector<2x8x128xf32>
    %45 = arith.extf %5 : vector<2x8x8xbf16> to vector<2x8x8xf32>
    %46 = vector.extract_strided_slice %40 {offsets = [0, 0, 0], sizes = [2, 8, 32], strides = [1, 1, 1]} : vector<2x8x128xf32> to vector<2x8x32xf32>
    %47 = arith.truncf %46 : vector<2x8x32xf32> to vector<2x8x32xbf16>
    %48 = vector.extract_strided_slice %42 {offsets = [0, 0, 0], sizes = [2, 8, 32], strides = [1, 1, 1]} : vector<2x8x128xf32> to vector<2x8x32xf32>
    %49 = arith.truncf %48 : vector<2x8x32xf32> to vector<2x8x32xbf16>
    %50 = vector.extract_strided_slice %44 {offsets = [0, 0, 0], sizes = [2, 8, 32], strides = [1, 1, 1]} : vector<2x8x128xf32> to vector<2x8x32xf32>
    %51 = arith.truncf %50 : vector<2x8x32xf32> to vector<2x8x32xbf16>
    "tpu.trace_start"() <{level = 10 : i32, message = "bqd,bkd->bqk"}> : () -> ()
    %cst_24 = arith.constant dense<0.000000e+00> : vector<2x8x8xf32>
    %52 = tpu.matmul %47, %49, %cst_24 {dimension_numbers = #tpu.dot_dimension_numbers<[2], [2], [1], [1], [0, 0, 0, 1, 1, 1], [0], [0]>} : vector<2x8x32xbf16>, vector<2x8x32xbf16>, vector<2x8x8xf32> -> vector<2x8x8xf32>
    "tpu.trace_stop"() : () -> ()
    %53 = arith.addf %52, %45 : vector<2x8x8xf32>
    %cst_25 = arith.constant dense<0xFF800000> : vector<2x8xf32>
    %54 = vector.multi_reduction <maximumf>, %53, %cst_25 [2] : vector<2x8x8xf32> to vector<2x8xf32>
    %55 = vector.shape_cast %54 : vector<2x8xf32> to vector<2x8x1xf32>
    %56 = vector.broadcast %55 : vector<2x8x1xf32> to vector<2x8x8xf32>
    %57 = arith.subf %53, %56 : vector<2x8x8xf32>
    %58 = math.exp %57 : vector<2x8x8xf32>
    %cst_26 = arith.constant dense<0.000000e+00> : vector<2x8xf32>
    %59 = vector.multi_reduction <add>, %58, %cst_26 [2] : vector<2x8x8xf32> to vector<2x8xf32>
    %60 = vector.shape_cast %59 : vector<2x8xf32> to vector<2x8x1xf32>
    %61 = tpu.reciprocal %60 {approx = true} : vector<2x8x1xf32> -> vector<2x8x1xf32>
    %62 = vector.broadcast %61 : vector<2x8x1xf32> to vector<2x8x8xf32>
    %63 = arith.mulf %58, %62 : vector<2x8x8xf32>
    %64 = arith.truncf %63 : vector<2x8x8xf32> to vector<2x8x8xbf16>
    "tpu.trace_start"() <{level = 10 : i32, message = "bqk,bkd->bqd"}> : () -> ()
    %cst_27 = arith.constant dense<0.000000e+00> : vector<2x8x32xf32>
    %65 = tpu.matmul %64, %51, %cst_27 {dimension_numbers = #tpu.dot_dimension_numbers<[2], [1], [1], [2], [0, 0, 0, 1, 1, 2], [0], [0]>} : vector<2x8x8xbf16>, vector<2x8x32xbf16>, vector<2x8x32xf32> -> vector<2x8x32xf32>
    "tpu.trace_stop"() : () -> ()
    %66 = arith.truncf %65 : vector<2x8x32xf32> to vector<2x8x32xbf16>
    %c0_28 = arith.constant 0 : index
    %c0_29 = arith.constant 0 : index
    %67 = vector.load %arg10[%c0_28, %c0_29] : memref<128x128xbf16, #tpu.memory_space<vmem>>, vector<32x128xbf16>
    "tpu.trace_start"() <{level = 10 : i32, message = "bqd,df->bqf"}> : () -> ()
    %cst_30 = arith.constant dense<0.000000e+00> : vector<2x8x128xf32>
    %68 = tpu.matmul %66, %67, %cst_30 {dimension_numbers = #tpu.dot_dimension_numbers<[2], [0], [0, 1], [1], [0, 0, 0, 1, 1, 1], [], []>} : vector<2x8x32xbf16>, vector<32x128xbf16>, vector<2x8x128xf32> -> vector<2x8x128xf32>
    "tpu.trace_stop"() : () -> ()
    %69 = vector.extract_strided_slice %40 {offsets = [0, 0, 32], sizes = [2, 8, 32], strides = [1, 1, 1]} : vector<2x8x128xf32> to vector<2x8x32xf32>
    %70 = arith.truncf %69 : vector<2x8x32xf32> to vector<2x8x32xbf16>
    %71 = vector.extract_strided_slice %42 {offsets = [0, 0, 32], sizes = [2, 8, 32], strides = [1, 1, 1]} : vector<2x8x128xf32> to vector<2x8x32xf32>
    %72 = arith.truncf %71 : vector<2x8x32xf32> to vector<2x8x32xbf16>
    %73 = vector.extract_strided_slice %44 {offsets = [0, 0, 32], sizes = [2, 8, 32], strides = [1, 1, 1]} : vector<2x8x128xf32> to vector<2x8x32xf32>
    %74 = arith.truncf %73 : vector<2x8x32xf32> to vector<2x8x32xbf16>
    "tpu.trace_start"() <{level = 10 : i32, message = "bqd,bkd->bqk"}> : () -> ()
    %cst_31 = arith.constant dense<0.000000e+00> : vector<2x8x8xf32>
    %75 = tpu.matmul %70, %72, %cst_31 {dimension_numbers = #tpu.dot_dimension_numbers<[2], [2], [1], [1], [0, 0, 0, 1, 1, 1], [0], [0]>} : vector<2x8x32xbf16>, vector<2x8x32xbf16>, vector<2x8x8xf32> -> vector<2x8x8xf32>
    "tpu.trace_stop"() : () -> ()
    %76 = arith.addf %75, %45 : vector<2x8x8xf32>
    %cst_32 = arith.constant dense<0xFF800000> : vector<2x8xf32>
    %77 = vector.multi_reduction <maximumf>, %76, %cst_32 [2] : vector<2x8x8xf32> to vector<2x8xf32>
    %78 = vector.shape_cast %77 : vector<2x8xf32> to vector<2x8x1xf32>
    %79 = vector.broadcast %78 : vector<2x8x1xf32> to vector<2x8x8xf32>
    %80 = arith.subf %76, %79 : vector<2x8x8xf32>
    %81 = math.exp %80 : vector<2x8x8xf32>
    %cst_33 = arith.constant dense<0.000000e+00> : vector<2x8xf32>
    %82 = vector.multi_reduction <add>, %81, %cst_33 [2] : vector<2x8x8xf32> to vector<2x8xf32>
    %83 = vector.shape_cast %82 : vector<2x8xf32> to vector<2x8x1xf32>
    %84 = tpu.reciprocal %83 {approx = true} : vector<2x8x1xf32> -> vector<2x8x1xf32>
    %85 = vector.broadcast %84 : vector<2x8x1xf32> to vector<2x8x8xf32>
    %86 = arith.mulf %81, %85 : vector<2x8x8xf32>
    %87 = arith.truncf %86 : vector<2x8x8xf32> to vector<2x8x8xbf16>
    "tpu.trace_start"() <{level = 10 : i32, message = "bqk,bkd->bqd"}> : () -> ()
    %cst_34 = arith.constant dense<0.000000e+00> : vector<2x8x32xf32>
    %88 = tpu.matmul %87, %74, %cst_34 {dimension_numbers = #tpu.dot_dimension_numbers<[2], [1], [1], [2], [0, 0, 0, 1, 1, 2], [0], [0]>} : vector<2x8x8xbf16>, vector<2x8x32xbf16>, vector<2x8x32xf32> -> vector<2x8x32xf32>
    "tpu.trace_stop"() : () -> ()
    %89 = arith.truncf %88 : vector<2x8x32xf32> to vector<2x8x32xbf16>
    %c32 = arith.constant 32 : index
    %c0_35 = arith.constant 0 : index
    %90 = vector.load %arg10[%c32, %c0_35] : memref<128x128xbf16, #tpu.memory_space<vmem>>, vector<32x128xbf16>
    "tpu.trace_start"() <{level = 10 : i32, message = "bqd,df->bqf"}> : () -> ()
    %cst_36 = arith.constant dense<0.000000e+00> : vector<2x8x128xf32>
    %91 = tpu.matmul %89, %90, %cst_36 {dimension_numbers = #tpu.dot_dimension_numbers<[2], [0], [0, 1], [1], [0, 0, 0, 1, 1, 1], [], []>} : vector<2x8x32xbf16>, vector<32x128xbf16>, vector<2x8x128xf32> -> vector<2x8x128xf32>
    "tpu.trace_stop"() : () -> ()
    %92 = arith.addf %68, %91 : vector<2x8x128xf32>
    %93 = vector.extract_strided_slice %40 {offsets = [0, 0, 64], sizes = [2, 8, 32], strides = [1, 1, 1]} : vector<2x8x128xf32> to vector<2x8x32xf32>
    %94 = arith.truncf %93 : vector<2x8x32xf32> to vector<2x8x32xbf16>
    %95 = vector.extract_strided_slice %42 {offsets = [0, 0, 64], sizes = [2, 8, 32], strides = [1, 1, 1]} : vector<2x8x128xf32> to vector<2x8x32xf32>
    %96 = arith.truncf %95 : vector<2x8x32xf32> to vector<2x8x32xbf16>
    %97 = vector.extract_strided_slice %44 {offsets = [0, 0, 64], sizes = [2, 8, 32], strides = [1, 1, 1]} : vector<2x8x128xf32> to vector<2x8x32xf32>
    %98 = arith.truncf %97 : vector<2x8x32xf32> to vector<2x8x32xbf16>
    "tpu.trace_start"() <{level = 10 : i32, message = "bqd,bkd->bqk"}> : () -> ()
    %cst_37 = arith.constant dense<0.000000e+00> : vector<2x8x8xf32>
    %99 = tpu.matmul %94, %96, %cst_37 {dimension_numbers = #tpu.dot_dimension_numbers<[2], [2], [1], [1], [0, 0, 0, 1, 1, 1], [0], [0]>} : vector<2x8x32xbf16>, vector<2x8x32xbf16>, vector<2x8x8xf32> -> vector<2x8x8xf32>
    "tpu.trace_stop"() : () -> ()
    %100 = arith.addf %99, %45 : vector<2x8x8xf32>
    %cst_38 = arith.constant dense<0xFF800000> : vector<2x8xf32>
    %101 = vector.multi_reduction <maximumf>, %100, %cst_38 [2] : vector<2x8x8xf32> to vector<2x8xf32>
    %102 = vector.shape_cast %101 : vector<2x8xf32> to vector<2x8x1xf32>
    %103 = vector.broadcast %102 : vector<2x8x1xf32> to vector<2x8x8xf32>
    %104 = arith.subf %100, %103 : vector<2x8x8xf32>
    %105 = math.exp %104 : vector<2x8x8xf32>
    %cst_39 = arith.constant dense<0.000000e+00> : vector<2x8xf32>
    %106 = vector.multi_reduction <add>, %105, %cst_39 [2] : vector<2x8x8xf32> to vector<2x8xf32>
    %107 = vector.shape_cast %106 : vector<2x8xf32> to vector<2x8x1xf32>
    %108 = tpu.reciprocal %107 {approx = true} : vector<2x8x1xf32> -> vector<2x8x1xf32>
    %109 = vector.broadcast %108 : vector<2x8x1xf32> to vector<2x8x8xf32>
    %110 = arith.mulf %105, %109 : vector<2x8x8xf32>
    %111 = arith.truncf %110 : vector<2x8x8xf32> to vector<2x8x8xbf16>
    "tpu.trace_start"() <{level = 10 : i32, message = "bqk,bkd->bqd"}> : () -> ()
    %cst_40 = arith.constant dense<0.000000e+00> : vector<2x8x32xf32>
    %112 = tpu.matmul %111, %98, %cst_40 {dimension_numbers = #tpu.dot_dimension_numbers<[2], [1], [1], [2], [0, 0, 0, 1, 1, 2], [0], [0]>} : vector<2x8x8xbf16>, vector<2x8x32xbf16>, vector<2x8x32xf32> -> vector<2x8x32xf32>
    "tpu.trace_stop"() : () -> ()
    %113 = arith.truncf %112 : vector<2x8x32xf32> to vector<2x8x32xbf16>
    %c64 = arith.constant 64 : index
    %c0_41 = arith.constant 0 : index
    %114 = vector.load %arg10[%c64, %c0_41] : memref<128x128xbf16, #tpu.memory_space<vmem>>, vector<32x128xbf16>
    "tpu.trace_start"() <{level = 10 : i32, message = "bqd,df->bqf"}> : () -> ()
    %cst_42 = arith.constant dense<0.000000e+00> : vector<2x8x128xf32>
    %115 = tpu.matmul %113, %114, %cst_42 {dimension_numbers = #tpu.dot_dimension_numbers<[2], [0], [0, 1], [1], [0, 0, 0, 1, 1, 1], [], []>} : vector<2x8x32xbf16>, vector<32x128xbf16>, vector<2x8x128xf32> -> vector<2x8x128xf32>
    "tpu.trace_stop"() : () -> ()
    %116 = arith.addf %92, %115 : vector<2x8x128xf32>
    %117 = vector.extract_strided_slice %40 {offsets = [0, 0, 96], sizes = [2, 8, 32], strides = [1, 1, 1]} : vector<2x8x128xf32> to vector<2x8x32xf32>
    %118 = arith.truncf %117 : vector<2x8x32xf32> to vector<2x8x32xbf16>
    %119 = vector.extract_strided_slice %42 {offsets = [0, 0, 96], sizes = [2, 8, 32], strides = [1, 1, 1]} : vector<2x8x128xf32> to vector<2x8x32xf32>
    %120 = arith.truncf %119 : vector<2x8x32xf32> to vector<2x8x32xbf16>
    %121 = vector.extract_strided_slice %44 {offsets = [0, 0, 96], sizes = [2, 8, 32], strides = [1, 1, 1]} : vector<2x8x128xf32> to vector<2x8x32xf32>
    %122 = arith.truncf %121 : vector<2x8x32xf32> to vector<2x8x32xbf16>
    "tpu.trace_start"() <{level = 10 : i32, message = "bqd,bkd->bqk"}> : () -> ()
    %cst_43 = arith.constant dense<0.000000e+00> : vector<2x8x8xf32>
    %123 = tpu.matmul %118, %120, %cst_43 {dimension_numbers = #tpu.dot_dimension_numbers<[2], [2], [1], [1], [0, 0, 0, 1, 1, 1], [0], [0]>} : vector<2x8x32xbf16>, vector<2x8x32xbf16>, vector<2x8x8xf32> -> vector<2x8x8xf32>
    "tpu.trace_stop"() : () -> ()
    %124 = arith.addf %123, %45 : vector<2x8x8xf32>
    %cst_44 = arith.constant dense<0xFF800000> : vector<2x8xf32>
    %125 = vector.multi_reduction <maximumf>, %124, %cst_44 [2] : vector<2x8x8xf32> to vector<2x8xf32>
    %126 = vector.shape_cast %125 : vector<2x8xf32> to vector<2x8x1xf32>
    %127 = vector.broadcast %126 : vector<2x8x1xf32> to vector<2x8x8xf32>
    %128 = arith.subf %124, %127 : vector<2x8x8xf32>
    %129 = math.exp %128 : vector<2x8x8xf32>
    %cst_45 = arith.constant dense<0.000000e+00> : vector<2x8xf32>
    %130 = vector.multi_reduction <add>, %129, %cst_45 [2] : vector<2x8x8xf32> to vector<2x8xf32>
    %131 = vector.shape_cast %130 : vector<2x8xf32> to vector<2x8x1xf32>
    %132 = tpu.reciprocal %131 {approx = true} : vector<2x8x1xf32> -> vector<2x8x1xf32>
    %133 = vector.broadcast %132 : vector<2x8x1xf32> to vector<2x8x8xf32>
    %134 = arith.mulf %129, %133 : vector<2x8x8xf32>
    %135 = arith.truncf %134 : vector<2x8x8xf32> to vector<2x8x8xbf16>
    "tpu.trace_start"() <{level = 10 : i32, message = "bqk,bkd->bqd"}> : () -> ()
    %cst_46 = arith.constant dense<0.000000e+00> : vector<2x8x32xf32>
    %136 = tpu.matmul %135, %122, %cst_46 {dimension_numbers = #tpu.dot_dimension_numbers<[2], [1], [1], [2], [0, 0, 0, 1, 1, 2], [0], [0]>} : vector<2x8x8xbf16>, vector<2x8x32xbf16>, vector<2x8x32xf32> -> vector<2x8x32xf32>
    "tpu.trace_stop"() : () -> ()
    %137 = arith.truncf %136 : vector<2x8x32xf32> to vector<2x8x32xbf16>
    %c96 = arith.constant 96 : index
    %c0_47 = arith.constant 0 : index
    %138 = vector.load %arg10[%c96, %c0_47] : memref<128x128xbf16, #tpu.memory_space<vmem>>, vector<32x128xbf16>
    "tpu.trace_start"() <{level = 10 : i32, message = "bqd,df->bqf"}> : () -> ()
    %cst_48 = arith.constant dense<0.000000e+00> : vector<2x8x128xf32>
    %139 = tpu.matmul %137, %138, %cst_48 {dimension_numbers = #tpu.dot_dimension_numbers<[2], [0], [0, 1], [1], [0, 0, 0, 1, 1, 1], [], []>} : vector<2x8x32xbf16>, vector<32x128xbf16>, vector<2x8x128xf32> -> vector<2x8x128xf32>
    "tpu.trace_stop"() : () -> ()
    %140 = arith.addf %116, %139 : vector<2x8x128xf32>
    %141 = vector.shape_cast %140 : vector<2x8x128xf32> to vector<16x128xf32>
    %142 = arith.addf %4, %141 : vector<16x128xf32>
    %c0_49 = arith.constant 0 : index
    %c0_50 = arith.constant 0 : index
    %143 = vector.load %arg11[%c0_49, %c0_50] : memref<1x128xf32, #tpu.memory_space<vmem>>, vector<1x128xf32>
    %144 = vector.broadcast %143 : vector<1x128xf32> to vector<16x128xf32>
    %145 = arith.addf %142, %144 : vector<16x128xf32>
    %c1 = arith.constant 1 : index
    %c0_51 = arith.constant 0 : index
    %c0_52 = arith.constant 0 : index
    %146 = vector.load %arg6[%c1, %c0_51, %c0_52] : memref<3x1x128xf32, #tpu.memory_space<vmem>>, vector<1x1x128xf32>
    %147 = vector.shape_cast %146 : vector<1x1x128xf32> to vector<1x128xf32>
    %c1_53 = arith.constant 1 : index
    %c0_54 = arith.constant 0 : index
    %c0_55 = arith.constant 0 : index
    %148 = vector.load %arg7[%c1_53, %c0_54, %c0_55] : memref<3x1x128xf32, #tpu.memory_space<vmem>>, vector<1x1x128xf32>
    %149 = vector.shape_cast %148 : vector<1x1x128xf32> to vector<1x128xf32>
    %cst_56 = arith.constant dense<0.000000e+00> : vector<16xf32>
    %150 = vector.multi_reduction <add>, %145, %cst_56 [1] : vector<16x128xf32> to vector<16xf32>
    %151 = vector.shape_cast %150 : vector<16xf32> to vector<16x1xf32>
    %cst_57 = arith.constant 1.280000e+02 : f32
    %152 = vector.broadcast %cst_57 : f32 to vector<16x1xf32>
    %153 = arith.divf %151, %152 : vector<16x1xf32>
    %154 = vector.broadcast %153 : vector<16x1xf32> to vector<16x128xf32>
    %155 = arith.subf %145, %154 : vector<16x128xf32>
    %156 = arith.mulf %155, %155 : vector<16x128xf32>
    %cst_58 = arith.constant dense<0.000000e+00> : vector<16xf32>
    %157 = vector.multi_reduction <add>, %156, %cst_58 [1] : vector<16x128xf32> to vector<16xf32>
    %158 = vector.shape_cast %157 : vector<16xf32> to vector<16x1xf32>
    %cst_59 = arith.constant 1.280000e+02 : f32
    %159 = vector.broadcast %cst_59 : f32 to vector<16x1xf32>
    %160 = arith.divf %158, %159 : vector<16x1xf32>
    %161 = vector.broadcast %153 : vector<16x1xf32> to vector<16x128xf32>
    %162 = arith.subf %145, %161 : vector<16x128xf32>
    %cst_60 = arith.constant 9.99999974E-6 : f32
    %163 = vector.broadcast %cst_60 : f32 to vector<16x1xf32>
    %164 = arith.addf %160, %163 : vector<16x1xf32>
    %165 = math.rsqrt %164 : vector<16x1xf32>
    %166 = vector.broadcast %165 : vector<16x1xf32> to vector<16x128xf32>
    %167 = arith.mulf %162, %166 : vector<16x128xf32>
    %168 = vector.broadcast %147 : vector<1x128xf32> to vector<16x128xf32>
    %169 = arith.mulf %167, %168 : vector<16x128xf32>
    %170 = vector.broadcast %149 : vector<1x128xf32> to vector<16x128xf32>
    %171 = arith.addf %169, %170 : vector<16x128xf32>
    %172 = arith.truncf %171 : vector<16x128xf32> to vector<16x128xbf16>
    %c0_61 = arith.constant 0 : index
    %c0_62 = arith.constant 0 : index
    %173 = vector.load %arg12[%c0_61, %c0_62] : memref<128x128xbf16, #tpu.memory_space<vmem>>, vector<128x128xbf16>
    %cst_63 = arith.constant dense<0.000000e+00> : vector<16x128xf32>
    %174 = tpu.matmul %172, %173, %cst_63 {dimension_numbers = #tpu.dot_dimension_numbers<[1], [0], [0], [1], [0, 0, 1, 1], [], []>} : vector<16x128xbf16>, vector<128x128xbf16>, vector<16x128xf32> -> vector<16x128xf32>
    %c0_64 = arith.constant 0 : index
    %c0_65 = arith.constant 0 : index
    %175 = vector.load %arg13[%c0_64, %c0_65] : memref<1x128xf32, #tpu.memory_space<vmem>>, vector<1x128xf32>
    %176 = vector.broadcast %175 : vector<1x128xf32> to vector<16x128xf32>
    %177 = arith.addf %174, %176 : vector<16x128xf32>
    %178 = vector.shape_cast %177 : vector<16x128xf32> to vector<2x8x128xf32>
    %c0_66 = arith.constant 0 : index
    %c0_67 = arith.constant 0 : index
    %c0_68 = arith.constant 0 : index
    %179 = vector.load %arg25[%c0_66, %c0_67, %c0_68] : memref<2x16x128xbf16, #tpu.memory_space<vmem>>, vector<2x16x128xbf16>
    %c0_69 = arith.constant 0 : index
    %c0_70 = arith.constant 0 : index
    %c0_71 = arith.constant 0 : index
    %180 = vector.load %arg26[%c0_69, %c0_70, %c0_71] : memref<2x16x128xbf16, #tpu.memory_space<vmem>>, vector<2x16x128xbf16>
    %181 = arith.extf %6 : vector<2x8x16xbf16> to vector<2x8x16xf32>
    %182 = vector.extract_strided_slice %178 {offsets = [0, 0, 0], sizes = [2, 8, 32], strides = [1, 1, 1]} : vector<2x8x128xf32> to vector<2x8x32xf32>
    %183 = arith.truncf %182 : vector<2x8x32xf32> to vector<2x8x32xbf16>
    %184 = vector.extract_strided_slice %179 {offsets = [0, 0, 0], sizes = [2, 16, 32], strides = [1, 1, 1]} : vector<2x16x128xbf16> to vector<2x16x32xbf16>
    %185 = vector.extract_strided_slice %180 {offsets = [0, 0, 0], sizes = [2, 16, 32], strides = [1, 1, 1]} : vector<2x16x128xbf16> to vector<2x16x32xbf16>
    "tpu.trace_start"() <{level = 10 : i32, message = "bqd,bkd->bqk"}> : () -> ()
    %cst_72 = arith.constant dense<0.000000e+00> : vector<2x8x16xf32>
    %186 = tpu.matmul %183, %184, %cst_72 {dimension_numbers = #tpu.dot_dimension_numbers<[2], [2], [1], [1], [0, 0, 0, 1, 1, 1], [0], [0]>} : vector<2x8x32xbf16>, vector<2x16x32xbf16>, vector<2x8x16xf32> -> vector<2x8x16xf32>
    "tpu.trace_stop"() : () -> ()
    %187 = arith.addf %186, %181 : vector<2x8x16xf32>
    %cst_73 = arith.constant dense<0xFF800000> : vector<2x8xf32>
    %188 = vector.multi_reduction <maximumf>, %187, %cst_73 [2] : vector<2x8x16xf32> to vector<2x8xf32>
    %189 = vector.shape_cast %188 : vector<2x8xf32> to vector<2x8x1xf32>
    %190 = vector.broadcast %189 : vector<2x8x1xf32> to vector<2x8x16xf32>
    %191 = arith.subf %187, %190 : vector<2x8x16xf32>
    %192 = math.exp %191 : vector<2x8x16xf32>
    %cst_74 = arith.constant dense<0.000000e+00> : vector<2x8xf32>
    %193 = vector.multi_reduction <add>, %192, %cst_74 [2] : vector<2x8x16xf32> to vector<2x8xf32>
    %194 = vector.shape_cast %193 : vector<2x8xf32> to vector<2x8x1xf32>
    %195 = tpu.reciprocal %194 {approx = true} : vector<2x8x1xf32> -> vector<2x8x1xf32>
    %196 = vector.broadcast %195 : vector<2x8x1xf32> to vector<2x8x16xf32>
    %197 = arith.mulf %192, %196 : vector<2x8x16xf32>
    %198 = arith.truncf %197 : vector<2x8x16xf32> to vector<2x8x16xbf16>
    "tpu.trace_start"() <{level = 10 : i32, message = "bqk,bkd->bqd"}> : () -> ()
    %cst_75 = arith.constant dense<0.000000e+00> : vector<2x8x32xf32>
    %199 = tpu.matmul %198, %185, %cst_75 {dimension_numbers = #tpu.dot_dimension_numbers<[2], [1], [1], [2], [0, 0, 0, 1, 1, 2], [0], [0]>} : vector<2x8x16xbf16>, vector<2x16x32xbf16>, vector<2x8x32xf32> -> vector<2x8x32xf32>
    "tpu.trace_stop"() : () -> ()
    %200 = arith.truncf %199 : vector<2x8x32xf32> to vector<2x8x32xbf16>
    %c0_76 = arith.constant 0 : index
    %c0_77 = arith.constant 0 : index
    %201 = vector.load %arg16[%c0_76, %c0_77] : memref<128x128xbf16, #tpu.memory_space<vmem>>, vector<32x128xbf16>
    "tpu.trace_start"() <{level = 10 : i32, message = "bqd,df->bqf"}> : () -> ()
    %cst_78 = arith.constant dense<0.000000e+00> : vector<2x8x128xf32>
    %202 = tpu.matmul %200, %201, %cst_78 {dimension_numbers = #tpu.dot_dimension_numbers<[2], [0], [0, 1], [1], [0, 0, 0, 1, 1, 1], [], []>} : vector<2x8x32xbf16>, vector<32x128xbf16>, vector<2x8x128xf32> -> vector<2x8x128xf32>
    "tpu.trace_stop"() : () -> ()
    %203 = vector.extract_strided_slice %178 {offsets = [0, 0, 32], sizes = [2, 8, 32], strides = [1, 1, 1]} : vector<2x8x128xf32> to vector<2x8x32xf32>
    %204 = arith.truncf %203 : vector<2x8x32xf32> to vector<2x8x32xbf16>
    %205 = vector.extract_strided_slice %179 {offsets = [0, 0, 32], sizes = [2, 16, 32], strides = [1, 1, 1]} : vector<2x16x128xbf16> to vector<2x16x32xbf16>
    %206 = vector.extract_strided_slice %180 {offsets = [0, 0, 32], sizes = [2, 16, 32], strides = [1, 1, 1]} : vector<2x16x128xbf16> to vector<2x16x32xbf16>
    "tpu.trace_start"() <{level = 10 : i32, message = "bqd,bkd->bqk"}> : () -> ()
    %cst_79 = arith.constant dense<0.000000e+00> : vector<2x8x16xf32>
    %207 = tpu.matmul %204, %205, %cst_79 {dimension_numbers = #tpu.dot_dimension_numbers<[2], [2], [1], [1], [0, 0, 0, 1, 1, 1], [0], [0]>} : vector<2x8x32xbf16>, vector<2x16x32xbf16>, vector<2x8x16xf32> -> vector<2x8x16xf32>
    "tpu.trace_stop"() : () -> ()
    %208 = arith.addf %207, %181 : vector<2x8x16xf32>
    %cst_80 = arith.constant dense<0xFF800000> : vector<2x8xf32>
    %209 = vector.multi_reduction <maximumf>, %208, %cst_80 [2] : vector<2x8x16xf32> to vector<2x8xf32>
    %210 = vector.shape_cast %209 : vector<2x8xf32> to vector<2x8x1xf32>
    %211 = vector.broadcast %210 : vector<2x8x1xf32> to vector<2x8x16xf32>
    %212 = arith.subf %208, %211 : vector<2x8x16xf32>
    %213 = math.exp %212 : vector<2x8x16xf32>
    %cst_81 = arith.constant dense<0.000000e+00> : vector<2x8xf32>
    %214 = vector.multi_reduction <add>, %213, %cst_81 [2] : vector<2x8x16xf32> to vector<2x8xf32>
    %215 = vector.shape_cast %214 : vector<2x8xf32> to vector<2x8x1xf32>
    %216 = tpu.reciprocal %215 {approx = true} : vector<2x8x1xf32> -> vector<2x8x1xf32>
    %217 = vector.broadcast %216 : vector<2x8x1xf32> to vector<2x8x16xf32>
    %218 = arith.mulf %213, %217 : vector<2x8x16xf32>
    %219 = arith.truncf %218 : vector<2x8x16xf32> to vector<2x8x16xbf16>
    "tpu.trace_start"() <{level = 10 : i32, message = "bqk,bkd->bqd"}> : () -> ()
    %cst_82 = arith.constant dense<0.000000e+00> : vector<2x8x32xf32>
    %220 = tpu.matmul %219, %206, %cst_82 {dimension_numbers = #tpu.dot_dimension_numbers<[2], [1], [1], [2], [0, 0, 0, 1, 1, 2], [0], [0]>} : vector<2x8x16xbf16>, vector<2x16x32xbf16>, vector<2x8x32xf32> -> vector<2x8x32xf32>
    "tpu.trace_stop"() : () -> ()
    %221 = arith.truncf %220 : vector<2x8x32xf32> to vector<2x8x32xbf16>
    %c32_83 = arith.constant 32 : index
    %c0_84 = arith.constant 0 : index
    %222 = vector.load %arg16[%c32_83, %c0_84] : memref<128x128xbf16, #tpu.memory_space<vmem>>, vector<32x128xbf16>
    "tpu.trace_start"() <{level = 10 : i32, message = "bqd,df->bqf"}> : () -> ()
    %cst_85 = arith.constant dense<0.000000e+00> : vector<2x8x128xf32>
    %223 = tpu.matmul %221, %222, %cst_85 {dimension_numbers = #tpu.dot_dimension_numbers<[2], [0], [0, 1], [1], [0, 0, 0, 1, 1, 1], [], []>} : vector<2x8x32xbf16>, vector<32x128xbf16>, vector<2x8x128xf32> -> vector<2x8x128xf32>
    "tpu.trace_stop"() : () -> ()
    %224 = arith.addf %202, %223 : vector<2x8x128xf32>
    %225 = vector.extract_strided_slice %178 {offsets = [0, 0, 64], sizes = [2, 8, 32], strides = [1, 1, 1]} : vector<2x8x128xf32> to vector<2x8x32xf32>
    %226 = arith.truncf %225 : vector<2x8x32xf32> to vector<2x8x32xbf16>
    %227 = vector.extract_strided_slice %179 {offsets = [0, 0, 64], sizes = [2, 16, 32], strides = [1, 1, 1]} : vector<2x16x128xbf16> to vector<2x16x32xbf16>
    %228 = vector.extract_strided_slice %180 {offsets = [0, 0, 64], sizes = [2, 16, 32], strides = [1, 1, 1]} : vector<2x16x128xbf16> to vector<2x16x32xbf16>
    "tpu.trace_start"() <{level = 10 : i32, message = "bqd,bkd->bqk"}> : () -> ()
    %cst_86 = arith.constant dense<0.000000e+00> : vector<2x8x16xf32>
    %229 = tpu.matmul %226, %227, %cst_86 {dimension_numbers = #tpu.dot_dimension_numbers<[2], [2], [1], [1], [0, 0, 0, 1, 1, 1], [0], [0]>} : vector<2x8x32xbf16>, vector<2x16x32xbf16>, vector<2x8x16xf32> -> vector<2x8x16xf32>
    "tpu.trace_stop"() : () -> ()
    %230 = arith.addf %229, %181 : vector<2x8x16xf32>
    %cst_87 = arith.constant dense<0xFF800000> : vector<2x8xf32>
    %231 = vector.multi_reduction <maximumf>, %230, %cst_87 [2] : vector<2x8x16xf32> to vector<2x8xf32>
    %232 = vector.shape_cast %231 : vector<2x8xf32> to vector<2x8x1xf32>
    %233 = vector.broadcast %232 : vector<2x8x1xf32> to vector<2x8x16xf32>
    %234 = arith.subf %230, %233 : vector<2x8x16xf32>
    %235 = math.exp %234 : vector<2x8x16xf32>
    %cst_88 = arith.constant dense<0.000000e+00> : vector<2x8xf32>
    %236 = vector.multi_reduction <add>, %235, %cst_88 [2] : vector<2x8x16xf32> to vector<2x8xf32>
    %237 = vector.shape_cast %236 : vector<2x8xf32> to vector<2x8x1xf32>
    %238 = tpu.reciprocal %237 {approx = true} : vector<2x8x1xf32> -> vector<2x8x1xf32>
    %239 = vector.broadcast %238 : vector<2x8x1xf32> to vector<2x8x16xf32>
    %240 = arith.mulf %235, %239 : vector<2x8x16xf32>
    %241 = arith.truncf %240 : vector<2x8x16xf32> to vector<2x8x16xbf16>
    "tpu.trace_start"() <{level = 10 : i32, message = "bqk,bkd->bqd"}> : () -> ()
    %cst_89 = arith.constant dense<0.000000e+00> : vector<2x8x32xf32>
    %242 = tpu.matmul %241, %228, %cst_89 {dimension_numbers = #tpu.dot_dimension_numbers<[2], [1], [1], [2], [0, 0, 0, 1, 1, 2], [0], [0]>} : vector<2x8x16xbf16>, vector<2x16x32xbf16>, vector<2x8x32xf32> -> vector<2x8x32xf32>
    "tpu.trace_stop"() : () -> ()
    %243 = arith.truncf %242 : vector<2x8x32xf32> to vector<2x8x32xbf16>
    %c64_90 = arith.constant 64 : index
    %c0_91 = arith.constant 0 : index
    %244 = vector.load %arg16[%c64_90, %c0_91] : memref<128x128xbf16, #tpu.memory_space<vmem>>, vector<32x128xbf16>
    "tpu.trace_start"() <{level = 10 : i32, message = "bqd,df->bqf"}> : () -> ()
    %cst_92 = arith.constant dense<0.000000e+00> : vector<2x8x128xf32>
    %245 = tpu.matmul %243, %244, %cst_92 {dimension_numbers = #tpu.dot_dimension_numbers<[2], [0], [0, 1], [1], [0, 0, 0, 1, 1, 1], [], []>} : vector<2x8x32xbf16>, vector<32x128xbf16>, vector<2x8x128xf32> -> vector<2x8x128xf32>
    "tpu.trace_stop"() : () -> ()
    %246 = arith.addf %224, %245 : vector<2x8x128xf32>
    %247 = vector.extract_strided_slice %178 {offsets = [0, 0, 96], sizes = [2, 8, 32], strides = [1, 1, 1]} : vector<2x8x128xf32> to vector<2x8x32xf32>
    %248 = arith.truncf %247 : vector<2x8x32xf32> to vector<2x8x32xbf16>
    %249 = vector.extract_strided_slice %179 {offsets = [0, 0, 96], sizes = [2, 16, 32], strides = [1, 1, 1]} : vector<2x16x128xbf16> to vector<2x16x32xbf16>
    %250 = vector.extract_strided_slice %180 {offsets = [0, 0, 96], sizes = [2, 16, 32], strides = [1, 1, 1]} : vector<2x16x128xbf16> to vector<2x16x32xbf16>
    "tpu.trace_start"() <{level = 10 : i32, message = "bqd,bkd->bqk"}> : () -> ()
    %cst_93 = arith.constant dense<0.000000e+00> : vector<2x8x16xf32>
    %251 = tpu.matmul %248, %249, %cst_93 {dimension_numbers = #tpu.dot_dimension_numbers<[2], [2], [1], [1], [0, 0, 0, 1, 1, 1], [0], [0]>} : vector<2x8x32xbf16>, vector<2x16x32xbf16>, vector<2x8x16xf32> -> vector<2x8x16xf32>
    "tpu.trace_stop"() : () -> ()
    %252 = arith.addf %251, %181 : vector<2x8x16xf32>
    %cst_94 = arith.constant dense<0xFF800000> : vector<2x8xf32>
    %253 = vector.multi_reduction <maximumf>, %252, %cst_94 [2] : vector<2x8x16xf32> to vector<2x8xf32>
    %254 = vector.shape_cast %253 : vector<2x8xf32> to vector<2x8x1xf32>
    %255 = vector.broadcast %254 : vector<2x8x1xf32> to vector<2x8x16xf32>
    %256 = arith.subf %252, %255 : vector<2x8x16xf32>
    %257 = math.exp %256 : vector<2x8x16xf32>
    %cst_95 = arith.constant dense<0.000000e+00> : vector<2x8xf32>
    %258 = vector.multi_reduction <add>, %257, %cst_95 [2] : vector<2x8x16xf32> to vector<2x8xf32>
    %259 = vector.shape_cast %258 : vector<2x8xf32> to vector<2x8x1xf32>
    %260 = tpu.reciprocal %259 {approx = true} : vector<2x8x1xf32> -> vector<2x8x1xf32>
    %261 = vector.broadcast %260 : vector<2x8x1xf32> to vector<2x8x16xf32>
    %262 = arith.mulf %257, %261 : vector<2x8x16xf32>
    %263 = arith.truncf %262 : vector<2x8x16xf32> to vector<2x8x16xbf16>
    "tpu.trace_start"() <{level = 10 : i32, message = "bqk,bkd->bqd"}> : () -> ()
    %cst_96 = arith.constant dense<0.000000e+00> : vector<2x8x32xf32>
    %264 = tpu.matmul %263, %250, %cst_96 {dimension_numbers = #tpu.dot_dimension_numbers<[2], [1], [1], [2], [0, 0, 0, 1, 1, 2], [0], [0]>} : vector<2x8x16xbf16>, vector<2x16x32xbf16>, vector<2x8x32xf32> -> vector<2x8x32xf32>
    "tpu.trace_stop"() : () -> ()
    %265 = arith.truncf %264 : vector<2x8x32xf32> to vector<2x8x32xbf16>
    %c96_97 = arith.constant 96 : index
    %c0_98 = arith.constant 0 : index
    %266 = vector.load %arg16[%c96_97, %c0_98] : memref<128x128xbf16, #tpu.memory_space<vmem>>, vector<32x128xbf16>
    "tpu.trace_start"() <{level = 10 : i32, message = "bqd,df->bqf"}> : () -> ()
    %cst_99 = arith.constant dense<0.000000e+00> : vector<2x8x128xf32>
    %267 = tpu.matmul %265, %266, %cst_99 {dimension_numbers = #tpu.dot_dimension_numbers<[2], [0], [0, 1], [1], [0, 0, 0, 1, 1, 1], [], []>} : vector<2x8x32xbf16>, vector<32x128xbf16>, vector<2x8x128xf32> -> vector<2x8x128xf32>
    "tpu.trace_stop"() : () -> ()
    %268 = arith.addf %246, %267 : vector<2x8x128xf32>
    %269 = vector.shape_cast %268 : vector<2x8x128xf32> to vector<16x128xf32>
    %270 = arith.addf %145, %269 : vector<16x128xf32>
    %c0_100 = arith.constant 0 : index
    %c0_101 = arith.constant 0 : index
    %271 = vector.load %arg17[%c0_100, %c0_101] : memref<1x128xf32, #tpu.memory_space<vmem>>, vector<1x128xf32>
    %272 = vector.broadcast %271 : vector<1x128xf32> to vector<16x128xf32>
    %273 = arith.addf %270, %272 : vector<16x128xf32>
    %c2 = arith.constant 2 : index
    %c0_102 = arith.constant 0 : index
    %c0_103 = arith.constant 0 : index
    %274 = vector.load %arg6[%c2, %c0_102, %c0_103] : memref<3x1x128xf32, #tpu.memory_space<vmem>>, vector<1x1x128xf32>
    %275 = vector.shape_cast %274 : vector<1x1x128xf32> to vector<1x128xf32>
    %c2_104 = arith.constant 2 : index
    %c0_105 = arith.constant 0 : index
    %c0_106 = arith.constant 0 : index
    %276 = vector.load %arg7[%c2_104, %c0_105, %c0_106] : memref<3x1x128xf32, #tpu.memory_space<vmem>>, vector<1x1x128xf32>
    %277 = vector.shape_cast %276 : vector<1x1x128xf32> to vector<1x128xf32>
    %cst_107 = arith.constant dense<0.000000e+00> : vector<16xf32>
    %278 = vector.multi_reduction <add>, %273, %cst_107 [1] : vector<16x128xf32> to vector<16xf32>
    %279 = vector.shape_cast %278 : vector<16xf32> to vector<16x1xf32>
    %cst_108 = arith.constant 1.280000e+02 : f32
    %280 = vector.broadcast %cst_108 : f32 to vector<16x1xf32>
    %281 = arith.divf %279, %280 : vector<16x1xf32>
    %282 = vector.broadcast %281 : vector<16x1xf32> to vector<16x128xf32>
    %283 = arith.subf %273, %282 : vector<16x128xf32>
    %284 = arith.mulf %283, %283 : vector<16x128xf32>
    %cst_109 = arith.constant dense<0.000000e+00> : vector<16xf32>
    %285 = vector.multi_reduction <add>, %284, %cst_109 [1] : vector<16x128xf32> to vector<16xf32>
    %286 = vector.shape_cast %285 : vector<16xf32> to vector<16x1xf32>
    %cst_110 = arith.constant 1.280000e+02 : f32
    %287 = vector.broadcast %cst_110 : f32 to vector<16x1xf32>
    %288 = arith.divf %286, %287 : vector<16x1xf32>
    %289 = vector.broadcast %281 : vector<16x1xf32> to vector<16x128xf32>
    %290 = arith.subf %273, %289 : vector<16x128xf32>
    %cst_111 = arith.constant 9.99999974E-6 : f32
    %291 = vector.broadcast %cst_111 : f32 to vector<16x1xf32>
    %292 = arith.addf %288, %291 : vector<16x1xf32>
    %293 = math.rsqrt %292 : vector<16x1xf32>
    %294 = vector.broadcast %293 : vector<16x1xf32> to vector<16x128xf32>
    %295 = arith.mulf %290, %294 : vector<16x128xf32>
    %296 = vector.broadcast %275 : vector<1x128xf32> to vector<16x128xf32>
    %297 = arith.mulf %295, %296 : vector<16x128xf32>
    %298 = vector.broadcast %277 : vector<1x128xf32> to vector<16x128xf32>
    %299 = arith.addf %297, %298 : vector<16x128xf32>
    %300 = arith.truncf %299 : vector<16x128xf32> to vector<16x128xbf16>
    %c0_112 = arith.constant 0 : index
    %c0_113 = arith.constant 0 : index
    %301 = vector.load %arg18[%c0_112, %c0_113] : memref<128x256xbf16, #tpu.memory_space<vmem>>, vector<128x256xbf16>
    %cst_114 = arith.constant dense<0.000000e+00> : vector<16x256xf32>
    %302 = tpu.matmul %300, %301, %cst_114 {dimension_numbers = #tpu.dot_dimension_numbers<[1], [0], [0], [1], [0, 0, 1, 1], [], []>} : vector<16x128xbf16>, vector<128x256xbf16>, vector<16x256xf32> -> vector<16x256xf32>
    %c0_115 = arith.constant 0 : index
    %c0_116 = arith.constant 0 : index
    %303 = vector.load %arg19[%c0_115, %c0_116] : memref<1x256xf32, #tpu.memory_space<vmem>>, vector<1x256xf32>
    %304 = vector.broadcast %303 : vector<1x256xf32> to vector<16x256xf32>
    %305 = arith.addf %302, %304 : vector<16x256xf32>
    %cst_117 = arith.constant 0.000000e+00 : f32
    %306 = vector.broadcast %cst_117 : f32 to vector<16x256xf32>
    %307 = arith.maximumf %305, %306 : vector<16x256xf32>
    %308 = arith.truncf %307 : vector<16x256xf32> to vector<16x256xbf16>
    %c0_118 = arith.constant 0 : index
    %c0_119 = arith.constant 0 : index
    %309 = vector.load %arg20[%c0_118, %c0_119] : memref<256x128xbf16, #tpu.memory_space<vmem>>, vector<256x128xbf16>
    %cst_120 = arith.constant dense<0.000000e+00> : vector<16x128xf32>
    %310 = tpu.matmul %308, %309, %cst_120 {dimension_numbers = #tpu.dot_dimension_numbers<[1], [0], [0], [1], [0, 0, 1, 1], [], []>} : vector<16x256xbf16>, vector<256x128xbf16>, vector<16x128xf32> -> vector<16x128xf32>
    %311 = arith.addf %273, %310 : vector<16x128xf32>
    %c0_121 = arith.constant 0 : index
    %c0_122 = arith.constant 0 : index
    %312 = vector.load %arg21[%c0_121, %c0_122] : memref<1x128xf32, #tpu.memory_space<vmem>>, vector<1x128xf32>
    %313 = vector.broadcast %312 : vector<1x128xf32> to vector<16x128xf32>
    %314 = arith.addf %311, %313 : vector<16x128xf32>
    %315 = vector.shape_cast %314 : vector<16x128xf32> to vector<2x8x128xf32>
    %c0_123 = arith.constant 0 : index
    %c0_124 = arith.constant 0 : index
    %c0_125 = arith.constant 0 : index
    %316 = vector.load %arg24[%c0_123, %c0_124, %c0_125] : memref<2x8x128xf32, #tpu.memory_space<vmem>>, vector<2x8x128xf32>
    tpu.vector_store %arg24[%c0_123, %c0_124, %c0_125], %315 {strides = array<i32>} : memref<2x8x128xf32, #tpu.memory_space<vmem>>, vector<2x8x128xf32>,
    %c1_i32 = arith.constant 1 : i32
    %317 = arith.cmpi eq, %arg1, %c1_i32 : i32
    %318 = arith.extui %317 : i1 to i32
    %c0_i32_126 = arith.constant 0 : i32
    %319 = arith.cmpi ne, %318, %c0_i32_126 : i32
    scf.if %319 {
      %c0_127 = arith.constant 0 : index
      %c0_128 = arith.constant 0 : index
      %320 = vector.load %arg22[%c0_127, %c0_128] : memref<1x128xf32, #tpu.memory_space<vmem>>, vector<1x128xf32>
      %c0_129 = arith.constant 0 : index
      %c0_130 = arith.constant 0 : index
      %321 = vector.load %arg23[%c0_129, %c0_130] : memref<1x128xf32, #tpu.memory_space<vmem>>, vector<1x128xf32>
      %cst_131 = arith.constant dense<0.000000e+00> : vector<16xf32>
      %322 = vector.multi_reduction <add>, %314, %cst_131 [1] : vector<16x128xf32> to vector<16xf32>
      %323 = vector.shape_cast %322 : vector<16xf32> to vector<16x1xf32>
      %cst_132 = arith.constant 1.280000e+02 : f32
      %324 = vector.broadcast %cst_132 : f32 to vector<16x1xf32>
      %325 = arith.divf %323, %324 : vector<16x1xf32>
      %326 = vector.broadcast %325 : vector<16x1xf32> to vector<16x128xf32>
      %327 = arith.subf %314, %326 : vector<16x128xf32>
      %328 = arith.mulf %327, %327 : vector<16x128xf32>
      %cst_133 = arith.constant dense<0.000000e+00> : vector<16xf32>
      %329 = vector.multi_reduction <add>, %328, %cst_133 [1] : vector<16x128xf32> to vector<16xf32>
      %330 = vector.shape_cast %329 : vector<16xf32> to vector<16x1xf32>
      %cst_134 = arith.constant 1.280000e+02 : f32
      %331 = vector.broadcast %cst_134 : f32 to vector<16x1xf32>
      %332 = arith.divf %330, %331 : vector<16x1xf32>
      %333 = vector.broadcast %325 : vector<16x1xf32> to vector<16x128xf32>
      %334 = arith.subf %314, %333 : vector<16x128xf32>
      %cst_135 = arith.constant 9.99999974E-6 : f32
      %335 = vector.broadcast %cst_135 : f32 to vector<16x1xf32>
      %336 = arith.addf %332, %335 : vector<16x1xf32>
      %337 = math.rsqrt %336 : vector<16x1xf32>
      %338 = vector.broadcast %337 : vector<16x1xf32> to vector<16x128xf32>
      %339 = arith.mulf %334, %338 : vector<16x128xf32>
      %340 = vector.broadcast %320 : vector<1x128xf32> to vector<16x128xf32>
      %341 = arith.mulf %339, %340 : vector<16x128xf32>
      %342 = vector.broadcast %321 : vector<1x128xf32> to vector<16x128xf32>
      %343 = arith.addf %341, %342 : vector<16x128xf32>
      %344 = vector.shape_cast %343 : vector<16x128xf32> to vector<2x8x128xf32>
      %c0_136 = arith.constant 0 : index
      %c0_137 = arith.constant 0 : index
      %c0_138 = arith.constant 0 : index
      %345 = vector.load %arg24[%c0_136, %c0_137, %c0_138] : memref<2x8x128xf32, #tpu.memory_space<vmem>>, vector<2x8x128xf32>
      tpu.vector_store %arg24[%c0_136, %c0_137, %c0_138], %344 {strides = array<i32>} : memref<2x8x128xf32, #tpu.memory_space<vmem>>, vector<2x8x128xf32>,
    } else {
    }
    return
  }
  func.func @transform_0(%arg0: i32, %arg1: i32) -> (i32, i32, i32) {
    %c0_i32 = arith.constant 0 : i32
    %c0_i32_0 = arith.constant 0 : i32
    %c0_i32_1 = arith.constant 0 : i32
    return %arg0, %c0_i32, %c0_i32_0 : i32, i32, i32
  }
  func.func @transform_1(%arg0: i32, %arg1: i32) -> (i32, i32, i32) {
    %c0_i32 = arith.constant 0 : i32
    %c0_i32_0 = arith.constant 0 : i32
    %c0_i32_1 = arith.constant 0 : i32
    return %arg0, %c0_i32, %c0_i32_0 : i32, i32, i32
  }
  func.func @transform_2(%arg0: i32, %arg1: i32) -> (i32, i32, i32) {
    %c0_i32 = arith.constant 0 : i32
    %c0_i32_0 = arith.constant 0 : i32
    %c0_i32_1 = arith.constant 0 : i32
    return %arg0, %c0_i32, %c0_i32_0 : i32, i32, i32
  }
  func.func @transform_3(%arg0: i32, %arg1: i32) -> (i32, i32, i32) {
    %c0_i32 = arith.constant 0 : i32
    %c0_i32_0 = arith.constant 0 : i32
    %c0_i32_1 = arith.constant 0 : i32
    return %arg0, %c0_i32, %c0_i32_0 : i32, i32, i32
  }
  func.func @transform_4(%arg0: i32, %arg1: i32) -> (i32, i32, i32) {
    %c0_i32 = arith.constant 0 : i32
    %c0_i32_0 = arith.constant 0 : i32
    %c0_i32_1 = arith.constant 0 : i32
    %c0_i32_2 = arith.constant 0 : i32
    return %c0_i32, %c0_i32_0, %c0_i32_1 : i32, i32, i32
  }
  func.func @transform_5(%arg0: i32, %arg1: i32) -> (i32, i32, i32) {
    %c0_i32 = arith.constant 0 : i32
    %c0_i32_0 = arith.constant 0 : i32
    %c0_i32_1 = arith.constant 0 : i32
    %c0_i32_2 = arith.constant 0 : i32
    return %c0_i32, %c0_i32_0, %c0_i32_1 : i32, i32, i32
  }
  func.func @transform_6(%arg0: i32, %arg1: i32) -> (i32, i32) {
    %c0_i32 = arith.constant 0 : i32
    %c0_i32_0 = arith.constant 0 : i32
    %c0_i32_1 = arith.constant 0 : i32
    return %c0_i32, %c0_i32_0 : i32, i32
  }
  func.func @transform_7(%arg0: i32, %arg1: i32) -> (i32, i32) {
    %c0_i32 = arith.constant 0 : i32
    %c0_i32_0 = arith.constant 0 : i32
    %c0_i32_1 = arith.constant 0 : i32
    return %c0_i32, %c0_i32_0 : i32, i32
  }
  func.func @transform_8(%arg0: i32, %arg1: i32) -> (i32, i32) {
    %c0_i32 = arith.constant 0 : i32
    %c0_i32_0 = arith.constant 0 : i32
    %c0_i32_1 = arith.constant 0 : i32
    return %c0_i32, %c0_i32_0 : i32, i32
  }
  func.func @transform_9(%arg0: i32, %arg1: i32) -> (i32, i32) {
    %c0_i32 = arith.constant 0 : i32
    %c0_i32_0 = arith.constant 0 : i32
    %c0_i32_1 = arith.constant 0 : i32
    return %c0_i32, %c0_i32_0 : i32, i32
  }
  func.func @transform_10(%arg0: i32, %arg1: i32) -> (i32, i32) {
    %c0_i32 = arith.constant 0 : i32
    %c0_i32_0 = arith.constant 0 : i32
    %c0_i32_1 = arith.constant 0 : i32
    return %c0_i32, %c0_i32_0 : i32, i32
  }
  func.func @transform_11(%arg0: i32, %arg1: i32) -> (i32, i32) {
    %c0_i32 = arith.constant 0 : i32
    %c0_i32_0 = arith.constant 0 : i32
    %c0_i32_1 = arith.constant 0 : i32
    return %c0_i32, %c0_i32_0 : i32, i32
  }
  func.func @transform_12(%arg0: i32, %arg1: i32) -> (i32, i32) {
    %c0_i32 = arith.constant 0 : i32
    %c0_i32_0 = arith.constant 0 : i32
    %c0_i32_1 = arith.constant 0 : i32
    return %c0_i32, %c0_i32_0 : i32, i32
  }
  func.func @transform_13(%arg0: i32, %arg1: i32) -> (i32, i32) {
    %c0_i32 = arith.constant 0 : i32
    %c0_i32_0 = arith.constant 0 : i32
    %c0_i32_1 = arith.constant 0 : i32
    return %c0_i32, %c0_i32_0 : i32, i32
  }
  func.func @transform_14(%arg0: i32, %arg1: i32) -> (i32, i32) {
    %c0_i32 = arith.constant 0 : i32
    %c0_i32_0 = arith.constant 0 : i32
    %c0_i32_1 = arith.constant 0 : i32
    return %c0_i32, %c0_i32_0 : i32, i32
  }
  func.func @transform_15(%arg0: i32, %arg1: i32) -> (i32, i32) {
    %c0_i32 = arith.constant 0 : i32
    %c0_i32_0 = arith.constant 0 : i32
    %c0_i32_1 = arith.constant 0 : i32
    return %c0_i32, %c0_i32_0 : i32, i32
  }
  func.func @transform_16(%arg0: i32, %arg1: i32) -> (i32, i32) {
    %c0_i32 = arith.constant 0 : i32
    %c0_i32_0 = arith.constant 0 : i32
    %c0_i32_1 = arith.constant 0 : i32
    return %c0_i32, %c0_i32_0 : i32, i32
  }
  func.func @transform_17(%arg0: i32, %arg1: i32) -> (i32, i32) {
    %c0_i32 = arith.constant 0 : i32
    %c0_i32_0 = arith.constant 0 : i32
    %c0_i32_1 = arith.constant 0 : i32
    return %c0_i32, %c0_i32_0 : i32, i32
  }
  func.func @transform_18(%arg0: i32, %arg1: i32) -> (i32, i32) {
    %c0_i32 = arith.constant 0 : i32
    %c0_i32_0 = arith.constant 0 : i32
    %c0_i32_1 = arith.constant 0 : i32
    return %c0_i32, %c0_i32_0 : i32, i32
  }
  func.func @transform_19(%arg0: i32, %arg1: i32) -> (i32, i32) {
    %c0_i32 = arith.constant 0 : i32
    %c0_i32_0 = arith.constant 0 : i32
    %c0_i32_1 = arith.constant 0 : i32
    return %c0_i32, %c0_i32_0 : i32, i32
  }
  func.func @transform_20(%arg0: i32, %arg1: i32) -> (i32, i32) {
    %c0_i32 = arith.constant 0 : i32
    %c0_i32_0 = arith.constant 0 : i32
    %c0_i32_1 = arith.constant 0 : i32
    return %c0_i32, %c0_i32_0 : i32, i32
  }
  func.func @transform_21(%arg0: i32, %arg1: i32) -> (i32, i32) {
    %c0_i32 = arith.constant 0 : i32
    %c0_i32_0 = arith.constant 0 : i32
    %c0_i32_1 = arith.constant 0 : i32
    return %c0_i32, %c0_i32_0 : i32, i32
  }
  func.func @transform_22(%arg0: i32, %arg1: i32) -> (i32, i32, i32) {
    %c0_i32 = arith.constant 0 : i32
    %c0_i32_0 = arith.constant 0 : i32
    %c0_i32_1 = arith.constant 0 : i32
    return %arg0, %c0_i32, %c0_i32_0 : i32, i32, i32
  }
}

</mosaic_0001>

<bundles_post_ra>
// kernel: tpu_custom_call.1
= control target key start
LH: loop header
LB: loop body
LE: loop exit
PB: predicated region body
PF: predicated region fallthrough
CT: control target
= control target key end

     0   :  { %s5484_s0 = inlined_call_operand.hbm [shape: f32[2,8,128], index: 0, kind: input, shape index: {}]   ;;  %s5485_s1 = inlined_call_operand.hbm [shape: f32[2,16,128], index: 1, kind: input, shape index: {}]   ;;  %s5486_s2 = inlined_call_operand.hbm [shape: bf16[2,8,8], index: 2, kind: input, shape index: {}]   ;;  %s5487_s3 = inlined_call_operand.hbm [shape: bf16[2,8,16], index: 3, kind: input, shape index: {}]   ;;  %s5488_s4 = inlined_call_operand.vmem [shape: f32[3,1,128], index: 4, kind: input, shape index: {}]   ;;  %s5489_s5 = inlined_call_operand.hbm [shape: f32[3,1,128], index: 5, kind: input, shape index: {}]   ;;  %s5490_s6 = inlined_call_operand.hbm [shape: bf16[128,384], index: 6, kind: input, shape index: {}]   ;;  %s5491_s7 = inlined_call_operand.vmem [shape: f32[1,384], index: 7, kind: input, shape index: {}]   ;;  %s5492_s8 = inlined_call_operand.hbm [shape: bf16[128,128], index: 8, kind: input, shape index: {}]   ;;  %s5493_s9 = inlined_call_operand.hbm [shape: f32[1,128], index: 9, kind: input, shape index: {}]   ;;  %s5494_s10 = inlined_call_operand.hbm [shape: bf16[128,128], index: 10, kind: input, shape index: {}]   ;;  %s5495_s11 = inlined_call_operand.hbm [shape: f32[1,128], index: 11, kind: input, shape index: {}]   ;;  %s5496_s12 = inlined_call_operand.hbm [shape: bf16[128,256], index: 12, kind: input, shape index: {}]   ;;  %s5497_s13 = inlined_call_operand.vmem [shape: f32[1,256], index: 13, kind: input, shape index: {}]   ;;  %s5498_s14 = inlined_call_operand.hbm [shape: bf16[128,128], index: 14, kind: input, shape index: {}]   ;;  %s5499_s15 = inlined_call_operand.vmem [shape: f32[1,128], index: 15, kind: input, shape index: {}]   ;;  %s5500_s16 = inlined_call_operand.hbm [shape: bf16[128,256], index: 16, kind: input, shape index: {}]   ;;  %s5501_s17 = inlined_call_operand.vmem [shape: f32[1,256], index: 17, kind: input, shape index: {}]   ;;  %s5502_s18 = inlined_call_operand.hbm [shape: bf16[256,128], index: 18, kind: input, shape index: {}]   ;;  %s5503_s19 = inlined_call_operand.vmem [shape: f32[1,128], index: 19, kind: input, shape index: {}]   ;;  %s5504_s20 = inlined_call_operand.vmem [shape: f32[1,128], index: 20, kind: input, shape index: {}]   ;;  %s5505_s21 = inlined_call_operand.vmem [shape: f32[1,128], index: 21, kind: input, shape index: {}]   ;;  %s5506_s22 = inlined_call_operand.hbm [shape: f32[2,8,128], index: 22, kind: output, shape index: {}]  }
   0x1   :  { %5518 = sst [smem:[#allocation39_spill]] %s5484_s0 }
   0x2   :  { %5519 = sst [smem:[#allocation40_spill]] %s5485_s1 }
   0x3   :  { %5520 = sst [smem:[#allocation41_spill]] %s5486_s2 }
   0x4   :  { %5521 = sst [smem:[#allocation42_spill]] %s5487_s3 }
   0x5   :  { %5522 = sst [smem:[#allocation43_spill]] %s5488_s4 }
   0x6   :  { %5523 = sst [smem:[#allocation44_spill]] %s5489_s5 }
   0x7   :  { %5524 = sst [smem:[#allocation45_spill]] %s5490_s6 }
   0x8   :  { %5525 = sst [smem:[#allocation46_spill]] %s5493_s9 }
   0x9   :  { %5526 = sst [smem:[#allocation47_spill]] %s5495_s11 }
   0xa   :  { %5527 = sst [smem:[#allocation48_spill]] %s5498_s14 }
   0xb   :  { %5528 = sst [smem:[#allocation49_spill]] %s5501_s17 }
   0xc   :  { %5529 = sst [smem:[#allocation50_spill]] %s5503_s19 }
   0xd   :  { %5530 = sst [smem:[#allocation51_spill]] %s5504_s20 }
   0xe   :  { %5531 = sst [smem:[#allocation52_spill]] %s5505_s21 }
   0xf   :  { %5532 = sst [smem:[#allocation53_spill]] %s5506_s22 }
  0x10   :  { %27 = vsyncpa [#allocation5], 0 }
  0x11   :  { %28 = vsyncpa [#allocation8], 0 }
  0x12   :  { %29 = vsyncpa [#allocation11], 0 }
  0x13   :  { %30 = vsyncpa [#allocation14], 0 }
  0x14   :  { %31 = vsyncpa [#allocation17], 0 }
  0x15   :  { %32 = vsyncpa [#allocation20], 0 }
  0x16   :  { %33 = vsyncpa [#allocation23], 0 }
  0x17   :  { %34 = vsyncpa [#allocation26], 0 }
  0x18   :  { %35 = vsyncpa [#allocation6], 0  ;;  %s4953_s3 = smov 0   ;;  %s4955_s28 = smov 0  }
  0x19   :  { %s4957_s29 = smov 0  }
  0x1a LB: > { %5533 = sst [smem:[#allocation37_spill]] %s4807_s29  ;;  %s5508_s30 = sadd.s32 4294967295, %s4807_s29   ;;  %s4807_s29 = sphi %s4957_s29, %s41_s29   ;;  %s4803_s28 = sphi %s4955_s28, %s5562_s28   ;;  %s4799_s3 = sphi %s4953_s3, %s5561_s3  }
  0x1b   : > { %p3397_p0 = scmp.ge.s32.totalorder %s4807_s29, 1  ;;  %p566_p1 = scmp.lt.s32.totalorder %s4807_s29, 3 }
  0x1c   : > { %p4973_p2 = scmp.eq.s32.totalorder %s5508_s30, 0  ;;  %s5535_s1 = sld [smem:[#allocation40_spill]] }
  0x1d   : > { %p4980_p3 = pnand %p3397_p0, %p566_p1  ;;  %s4809_s6 = smov [#allocation7]  }
  0x1e   : > { %s600_s25 = sshll.u32 %s4809_s6, 4  ;;  %s5538_s0 = sld [smem:[#allocation42_spill]]  ;;  %s601_s25 = int_to_ptr.vmem [resolvable:$true] %s600_s25 }
  0x1f   : > { %p4081_p4 = pneg %p4980_p3  ;;  %s5510_s22 = smov 128  }
  0x20   : > { %s5512_s29 = smov 8   ;;  %s5539_s20 = sld [smem:[#allocation45_spill]] }
  0x21   : > { %p4988_p5 = pnand %p4973_p2, %p4081_p4  ;;  %s5514_s2 = smov 64  }
  0x22   : > { %s598_s5 = sshll.u32 %s5535_s1, 4  ;;  %s4810_s1 = smov [#allocation10]   ;;  %s599_s5 = int_to_ptr.hbm [resolvable:$true] %s598_s5 }
  0x23   : > { %s634_s30 = sshll.u32 %s4810_s1, 4  ;;  %s5516_s27 = smov 4   ;;  %s635_s30 = int_to_ptr.vmem [resolvable:$true] %s634_s30 }
  0x24   : > { %s632_s23 = sshll.u32 %s5538_s0, 4  ;;  %s4815_s0 = smov [#allocation13]   ;;  %s633_s23 = int_to_ptr.hbm [resolvable:$true] %s632_s23 }
  0x25   : > { %4087 = dma.hbm_to_vmem [thread:$0]  (!%p4988_p5), %s599_s5, 512, %s601_s25, [#allocation8], %s5510_s22, %s5510_s22, %s5512_s29  }
  0x26   : > { %s663_s19 = sshll.u32 %s5539_s20, 4  ;;  %s665_s1 = sshll.u32 %s4815_s0, 4  ;;  %s664_s19 = int_to_ptr.hbm [resolvable:$true] %s663_s19  ;;  %s666_s1 = int_to_ptr.vmem [resolvable:$true] %s665_s1 }
  0x27   : > { %4093 = dma.hbm_to_vmem [thread:$0]  (!%p4988_p5), %s633_s23, 128, %s635_s30, [#allocation11], %s5514_s2, %s5514_s2, %s5516_s27  }
  0x28   : > { %s4816_s17 = smov 192   ;;  %s4817_s5 = smov 12  }
  0x29   : > { %4099 = dma.hbm_to_vmem [thread:$0]  (!%p4988_p5), %s664_s19, 3072, %s666_s1, [#allocation14], %s4816_s17, %s4816_s17, %s4817_s5  }
  0x2a   : > { %s5540_s9 = sld [smem:[#allocation46_spill]]  ;;  %s4818_s6 = smov [#allocation16]  }
  0x2b   : > { %s697_s22 = sshll.u32 %s4818_s6, 4  ;;  %s5541_s11 = sld [smem:[#allocation47_spill]]  ;;  %s698_s22 = int_to_ptr.vmem [resolvable:$true] %s697_s22 }
  0x2c   : > { %s4819_s29 = smov [#allocation19]   ;;  %s5542_s14 = sld [smem:[#allocation48_spill]] }
  0x2d   : > { %s723_s2 = sshll.u32 %s4819_s29, 4  ;;  %s4820_s5 = smov [#allocation22]   ;;  %s724_s2 = int_to_ptr.vmem [resolvable:$true] %s723_s2 }
  0x2e   : > { %s751_s25 = sshll.u32 %s4820_s5, 4  ;;  %s5543_s21 = smov 64   ;;  %s752_s25 = int_to_ptr.vmem [resolvable:$true] %s751_s25 }
  0x2f   : > { %s5544_s6 = sld [smem:[#allocation39_spill]]  ;;  %s4821_s23 = smov [#allocation4]  }
  0x30   : > { %s695_s20 = sshll.u32 %s5540_s9, 4  ;;  %s5546_s19 = sld [smem:[#allocation41_spill]]  ;;  %s696_s20 = int_to_ptr.hbm [resolvable:$true] %s695_s20 }
  0x31   : > { %s721_s0 = sshll.u32 %s5541_s11, 4  ;;  %s4822_s9 = smov [#allocation9]   ;;  %s722_s0 = int_to_ptr.hbm [resolvable:$true] %s721_s0 }
  0x32   : > { %4105 = dma.hbm_to_vmem [thread:$0]  (!%p4988_p5), %s696_s20, 16, %s698_s22, [#allocation17]  }
  0x33   : > { %s749_s1 = sshll.u32 %s5542_s14, 4  ;;  %s50_s22 = sadd.s32 1, %s4803_s28  ;;  %s750_s1 = int_to_ptr.hbm [resolvable:$true] %s749_s1 }
  0x34   : > { %4111 = dma.hbm_to_vmem [thread:$0]  (!%p4988_p5), %s722_s0, 16, %s724_s2, [#allocation20]  }
  0x35   : > { %4117 = dma.hbm_to_vmem [thread:$0]  (!%p4988_p5), %s750_s1, 1024, %s752_s25, [#allocation23], %s5543_s21, %s5543_s21, %s5516_s27  }
  0x36   : > { %p51_p6 = scmp.ge.s32.totalorder %s50_s22, 2  ;;  %s580_s30 = sshll.u32 %s5544_s6, 4  ;;  %s581_s30 = int_to_ptr.hbm [resolvable:$true] %s580_s30 }
  0x37   : > { %s582_s2 = sshll.u32 %s4821_s23, 4  ;;  %s615_s5 = sshll.u32 %s5546_s19, 4  ;;  %s583_s2 = int_to_ptr.vmem [resolvable:$true] %s582_s2  ;;  %s616_s5 = int_to_ptr.hbm [resolvable:$true] %s615_s5 }
  0x38   : > { %s5564_s22 = smov (%p51_p6, %s50_s22), 0  ;;  %s5547_s1 = smov 8  }
  0x39   : > { %5545 = sst [smem:[#allocation38_spill]] %s5564_s22  ;;  %s5548_s25 = smov 128  }
  0x3a   : > { %4084 = dma.hbm_to_vmem [thread:$0]  (!%p4988_p5), %s581_s30, 256, %s583_s2, [#allocation5], %s5548_s25, %s5548_s25, %s5547_s1  }
  0x3b   : > { %s5549_s20 = sld [smem:[#allocation44_spill]]  ;;  %s617_s11 = sshll.u32 %s4822_s9, 4  ;;  %s618_s11 = int_to_ptr.vmem [resolvable:$true] %s617_s11 }
  0x3c   : > { %s5550_s23 = smov 4   ;;  %s4823_s0 = smov [#allocation12]  }
  0x3d   : > { %4090 = dma.hbm_to_vmem [thread:$0]  (!%p4988_p5), %s616_s5, 128, %s618_s11, [#allocation8], %s5543_s21, %s5543_s21, %s5550_s23  }
  0x3e   : > { %s651_s17 = sshll.u32 %s4823_s0, 4  ;;  %s4824_s19 = smov 16   ;;  %s652_s17 = int_to_ptr.vmem [resolvable:$true] %s651_s17 }
  0x3f   : > { %s4825_s30 = smov 1   ;;  %s680_s9 = sshll.u32 %s5492_s8, 4  ;;  %s681_s9 = int_to_ptr.hbm [resolvable:$true] %s680_s9 }
  0x40   : > { %s4826_s29 = smov [#allocation15]   ;;  %s706_s11 = sshll.u32 %s5494_s10, 4  ;;  %s707_s11 = int_to_ptr.hbm [resolvable:$true] %s706_s11 }
  0x41   : > { %s649_s6 = sshll.u32 %s5549_s20, 4  ;;  %s682_s20 = sshll.u32 %s4826_s29, 4  ;;  %s650_s6 = int_to_ptr.hbm [resolvable:$true] %s649_s6  ;;  %s683_s20 = int_to_ptr.vmem [resolvable:$true] %s682_s20 }
  0x42   : > { %4096 = dma.hbm_to_vmem [thread:$0]  (!%p4988_p5), %s650_s6, 48, %s652_s17, [#allocation11], %s4824_s19, %s4824_s19, %s4825_s30  }
  0x43   : > { %4102 = dma.hbm_to_vmem [thread:$0]  (!%p4988_p5), %s681_s9, 1024, %s683_s20, [#allocation14], %s5543_s21, %s5543_s21, %s5550_s23  }
  0x44   : > { %s4827_s5 = smov [#allocation18]   ;;  %s732_s19 = sshll.u32 %s5496_s12, 4  ;;  %s733_s19 = int_to_ptr.hbm [resolvable:$true] %s732_s19 }
  0x45   : > { %s708_s6 = sshll.u32 %s4827_s5, 4  ;;  %s766_s30 = sshll.u32 %s5500_s16, 4  ;;  %s709_s6 = int_to_ptr.vmem [resolvable:$true] %s708_s6  ;;  %s767_s30 = int_to_ptr.hbm [resolvable:$true] %s766_s30 }
  0x46   : > { %4108 = dma.hbm_to_vmem [thread:$0]  (!%p4988_p5), %s707_s11, 1024, %s709_s6, [#allocation17], %s5543_s21, %s5543_s21, %s5550_s23  }
  0x47   : > { %s4828_s27 = smov [#allocation21]   ;;  %s4829_s9 = smov [#allocation24]  }
  0x48   : > { %s734_s2 = sshll.u32 %s4828_s27, 4  ;;  %s768_s29 = sshll.u32 %s4829_s9, 4  ;;  %s735_s2 = int_to_ptr.vmem [resolvable:$true] %s734_s2  ;;  %s769_s29 = int_to_ptr.vmem [resolvable:$true] %s768_s29 }
  0x49   : > { %4114 = dma.hbm_to_vmem [thread:$0]  (!%p4988_p5), %s733_s19, 2048, %s735_s2, [#allocation20], %s5548_s25, %s5548_s25, %s5547_s1  }
  0x4a   : > { %s783_s11 = sshll.u32 %s5502_s18, 4  ;;  %s4830_s6 = smov [#allocation25]   ;;  %s784_s11 = int_to_ptr.hbm [resolvable:$true] %s783_s11 }
  0x4b   : > { %4120 = dma.hbm_to_vmem [thread:$0]  (!%p4988_p5), %s767_s30, 2048, %s769_s29, [#allocation23], %s5548_s25, %s5548_s25, %s5547_s1  }
  0x4c   : > { %s785_s0 = sshll.u32 %s4830_s6, 4  ;;  %810 = sbr.rel (%p4980_p3) target bundleno = 5201 (0x1451), region = 108  ;;  %s786_s0 = int_to_ptr.vmem [resolvable:$true] %s785_s0 }
  0x4d   : > { %4123 = dma.hbm_to_vmem [thread:$0]  (!%p4988_p5), %s784_s11, 2048, %s786_s0, [#allocation26], %s5543_s21, %s5543_s21, %s5550_s23  }
  0x51   : > { %4762 = dma.done.wait (%p4973_p2), [#allocation5], 256  }
  0x52   : > { %4764 = vsyncadd (%p4973_p2), [#allocation5], 4294967040 }
  0x53   : > { %4766 = dma.done.wait (%p4973_p2), [#allocation8], 640  }
  0x54   : > { %4768 = vsyncadd (%p4973_p2), [#allocation8], 4294966656 }
  0x55   : > { %4770 = dma.done.wait (%p4973_p2), [#allocation11], 176  }
  0x56   : > { %4772 = vsyncadd (%p4973_p2), [#allocation11], 4294967120 }
  0x57   : > { %4774 = dma.done.wait (%p4973_p2), [#allocation14], 4096  }
  0x58   : > { %4776 = vsyncadd (%p4973_p2), [#allocation14], 4294963200 }
  0x59   : > { %4778 = dma.done.wait (%p4973_p2), [#allocation17], 1040  }
  0x5a   : > { %4780 = vsyncadd (%p4973_p2), [#allocation17], 4294966256 }
  0x5b   : > { %4782 = dma.done.wait (%p4973_p2), [#allocation20], 2064  }
  0x5c   : > { %4784 = vsyncadd (%p4973_p2), [#allocation20], 4294965232 }
  0x5d   : > { %4786 = dma.done.wait (%p4973_p2), [#allocation23], 3072  }
  0x5e   : > { %4788 = vsyncadd (%p4973_p2), [#allocation23], 4294964224 }
  0x5f   : > { %4790 = dma.done.wait (%p4973_p2), [#allocation26], 2048  }
  0x60   : > { %4792 = vsyncadd (%p4973_p2), [#allocation26], 4294965248  ;;  %p3427_p7 = scmp.ne.s32.totalorder %s4799_s3, 0 }
  0x62   : > { %937 = sbr.rel (%p3427_p7) target bundleno = 284 (0x11c), region = 168 }
  0x67   : > { %v938_v0 = vld [vmem:[#allocation4] sm:$0xff]  ;;  %v939_v1 = vld [vmem:[#allocation4 + $0x8] sm:$0xff]  ;;  %v3486_v2 = vld [vmem:[#allocation21 + $0x70] sm:$0xf] }
  0x68   : > { %940 = vst [vmem:[#allocation27] sm:$0xff] %v938_v0  ;;  %v3890_v3 = vld [vmem:[#allocation21 + $0x74] sm:$0xf0]  ;;  %v3889_v4 = vld [vmem:[#allocation21 + $0x74] sm:$0xf]  ;;  %v942_v48 = vld [vmem:[#allocation7] sm:$0xff] }
  0x69   : > { %941 = vst [vmem:[#allocation27 + $0x8] sm:$0xff] %v939_v1  ;;  %v3487_v5 = vor.u32 %v3890_v3, %v3486_v2  ;;  %v3488_v6 = vld [vmem:[#allocation21 + $0x78] sm:$0xf0]  ;;  %v3478_v7 = vld [vmem:[#allocation21 + $0x60] sm:$0xf]  ;;  %v943_v50 = vld [vmem:[#allocation7 + $0x8] sm:$0xff] }
  0x6a   : > { %v3491_v8 = vor.u32 %v3889_v4, %v3488_v6  ;;  %v3888_v9 = vld [vmem:[#allocation21 + $0x64] sm:$0xf0]  ;;  %v3887_v10 = vld [vmem:[#allocation21 + $0x64] sm:$0xf]  ;;  %v3480_v11 = vld [vmem:[#allocation21 + $0x68] sm:$0xf0]  ;;  %v946_v54 = vpack.c.bf16 %v943_v50, %v942_v48 }
  0x6b   : > { %1050 = vmatpush.bf16.msra.mxu0 %v3487_v5  ;;  %4005 = vmatpush.bf16.msra.mxu2 %v3487_v5  ;;  %v3479_v12 = vor.u32 %v3888_v9, %v3478_v7  ;;  %v3483_v13 = vor.u32 %v3887_v10, %v3480_v11  ;;  %v3470_v14 = vld [vmem:[#allocation21 + $0x50] sm:$0xf]  ;;  %v3886_v15 = vld [vmem:[#allocation21 + $0x54] sm:$0xf0]  ;;  %v3885_v16 = vld [vmem:[#allocation21 + $0x54] sm:$0xf] }
  0x6c   : > { %1069 = vmatpush.bf16.msra.mxu1 %v3491_v8  ;;  %4013 = vmatpush.bf16.msra.mxu3 %v3491_v8  ;;  %v3472_v17 = vld [vmem:[#allocation21 + $0x58] sm:$0xf0]  ;;  %v3471_v18 = vor.u32 %v3886_v15, %v3470_v14  ;;  %v3462_v20 = vld [vmem:[#allocation21 + $0x40] sm:$0xf]  ;;  %v3884_v21 = vld [vmem:[#allocation21 + $0x44] sm:$0xf0] }
  0x6d   : > { %v3475_v19 = vor.u32 %v3885_v16, %v3472_v17  ;;  %v3883_v22 = vld [vmem:[#allocation21 + $0x44] sm:$0xf]  ;;  %v3464_v23 = vld [vmem:[#allocation21 + $0x48] sm:$0xf0]  ;;  %v3463_v24 = vor.u32 %v3884_v21, %v3462_v20  ;;  %v3454_v26 = vld [vmem:[#allocation21 + $0x30] sm:$0xf] }
  0x6e   : > { %v3467_v25 = vor.u32 %v3883_v22, %v3464_v23  ;;  %v3882_v27 = vld [vmem:[#allocation21 + $0x34] sm:$0xf0]  ;;  %v3881_v28 = vld [vmem:[#allocation21 + $0x34] sm:$0xf]  ;;  %v3456_v29 = vld [vmem:[#allocation21 + $0x38] sm:$0xf0] }
  0x6f   : > { %1051 = vmatpush.bf16.msra.mxu0 %v3479_v12  ;;  %4006 = vmatpush.bf16.msra.mxu2 %v3479_v12  ;;  %v3455_v30 = vor.u32 %v3882_v27, %v3454_v26  ;;  %v3459_v31 = vor.u32 %v3881_v28, %v3456_v29  ;;  %v3446_v32 = vld [vmem:[#allocation21 + $0x20] sm:$0xf]  ;;  %v3880_v33 = vld [vmem:[#allocation21 + $0x24] sm:$0xf0]  ;;  %v3879_v34 = vld [vmem:[#allocation21 + $0x24] sm:$0xf] }
  0x70   : > { %1070 = vmatpush.bf16.msra.mxu1 %v3483_v13  ;;  %4014 = vmatpush.bf16.msra.mxu3 %v3483_v13  ;;  %v3448_v35 = vld [vmem:[#allocation21 + $0x28] sm:$0xf0]  ;;  %v3447_v36 = vor.u32 %v3880_v33, %v3446_v32  ;;  %v3438_v38 = vld [vmem:[#allocation21 + $0x10] sm:$0xf]  ;;  %v3878_v39 = vld [vmem:[#allocation21 + $0x14] sm:$0xf0] }
  0x71   : > { %v3451_v37 = vor.u32 %v3879_v34, %v3448_v35  ;;  %v3877_v40 = vld [vmem:[#allocation21 + $0x14] sm:$0xf]  ;;  %v3440_v41 = vld [vmem:[#allocation21 + $0x18] sm:$0xf0]  ;;  %v3439_v42 = vor.u32 %v3878_v39, %v3438_v38  ;;  %v3430_v44 = vld [vmem:[#allocation21] sm:$0xf] }
  0x72   : > { %v3443_v43 = vor.u32 %v3877_v40, %v3440_v41  ;;  %v3876_v45 = vld [vmem:[#allocation21 + $0x4] sm:$0xf0]  ;;  %v3875_v46 = vld [vmem:[#allocation21 + $0x4] sm:$0xf]  ;;  %v3432_v47 = vld [vmem:[#allocation21 + $0x8] sm:$0xf0] }
  0x73   : > { %1052 = vmatpush.bf16.msra.mxu0 %v3471_v18  ;;  %4007 = vmatpush.bf16.msra.mxu2 %v3471_v18  ;;  %v3431_v49 = vor.u32 %v3876_v45, %v3430_v44  ;;  %v944_v51 = vld [vmem:[#allocation7 + $0x10] sm:$0xff]  ;;  %v945_v52 = vld [vmem:[#allocation7 + $0x18] sm:$0xff]  ;;  %v3435_v53 = vor.u32 %v3875_v46, %v3432_v47 }
  0x74   : > { %1071 = vmatpush.bf16.msra.mxu1 %v3475_v19  ;;  %4015 = vmatpush.bf16.msra.mxu3 %v3475_v19  ;;  %v947_v55 = vpack.c.bf16 %v945_v52, %v944_v51  ;;  %v964_v58 = vld [vmem:[%s5497_s13] sm:$0x3] }
  0x75   : > { %v966_v59 = vperm.slane %v964_v58, 0  ;;  %v967_v60 = vperm.slane %v964_v58, 1 }
  0x77   : > { %1053 = vmatpush.bf16.msra.mxu0 %v3463_v24  ;;  %4008 = vmatpush.bf16.msra.mxu2 %v3463_v24 }
  0x78   : > { %1072 = vmatpush.bf16.msra.mxu1 %v3467_v25  ;;  %4016 = vmatpush.bf16.msra.mxu3 %v3467_v25 }
  0x7b   : > { %1054 = vmatpush.bf16.msra.mxu0 %v3455_v30  ;;  %4009 = vmatpush.bf16.msra.mxu2 %v3455_v30 }
  0x7c   : > { %1073 = vmatpush.bf16.msra.mxu1 %v3459_v31  ;;  %4017 = vmatpush.bf16.msra.mxu3 %v3459_v31 }
  0x7f   : > { %1055 = vmatpush.bf16.msra.mxu0 %v3447_v36  ;;  %4010 = vmatpush.bf16.msra.mxu2 %v3447_v36 }
  0x80   : > { %1074 = vmatpush.bf16.msra.mxu1 %v3451_v37  ;;  %4018 = vmatpush.bf16.msra.mxu3 %v3451_v37 }
  0x83   : > { %1056 = vmatpush.bf16.msra.mxu0 %v3439_v42  ;;  %4011 = vmatpush.bf16.msra.mxu2 %v3439_v42 }
  0x84   : > { %1075 = vmatpush.bf16.msra.mxu1 %v3443_v43  ;;  %4019 = vmatpush.bf16.msra.mxu3 %v3443_v43 }
  0x87   : > { %1057 = vmatpush.bf16.msra.mxu0 %v3431_v49  ;;  %4012 = vmatpush.bf16.msra.mxu2 %v3431_v49 }
  0x88   : > { %1076 = vmatpush.bf16.msra.mxu1 %v3435_v53  ;;  %4020 = vmatpush.bf16.msra.mxu3 %v3435_v53 }
  0x8a   : > { %1058 = vmatmul.bf16.vlgmr.msra.gmra.mxu0 %v946_v54  ;;  %1063 = vmatmul.bf16.vlgmr.msra.gmra.mxu2 %v947_v55 }
  0x8b   : > { %1077 = vmatmul.bf16.vlgmr.msra.gmra.mxu1 %v946_v54  ;;  %1082 = vmatmul.bf16.vlgmr.msra.gmra.mxu3 %v947_v55 }
 0x107   : > { %v1059_v56 = vpop.f32.mrf.mxu0 }
 0x108   : > { %v1078_v57 = vpop.f32.mrf.mxu1  ;;  %v1060_v0 = vadd.f32 %v1059_v56, %v966_v59 }
 0x109   : > { %v1079_v3 = vadd.f32 %v1078_v57, %v967_v60 }
 0x10d   : > { %v1064_v61 = vpop.f32.mrf.mxu2 }
 0x10e   : > { %v1083_v62 = vpop.f32.mrf.mxu3  ;;  %v1065_v8 = vadd.f32 %v1064_v61, %v966_v59 }
 0x10f   : > { %v1061_v63 = vpop.f32.mrf.mxu0  ;;  %v1084_v11 = vadd.f32 %v1083_v62, %v967_v60 }
 0x110   : > { %v1062_v1 = vadd.f32 %v1061_v63, %v966_v59  ;;  %v1080_v2 = vpop.f32.mrf.mxu1 }
 0x111   : > { %v1081_v4 = vadd.f32 %v1080_v2, %v967_v60 }
 0x112   : > { %v3978_v5 = vpack.c.bf16 %v1062_v1, %v1060_v0 }
 0x113   : > { %v3988_v6 = vpack.c.bf16 %v1081_v4, %v1079_v3 }
 0x114   : > { %3979 = vst [vmem:[#allocation2] sm:$0xff] %v3978_v5  }
 0x115   : > { %3989 = vst [vmem:[#allocation3 + $0x8] sm:$0xff] %v3988_v6   ;;  %v1066_v7 = vpop.f32.mrf.mxu2 }
 0x116   : > { %v1067_v9 = vadd.f32 %v1066_v7, %v966_v59  ;;  %v1085_v10 = vpop.f32.mrf.mxu3 }
 0x117   : > { %v1086_v12 = vadd.f32 %v1085_v10, %v967_v60 }
 0x118   : > { %v3983_v13 = vpack.c.bf16 %v1067_v9, %v1065_v8 }
 0x119   : > { %v3993_v14 = vpack.c.bf16 %v1086_v12, %v1084_v11 }
 0x11a   : > { %4003 = vst [vmem:[#allocation2 + $0x8] sm:$0xff] %v3983_v13  }
 0x11b   : > { %4004 = vst [vmem:[#allocation3] sm:$0xff] %v3993_v14  }
 0x11c PF: > { %v5130_v15 = vld [vmem:[#allocation27] sm:$0xff]  ;;  %v5133_v16 = vld [vmem:[#allocation27 + $0x8] sm:$0xff]  ;;  %v4831_v17 = vmov 128.0   ;;  %v3913_v33 = vld [vmem:[#allocation13 + $0xb0] sm:$0xf0]  ;;  %s5551_s1 = sld [smem:[#allocation43_spill]] }
 0x11d   : > { %1112 = vadd.xlane.f32.xlu0 %v5130_v15  ;;  %4217 = vrcp.f32 %v4831_v17  ;;  %v3578_v32 = vld [vmem:[#allocation13 + $0xa8] sm:$0xf]  ;;  %v3912_v34 = vld [vmem:[#allocation13 + $0xac] sm:$0xf]  ;;  %v3580_v36 = vld [vmem:[#allocation13 + $0xb4] sm:$0xf0] }
 0x11e   : > { %v3579_v35 = vor.u32 %v3913_v33, %v3578_v32  ;;  %v3586_v37 = vld [vmem:[#allocation13 + $0xb0] sm:$0xf]  ;;  %v3914_v38 = vld [vmem:[#allocation13 + $0xb8] sm:$0xf0]  ;;  %v3583_v39 = vor.u32 %v3912_v34, %v3580_v36  ;;  %v3909_v43 = vld [vmem:[#allocation13 + $0x94] sm:$0xf] }
 0x11f   : > { %v3587_v40 = vor.u32 %v3914_v38, %v3586_v37  ;;  %v3566_v41 = vld [vmem:[#allocation13 + $0x90] sm:$0xf]  ;;  %v3910_v42 = vld [vmem:[#allocation13 + $0x98] sm:$0xf0]  ;;  %v3568_v45 = vld [vmem:[#allocation13 + $0x9c] sm:$0xf0] }
 0x120   : > { %1338 = vmatpush.bf16.msra.mxu0 %v3579_v35  ;;  %1352 = vmatpush.bf16.msra.mxu1 %v3583_v39  ;;  %v3567_v44 = vor.u32 %v3910_v42, %v3566_v41  ;;  %v3574_v46 = vld [vmem:[#allocation13 + $0x98] sm:$0xf]  ;;  %v3911_v47 = vld [vmem:[#allocation13 + $0xa0] sm:$0xf0]  ;;  %v3571_v48 = vor.u32 %v3909_v43, %v3568_v45  ;;  %v3906_v52 = vld [vmem:[#allocation13 + $0x7c] sm:$0xf] }
 0x121   : > { %1366 = vmatpush.bf16.msra.mxu2 %v3587_v40  ;;  %v3575_v49 = vor.u32 %v3911_v47, %v3574_v46  ;;  %v3554_v50 = vld [vmem:[#allocation13 + $0x78] sm:$0xf]  ;;  %v3907_v51 = vld [vmem:[#allocation13 + $0x80] sm:$0xf0]  ;;  %v3556_v54 = vld [vmem:[#allocation13 + $0x84] sm:$0xf0] }
 0x122   : > { %v3555_v53 = vor.u32 %v3907_v51, %v3554_v50  ;;  %v3562_v55 = vld [vmem:[#allocation13 + $0x80] sm:$0xf]  ;;  %v3908_v56 = vld [vmem:[#allocation13 + $0x88] sm:$0xf0]  ;;  %v3559_v57 = vor.u32 %v3906_v52, %v3556_v54  ;;  %v3903_v61 = vld [vmem:[#allocation13 + $0x64] sm:$0xf] }
 0x123   : > { %v4218_v18 = vpop.eup %4217  ;;  %v3563_v58 = vor.u32 %v3908_v56, %v3562_v55  ;;  %v3542_v59 = vld [vmem:[#allocation13 + $0x60] sm:$0xf]  ;;  %v3904_v60 = vld [vmem:[#allocation13 + $0x68] sm:$0xf0]  ;;  %v3544_v63 = vld [vmem:[#allocation13 + $0x6c] sm:$0xf0] }
 0x124   : > { %v1117_v19 = vmul.f32 128.0, %v4218_v18  ;;  %vm1121_vm0 = vweird.f32 %v4218_v18  ;;  %1339 = vmatpush.bf16.msra.mxu0 %v3567_v44  ;;  %1353 = vmatpush.bf16.msra.mxu1 %v3571_v48  ;;  %v3543_v62 = vor.u32 %v3904_v60, %v3542_v59  ;;  %v3550_v0 = vld [vmem:[#allocation13 + $0x68] sm:$0xf]  ;;  %v3905_v1 = vld [vmem:[#allocation13 + $0x70] sm:$0xf0]  ;;  %v3547_v2 = vor.u32 %v3903_v61, %v3544_v63  ;;  %s4832_s17 = smov 96  }
 0x125   : > { %1114 = vadd.xlane.f32.xlu0 %v5133_v16  ;;  %1367 = vmatpush.bf16.msra.mxu2 %v3575_v49  ;;  %v3551_v3 = vor.u32 %v3905_v1, %v3550_v0  ;;  %v3530_v4 = vld [vmem:[#allocation13 + $0x48] sm:$0xf]  ;;  %v3901_v5 = vld [vmem:[#allocation13 + $0x50] sm:$0xf0]  ;;  %v3900_v6 = vld [vmem:[#allocation13 + $0x4c] sm:$0xf] }
 0x126   : > { %v1118_v20 = vsub.f32 1.0, %v1117_v19  ;;  %v3531_v7 = vor.u32 %v3901_v5, %v3530_v4  ;;  %v3532_v8 = vld [vmem:[#allocation13 + $0x54] sm:$0xf0]  ;;  %v3538_v9 = vld [vmem:[#allocation13 + $0x50] sm:$0xf]  ;;  %vm1388_vm7 = vcmask 261120  }
 0x127   : > { %v3902_v10 = vld [vmem:[#allocation13 + $0x58] sm:$0xf0]  ;;  %v3535_v11 = vor.u32 %v3900_v6, %v3532_v8  ;;  %v3518_v13 = vld [vmem:[#allocation13 + $0x30] sm:$0xf]  ;;  %v3897_v17 = vld [vmem:[#allocation13 + $0x34] sm:$0xf] }
 0x128   : > { %v1119_v21 = vmul.f32 %v4218_v18, %v1118_v20  ;;  %1340 = vmatpush.bf16.msra.mxu0 %v3555_v53  ;;  %1354 = vmatpush.bf16.msra.mxu1 %v3559_v57  ;;  %v3539_v12 = vor.u32 %v3902_v10, %v3538_v9  ;;  %v3898_v14 = vld [vmem:[#allocation13 + $0x38] sm:$0xf0]  ;;  %v3520_v19 = vld [vmem:[#allocation13 + $0x3c] sm:$0xf0]  ;;  %v3526_v20 = vld [vmem:[#allocation13 + $0x38] sm:$0xf] }
 0x129   : > { %1368 = vmatpush.bf16.msra.mxu2 %v3563_v58  ;;  %v3514_v32 = vld [vmem:[#allocation13 + $0x20] sm:$0xf]  ;;  %v3896_v33 = vld [vmem:[#allocation13 + $0x28] sm:$0xf0]  ;;  %v3891_v38 = vld [vmem:[#allocation13 + $0x4] sm:$0xf] }
 0x12a   : > { %v1120_v22 = vadd.f32 %v4218_v18, %v1119_v21  ;;  %v3899_v21 = vld [vmem:[#allocation13 + $0x40] sm:$0xf0]  ;;  %v3515_v35 = vor.u32 %v3896_v33, %v3514_v32  ;;  %v3494_v36 = vld [vmem:[#allocation13] sm:$0xf]  ;;  %v3892_v37 = vld [vmem:[#allocation13 + $0x8] sm:$0xf0] }
 0x12b   : > { %v3495_v40 = vor.u32 %v3892_v37, %v3494_v36  ;;  %v3496_v41 = vld [vmem:[#allocation13 + $0xc] sm:$0xf0]  ;;  %v3502_v42 = vld [vmem:[#allocation13 + $0x8] sm:$0xf]  ;;  %v3893_v43 = vld [vmem:[#allocation13 + $0x10] sm:$0xf0] }
 0x12c   : > { %v5136_v23 = vsel %vm1121_vm0, %v4218_v18, %v1120_v22  ;;  %1341 = vmatpush.bf16.msra.mxu0 %v3543_v62  ;;  %1355 = vmatpush.bf16.msra.mxu1 %v3547_v2  ;;  %v3519_v18 = vor.u32 %v3898_v14, %v3518_v13  ;;  %v3523_v22 = vor.u32 %v3897_v17, %v3520_v19  ;;  %v4207_v0 = vld [vmem:[%s5551_s1] ss:$0 sm:$0xff]  ;;  %vm1455_vm8 = vcmask 1043456   ;;  %s4833_s19 = smov 64   ;;  %s4834_s14 = smov 32  }
 0x12d   : > { %1369 = vmatpush.bf16.msra.mxu2 %v3551_v3  ;;  %v3499_v45 = vor.u32 %v3891_v38, %v3496_v41  ;;  %v3503_v46 = vor.u32 %v3893_v43, %v3502_v42  ;;  %v4208_v5 = vld [vmem:[#allocation12] ss:$0 sm:$0xff]  ;;  %vm1427_vm9 = vcmask 64512   ;;  %vm2214_vm0 = vcmask 130048   ;;  %s5552_s11 = sld [smem:[#allocation49_spill]]  ;;  %p3870_p8 = scmp.ne.s32.totalorder %s4799_s3, 1 }
 0x12e   : > { %s5553_s4 = sld [smem:[#allocation50_spill]] }
 0x12f   : > { %s5554_s26 = sld [smem:[#allocation51_spill]] (!%p3870_p8) }
 0x130   : > { %1342 = vmatpush.bf16.msra.mxu0 %v3531_v7  ;;  %1356 = vmatpush.bf16.msra.mxu1 %v3535_v11  ;;  %s5555_s23 = sld [smem:[#allocation52_spill]] (!%p3870_p8) }
 0x131   : > { %1370 = vmatpush.bf16.msra.mxu2 %v3539_v12 }
 0x134   : > { %1343 = vmatpush.bf16.msra.mxu0 %v3519_v18  ;;  %1357 = vmatpush.bf16.msra.mxu1 %v3523_v22 }
 0x190   : > { %v1113_v24 = vpop.xlane.xlu0 %1112 }
 0x191   : > { %v1123_v25 = vmul.f32 %v5136_v23, %v1113_v24  ;;  %v3527_v24 = vor.u32 %v3899_v21, %v3526_v20 }
 0x193   : > { %v5140_v26 = vsub.f32 %v5130_v15, %v1123_v25  ;;  %1371 = vmatpush.bf16.msra.mxu2 %v3527_v24  ;;  %v3506_v25 = vld [vmem:[#allocation13 + $0x18] sm:$0xf] }
 0x195   : > { %v1127_v27 = vmul.f32 %v5140_v26, %v5140_v26 }
 0x197   : > { %1129 = vadd.xlane.f32.xlu1 %v1127_v27  ;;  %v3895_v27 = vld [vmem:[#allocation13 + $0x20] sm:$0xf0]  ;;  %1372 = vmatpush.bf16.msra.mxu2 %v3515_v35 }
 0x198   : > { %v1115_v28 = vpop.xlane.xlu0 %1114 }
 0x199   : > { %v1124_v29 = vmul.f32 %v5136_v23, %v1115_v28  ;;  %v3894_v28 = vld [vmem:[#allocation13 + $0x1c] sm:$0xf] }
 0x19b   : > { %v5146_v30 = vsub.f32 %v5133_v16, %v1124_v29  ;;  %v3507_v29 = vor.u32 %v3895_v27, %v3506_v25  ;;  %1373 = vmatpush.bf16.msra.mxu2 %v3503_v46 }
 0x19d   : > { %v1128_v31 = vmul.f32 %v5146_v30, %v5146_v30  ;;  %1344 = vmatpush.bf16.msra.mxu0 %v3507_v29 }
 0x19f   : > { %1131 = vadd.xlane.f32.xlu1 %v1128_v31  ;;  %v3508_v31 = vld [vmem:[#allocation13 + $0x24] sm:$0xf0] }
 0x1a0   : > { %v3511_v34 = vor.u32 %v3894_v28, %v3508_v31 }
 0x1a1   : > { %1345 = vmatpush.bf16.msra.mxu0 %v3495_v40 }
 0x1a2   : > { %1358 = vmatpush.bf16.msra.mxu1 %v3511_v34 }
 0x1a6   : > { %1359 = vmatpush.bf16.msra.mxu1 %v3499_v45 }
 0x20a   : > { %v1130_v39 = vpop.xlane.xlu1 %1129 }
 0x20b   : > { %v1133_v44 = vmul.f32 %v1130_v39, %v5136_v23 }
 0x20d   : > { %v1135_v47 = vadd.f32 1e-05, %v1133_v44 }
 0x20f   : > { %4219 = vrsqrt.f32 %v1135_v47  ;;  %vm1143_vm2 = vweird.f32 %v1135_v47 }
 0x212   : > { %v1132_v48 = vpop.xlane.xlu1 %1131 }
 0x213   : > { %v1134_v49 = vmul.f32 %v1132_v48, %v5136_v23 }
 0x215   : > { %v4220_v50 = vpop.eup %4219  ;;  %v1136_v51 = vadd.f32 1e-05, %v1134_v49 }
 0x216   : > { %v1138_v52 = vmul.f32 %v4220_v50, %v1135_v47  ;;  %vm1144_vm1 = vweird.f32 %v4220_v50 }
 0x217   : > { %4221 = vrsqrt.f32 %v1136_v51  ;;  %vm1145_vm3 = vmor %vm1143_vm2, %vm1144_vm1  ;;  %vm1153_vm5 = vweird.f32 %v1136_v51 }
 0x218   : > { %v1139_v53 = vmul.f32 %v4220_v50, %v1138_v52  ;;  %v3996_v52 = vld [vmem:[#allocation9] sm:$0xff]  }
 0x21a   : > { %v1140_v54 = vmul.f32 0.5, %v1139_v53 }
 0x21c   : > { %v1141_v55 = vsub.f32 1.5, %v1140_v54  ;;  %v5192_v54 = vunpack.c.l.bf16 %v3996_v52 }
 0x21d   : > { %v4222_v56 = vpop.eup %4221 }
 0x21e   : > { %v1142_v57 = vmul.f32 %v4220_v50, %v1141_v55  ;;  %v1148_v58 = vmul.f32 %v4222_v56, %v1136_v51  ;;  %vm1154_vm4 = vweird.f32 %v4222_v56 }
 0x21f   : > { %vm1155_vm6 = vmor %vm1153_vm5, %vm1154_vm4 }
 0x220   : > { %v1149_v59 = vmul.f32 %v4222_v56, %v1148_v58  ;;  %v1146_v60 = vsel %vm1145_vm3, %v4220_v50, %v1142_v57 }
 0x221   : > { %v1157_v63 = vmul.f32 %v1146_v60, %v5140_v26  ;;  %v1202_v26 = vld [vmem:[%s5491_s7] sm:$0x7] }
 0x222   : > { %v1150_v61 = vmul.f32 0.5, %v1149_v59  ;;  %v1205_v10 = vperm.slane %v1202_v26, 1  ;;  %v1204_v11 = vperm.slane %v1202_v26, 0  ;;  %v1206_v18 = vperm.slane %v1202_v26, 2 }
 0x223   : > { %v1162_v4 = vmul.f32 %v4207_v0, %v1157_v63 }
 0x224   : > { %v1151_v62 = vsub.f32 1.5, %v1150_v61 }
 0x225   : > { %v1167_v7 = vadd.f32 %v4208_v5, %v1162_v4 }
 0x226   : > { %v1152_v1 = vmul.f32 %v4222_v56, %v1151_v62 }
 0x228   : > { %v1156_v2 = vsel %vm1155_vm6, %v4222_v56, %v1152_v1 }
 0x229   : > { %v1158_v3 = vmul.f32 %v1156_v2, %v5146_v30 }
 0x22b   : > { %v1163_v6 = vmul.f32 %v4207_v0, %v1158_v3 }
 0x22d   : > { %v1168_v8 = vadd.f32 %v4208_v5, %v1163_v6 }
 0x22f   : > { %v1169_v9 = vpack.c.bf16 %v1168_v8, %v1167_v7  ;;  %v5201_v8 = vunpack.c.h.bf16 %v3996_v52 }
 0x231   : > { %1346 = vmatmul.bf16.vlgmr.msra.gmra.mxu0 %v1169_v9  ;;  %1360 = vmatmul.bf16.vlgmr.msra.gmra.mxu1 %v1169_v9 }
 0x232   : > { %1374 = vmatmul.bf16.vlgmr.msra.gmra.mxu2 %v1169_v9 }
 0x2ae   : > { %v1347_v12 = vpop.f32.mrf.mxu0  ;;  %v1361_v13 = vpop.f32.mrf.mxu1 }
 0x2af   : > { %v1362_v14 = vadd.f32 %v1361_v13, %v1205_v10  ;;  %v1348_v17 = vadd.f32 %v1347_v12, %v1204_v11 }
 0x2b1   : > { %v1384_v30 = vpack.c.bf16 %v1362_v14, %v1362_v14  ;;  %v1382_v24 = vpack.c.bf16 %v1348_v17, %v1348_v17 }
 0x2b3   : > { %v1503_v19 = vunpack.c.l.b16 %v1384_v30  ;;  %v1393_v20 = vsel %vm1388_vm7, %v1384_v30, 0  ;;  %v1498_v35 = vunpack.c.l.b16 %v1382_v24 }
 0x2b4   : > { %1402 = vmatpush.bf16.xpose.msra.mxu3 %v1393_v20 }
 0x2b5   : > { %v5161_v21 = vpack.c.b16 %v1503_v19, %v1503_v19  ;;  %v1375_v22 = vpop.f32.mrf.mxu2  ;;  %v5175_v43 = vpack.c.b16 %v1498_v35, %v1498_v35 }
 0x2b6   : > { %v1376_v25 = vadd.f32 %v1375_v22, %v1206_v18  ;;  %v1349_v27 = vpop.f32.mrf.mxu0  ;;  %v1363_v28 = vpop.f32.mrf.mxu1 }
 0x2b7   : > { %v1350_v29 = vadd.f32 %v1349_v27, %v1204_v11  ;;  %v1364_v31 = vadd.f32 %v1363_v28, %v1205_v10  ;;  %1505 = vrot.lane.b32.xlu2 %v5161_v21, %s4832_s17 }
 0x2b8   : > { %v5165_v32 = vpack.c.bf16 %v1376_v25, %v1376_v25 }
 0x2b9   : > { %v1383_v33 = vpack.c.bf16 %v1350_v29, %v1350_v29  ;;  %v1385_v34 = vpack.c.bf16 %v1364_v31, %v1364_v31 }
 0x2ba   : > { %v1457_v39 = vsel %vm1455_vm8, %v5165_v32, 0  ;;  %v1580_v30 = vunpack.c.l.b16 %v5165_v32 }
 0x2bb   : > { %v1527_v36 = vunpack.c.l.b16 %v1383_v33  ;;  %v1532_v37 = vunpack.c.l.b16 %v1385_v34  ;;  %3588 = vmatmul.msk.bf16.vlgmr.msra.gmra.mxu3 %vm1388_vm7, %v1382_v24  ;;  %v1412_v38 = vsel %vm1388_vm7, %v1385_v34, 0 }
 0x2bc   : > { %1421 = vmatpush.bf16.xpose.msrb.mxu3 %v1412_v38  ;;  %v5211_v17 = vpack.c.b16 %v1580_v30, %v1580_v30 }
 0x2bd   : > { %v5171_v40 = vpack.c.b16 %v1527_v36, %v1527_v36  ;;  %v5173_v41 = vpack.c.b16 %v1532_v37, %v1532_v37  ;;  %v1377_v42 = vpop.f32.mrf.mxu2 }
 0x2be   : > { %v1378_v44 = vadd.f32 %v1377_v42, %v1206_v18 }
 0x2bf   : > { %1534 = vrot.lane.b32.xlu0 %v5173_v41, %s4832_s17  ;;  %1529 = vrot.lane.b32.xlu1 %v5171_v40, %s4832_s17 }
 0x2c0   : > { %v5181_v45 = vpack.c.bf16 %v1378_v44, %v1378_v44  ;;  %1500 = vrot.lane.b32.xlu2 %v5175_v43, %s4832_s17 }
 0x2c2   : > { %v1476_v46 = vsel %vm1455_vm8, %v5181_v45, 0  ;;  %v1604_v34 = vunpack.c.l.b16 %v5181_v45 }
 0x2c3   : > { %1485 = vmatpush.bf16.msrb.mxu0 %v1476_v46 }
 0x2c4   : > { %1466 = vmatpush.bf16.msra.mxu3 %v1457_v39  ;;  %v5220_v35 = vpack.c.b16 %v1604_v34, %v1604_v34 }
 0x2cb   : > { %3589 = vmatmul.msk.bf16.vlgmr.msrb.gmra.mxu3 %vm1388_vm7, %v1383_v33 }
 0x311   : > { %v1506_v47 = vpop.permute.xlu2 %1505 }
 0x312   : > { %v1511_v48 = vsel %vm1388_vm7, %v1506_v47, 0 }
 0x313   : > { %1520 = vmatpush.bf16.xpose.msrb.mxu1 %v1511_v48 }
 0x31a   : > { %v1501_v49 = vpop.permute.xlu2 %1500 }
 0x31b   : > { %3592 = vmatmul.msk.bf16.vlgmr.msrb.gmra.mxu1 %vm1388_vm7, %v1501_v49 }
 0x331   : > { %v1535_v50 = vpop.permute.xlu0 %1534  ;;  %v1530_v53 = vpop.permute.xlu1 %1529 }
 0x332   : > { %v1540_v51 = vsel %vm1388_vm7, %v1535_v50, 0 }
 0x333   : > { %1549 = vmatpush.bf16.xpose.msrb.mxu2 %v1540_v51 }
 0x33a   : > { %3593 = vmatmul.msk.bf16.vlgmr.msrb.gmra.mxu2 %vm1388_vm7, %v1530_v53 }
 0x33e   : > { %v1404_v55 = vpop.f32.mrf.mxu3 }
 0x33f   : > { %v1405_v56 = vadd.f32 %v5192_v54, %v1404_v55 }
 0x341   : > { %v1428_v57 = vsel %vm1427_vm9, %v1405_v56, -inf }
 0x342   : > { %1429 = vmax.xlane.f32.xlu2 %v1428_v57 }
 0x346   : > { %v1406_v58 = vpop.f32.mrf.mxu3 }
 0x34e   : > { %v1423_v59 = vpop.f32.mrf.mxu3 }
 0x34f   : > { %v1424_v29 = vadd.f32 %v5201_v8, %v1423_v59 }
 0x351   : > { %v1431_v31 = vsel %vm1427_vm9, %v1424_v29, -inf }
 0x356   : > { %v1425_v60 = vpop.f32.mrf.mxu3 }
 0x398   : > { %v1522_v61 = vpop.f32.mrf.mxu1 }
 0x399   : > { %v1523_v62 = vadd.f32 %v5192_v54, %v1522_v61 }
 0x39b   : > { %v1555_v63 = vsel %vm1427_vm9, %v1523_v62, -inf }
 0x39c   : > { %1556 = vmax.xlane.f32.xlu0 %v1555_v63 }
 0x3a0   : > { %v1524_v0 = vpop.f32.mrf.mxu1 }
 0x3a1   : > { %v3918_v0 = vld [vmem:[#allocation15 + $0x18] sm:$0xff] }
 0x3a2   : > { %1659 = vmatpush.bf16.msra.mxu1 %v3918_v0 }
 0x3b0   : > { %1703 = vrot.lane.b32.xlu0 %v5161_v21, %s4833_s19 }
 0x3b5   : > { %v1430_v1 = vpop.xlane.xlu2 %1429 }
 0x3b6   : > { %v1434_v2 = vsub.f32 %v1405_v56, %v1430_v1  ;;  %v3917_v1 = vld [vmem:[#allocation15 + $0x10] sm:$0xff] }
 0x3b7   : > { %1660 = vmatpush.bf16.msra.mxu1 %v3917_v1 }
 0x3b8   : > { %v1436_v3 = vmul.f32 1.442695, %v1434_v2 }
 0x3ba   : > { %4223 = vpow2.f32 %v1436_v3 }
 0x3bd   : > { %v1551_v4 = vpop.f32.mrf.mxu2 }
 0x3be   : > { %v1552_v9 = vadd.f32 %v5201_v8, %v1551_v4 }
 0x3c0   : > { %v4224_v5 = vpop.eup %4223  ;;  %v1558_v26 = vsel %vm1427_vm9, %v1552_v9, -inf }
 0x3c1   : > { %v1440_v6 = vsel %vm1427_vm9, %v4224_v5, 0.0 }
 0x3c2   : > { %1441 = vadd.xlane.f32.xlu1 %v1440_v6 }
 0x3c5   : > { %v1553_v7 = vpop.f32.mrf.mxu2 }
 0x3da   : > { %1559 = vmax.xlane.f32.xlu0 %v1558_v26 }
 0x3db   : > { %1701 = vrot.lane.b32.xlu1 %v5175_v43, %s4833_s19 }
 0x3ee   : > { %1726 = vrot.lane.b32.xlu0 %v5173_v41, %s4833_s19 }
 0x40f   : > { %v1557_v10 = vpop.xlane.xlu0 %1556 }
 0x410   : > { %v1561_v11 = vsub.f32 %v1523_v62, %v1557_v10 }
 0x412   : > { %v1563_v12 = vmul.f32 1.442695, %v1561_v11 }
 0x414   : > { %4225 = vpow2.f32 %v1563_v12 }
 0x41a   : > { %v4226_v13 = vpop.eup %4225 }
 0x41b   : > { %v1567_v14 = vsel %vm1427_vm9, %v4226_v13, 0.0 }
 0x41c   : > { %1568 = vadd.xlane.f32.xlu2 %v1567_v14 }
 0x422   : > { %v1704_v24 = vpop.permute.xlu0 %1703 }
 0x423   : > { %v1709_v44 = vsel %vm1388_vm7, %v1704_v24, 0  ;;  %v3915_v24 = vld [vmem:[#allocation15] sm:$0xff] }
 0x434   : > { %1582 = vrot.lane.b32.xlu2 %v5211_v17, %s4832_s17 }
 0x435   : > { %v1442_v18 = vpop.xlane.xlu1 %1441 }
 0x436   : > { %4227 = vrcp.f32 %v1442_v18 }
 0x43c   : > { %v4228_v19 = vpop.eup %4227 }
 0x43d   : > { %v1448_v20 = vmul.f32 %v4228_v19, %v4224_v5 }
 0x43f   : > { %v1450_v22 = vpack.c.bf16 %v1448_v20, %v1448_v20 }
 0x441   : > { %3590 = vmatmul.msk.bf16.vlgmr.msra.gmra.mxu3 %vm1427_vm9, %v1450_v22  ;;  %v3916_v22 = vld [vmem:[#allocation15 + $0x8] sm:$0xff] }
 0x442   : > { %1693 = vmatpush.bf16.msra.mxu2 %v3916_v22 }
 0x446   : > { %1694 = vmatpush.bf16.msra.mxu2 %v3915_v24 }
 0x44d   : > { %v1560_v25 = vpop.xlane.xlu0 %1559  ;;  %v1702_v45 = vpop.permute.xlu1 %1701 }
 0x44e   : > { %v1562_v27 = vsub.f32 %v1552_v9, %v1560_v25 }
 0x450   : > { %v1565_v28 = vmul.f32 1.442695, %v1562_v27 }
 0x452   : > { %4229 = vpow2.f32 %v1565_v28 }
 0x458   : > { %v4230_v32 = vpop.eup %4229 }
 0x459   : > { %v1570_v33 = vsel %vm1427_vm9, %v4230_v32, 0.0 }
 0x45d   : > { %1432 = vmax.xlane.f32.xlu2 %v1431_v31 }
 0x460   : > { %v1727_v2 = vpop.permute.xlu0 %1726 }
 0x461   : > { %v1732_v4 = vsel %vm1388_vm7, %v1727_v2, 0 }
 0x465   : > { %1571 = vadd.xlane.f32.xlu2 %v1570_v33 }
 0x47d   : > { %1606 = vrot.lane.b32.xlu2 %v5220_v35, %s4832_s17 }
 0x48f   : > { %v1569_v36 = vpop.xlane.xlu2 %1568 }
 0x490   : > { %4231 = vrcp.f32 %v1569_v36 }
 0x496   : > { %v4232_v37 = vpop.eup %4231 }
 0x497   : > { %v1575_v38 = vmul.f32 %v4232_v37, %v4226_v13  ;;  %v1583_v39 = vpop.permute.xlu2 %1582 }
 0x498   : > { %v1588_v42 = vsel %vm1455_vm8, %v1583_v39, 0 }
 0x499   : > { %v1577_v46 = vpack.c.bf16 %v1575_v38, %v1575_v38  ;;  %1597 = vmatpush.bf16.msrb.mxu3 %v1588_v42 }
 0x49c   : > { %3594 = vmatmul.msk.bf16.vlgmr.msrb.gmra.mxu3 %vm1427_vm9, %v1577_v46 }
 0x49d   : > { %1718 = vmatpush.bf16.xpose.msra.mxu3 %v1709_v44 }
 0x4ac   : > { %3614 = vmatmul.msk.bf16.vlgmr.msra.gmra.mxu3 %vm1388_vm7, %v1702_v45 }
 0x4c4   : > { %v5228_v47 = vpop.f32.mrf.mxu3 }
 0x4c5   : > { %v1491_v25 = vpack.c.bf16 %v5228_v47, %v5228_v47 }
 0x4cc   : > { %v1470_v48 = vpop.f32.mrf.mxu3 }
 0x4d0   : > { %v1433_v49 = vpop.xlane.xlu2 %1432 }
 0x4d1   : > { %v1435_v50 = vsub.f32 %v1424_v29, %v1433_v49  ;;  %v1669_v29 = vunpack.c.l.b16 %v1491_v25 }
 0x4d3   : > { %v1438_v51 = vmul.f32 1.442695, %v1435_v50 }
 0x4d5   : > { %4233 = vpow2.f32 %v1438_v51 }
 0x4d8   : > { %v1572_v52 = vpop.xlane.xlu2 %1571 }
 0x4db   : > { %v4234_v53 = vpop.eup %4233 }
 0x4dc   : > { %v1443_v55 = vsel %vm1427_vm9, %v4234_v53, 0.0 }
 0x4dd   : > { %1444 = vadd.xlane.f32.xlu1 %v1443_v55 }
 0x4e0   : > { %v1607_v56 = vpop.permute.xlu2 %1606 }
 0x4e1   : > { %v1612_v57 = vsel %vm1455_vm8, %v1607_v56, 0 }
 0x4e2   : > { %1621 = vmatpush.bf16.msra.mxu0 %v1612_v57 }
 0x4f6   : > { %1724 = vrot.lane.b32.xlu1 %v5171_v40, %s4833_s19 }
 0x4fe   : > { %1771 = vrot.lane.b32.xlu1 %v5211_v17, %s4833_s19 }
 0x506   : > { %1857 = vrot.lane.b32.xlu1 %v5161_v21, %s4834_s14 }
 0x50e   : > { %1880 = vrot.lane.b32.xlu1 %v5173_v41, %s4834_s14 }
 0x516   : > { %1855 = vrot.lane.b32.xlu1 %v5175_v43, %s4834_s14 }
 0x51f   : > { %v1599_v58 = vpop.f32.mrf.mxu3 }
 0x520   : > { %v1627_v34 = vpack.c.bf16 %v1599_v58, %v1599_v58 }
 0x522   : > { %v1635_v38 = vunpack.c.l.b16 %v1627_v34 }
 0x527   : > { %v1601_v59 = vpop.f32.mrf.mxu3 }
 0x52f   : > { %v1720_v60 = vpop.f32.mrf.mxu3 }
 0x530   : > { %v1721_v61 = vadd.f32 %v5192_v54, %v1720_v60 }
 0x532   : > { %v1747_v62 = vsel %vm1427_vm9, %v1721_v61, -inf }
 0x533   : > { %1748 = vmax.xlane.f32.xlu0 %v1747_v62 }
 0x537   : > { %v1722_v63 = vpop.f32.mrf.mxu3 }
 0x547   : > { %1878 = vrot.lane.b32.xlu0 %v5171_v40, %s4834_s14 }
 0x550   : > { %v1445_v21 = vpop.xlane.xlu1 %1444 }
 0x551   : > { %4235 = vrcp.f32 %v1445_v21 }
 0x552   : > { %4237 = vrcp.f32 %v1572_v52 }
 0x557   : > { %v4236_v41 = vpop.eup %4235 }
 0x558   : > { %v1449_v43 = vmul.f32 %v4236_v41, %v4234_v53  ;;  %v4238_v5 = vpop.eup %4237 }
 0x559   : > { %v1576_v6 = vmul.f32 %v4238_v5, %v4230_v32 }
 0x55a   : > { %v1451_v3 = vpack.c.bf16 %v1449_v43, %v1449_v43 }
 0x55b   : > { %v1578_v40 = vpack.c.bf16 %v1576_v6, %v1576_v6 }
 0x55c   : > { %3591 = vmatmul.msk.bf16.vlgmr.msrb.gmra.mxu0 %vm1427_vm9, %v1451_v3 }
 0x55d   : > { %1741 = vmatpush.bf16.xpose.msrb.mxu0 %v1732_v4 }
 0x568   : > { %v1725_v7 = vpop.permute.xlu1 %1724 }
 0x56c   : > { %3595 = vmatmul.msk.bf16.vlgmr.msra.gmra.mxu0 %vm1427_vm9, %v1578_v40 }
 0x570   : > { %v1772_v9 = vpop.permute.xlu1 %1771 }
 0x571   : > { %v1777_v26 = vsel %vm1455_vm8, %v1772_v9, 0 }
 0x572   : > { %1786 = vmatpush.bf16.msrb.mxu1 %v1777_v26 }
 0x578   : > { %v1858_v10 = vpop.permute.xlu1 %1857 }
 0x579   : > { %v1863_v11 = vsel %vm1388_vm7, %v1858_v10, 0 }
 0x57a   : > { %1872 = vmatpush.bf16.xpose.msra.mxu0 %v1863_v11 }
 0x57c   : > { %3615 = vmatmul.msk.bf16.vlgmr.msrb.gmra.mxu0 %vm1388_vm7, %v1725_v7 }
 0x580   : > { %v1881_v12 = vpop.permute.xlu1 %1880 }
 0x581   : > { %v1886_v44 = vsel %vm1388_vm7, %v1881_v12, 0 }
 0x588   : > { %v1856_v13 = vpop.permute.xlu1 %1855 }
 0x58c   : > { %3627 = vmatmul.msk.bf16.vlgmr.msra.gmra.mxu0 %vm1388_vm7, %v1856_v13 }
 0x5a6   : > { %v1749_v14 = vpop.xlane.xlu0 %1748 }
 0x5a7   : > { %v1753_v30 = vsub.f32 %v1721_v61, %v1749_v14 }
 0x5a9   : > { %v1755_v18 = vmul.f32 1.442695, %v1753_v30 }
 0x5ab   : > { %4239 = vpow2.f32 %v1755_v18 }
 0x5b1   : > { %v4240_v19 = vpop.eup %4239 }
 0x5b2   : > { %v1759_v20 = vsel %vm1427_vm9, %v4240_v19, 0.0 }
 0x5b3   : > { %1760 = vadd.xlane.f32.xlu2 %v1759_v20 }
 0x5b9   : > { %v1879_v59 = vpop.permute.xlu0 %1878 }
 0x5d9   : > { %v1487_v27 = vpop.f32.mrf.mxu0 }
 0x5da   : > { %v1492_v28 = vpack.c.bf16 %v1487_v27, %v1487_v27 }
 0x5dc   : > { %v1670_v31 = vunpack.c.l.b16 %v1492_v28 }
 0x5de   : > { %v1671_v32 = vpack.c.b16 %v1670_v31, %v1669_v29 }
 0x5e0   : > { %3613 = vmatmul.msk.bf16.vlgmr.msra.gmra.mxu2 %vm1388_vm7, %v1671_v32  ;;  %v3920_v32 = vld [vmem:[#allocation15 + $0x28] sm:$0xff] }
 0x5e1   : > { %v1489_v33 = vpop.f32.mrf.mxu0  ;;  %1845 = vmatpush.bf16.msrb.mxu3 %v3920_v32 }
 0x5e2   : > { %v3919_v33 = vld [vmem:[#allocation15 + $0x20] sm:$0xff] }
 0x5e5   : > { %1846 = vmatpush.bf16.msrb.mxu3 %v3919_v33 }
 0x5e9   : > { %v1623_v36 = vpop.f32.mrf.mxu0 }
 0x5ea   : > { %v1628_v37 = vpack.c.bf16 %v1623_v36, %v1623_v36 }
 0x5ec   : > { %v1636_v39 = vunpack.c.l.b16 %v1628_v37 }
 0x5ee   : > { %v1637_v42 = vpack.c.b16 %v1636_v39, %v1635_v38 }
 0x5f0   : > { %3604 = vmatmul.msk.bf16.vlgmr.msra.gmra.mxu1 %vm1388_vm7, %v1637_v42 }
 0x5f1   : > { %1895 = vmatpush.bf16.xpose.msra.mxu1 %v1886_v44  ;;  %v1625_v46 = vpop.f32.mrf.mxu0 }
 0x5f9   : > { %v1743_v45 = vpop.f32.mrf.mxu0 }
 0x5fa   : > { %v1744_v47 = vadd.f32 %v5201_v8, %v1743_v45 }
 0x5fc   : > { %v1750_v48 = vsel %vm1427_vm9, %v1744_v47, -inf }
 0x5fd   : > { %1751 = vmax.xlane.f32.xlu2 %v1750_v48 }
 0x601   : > { %v1745_v49 = vpop.f32.mrf.mxu0 }
 0x609   : > { %v1874_v50 = vpop.f32.mrf.mxu0 }
 0x60a   : > { %v1875_v51 = vadd.f32 %v5192_v54, %v1874_v50 }
 0x60c   : > { %v1901_v52 = vsel %vm1427_vm9, %v1875_v51, -inf }
 0x60d   : > { %1902 = vmax.xlane.f32.xlu0 %v1901_v52 }
 0x611   : > { %v1876_v53 = vpop.f32.mrf.mxu0 }
 0x615   : > { %1792 = vrot.lane.b32.xlu2 %v5220_v35, %s4833_s19 }
 0x621   : > { %1925 = vrot.lane.b32.xlu0 %v5211_v17, %s4834_s14 }
 0x626   : > { %v1761_v55 = vpop.xlane.xlu2 %1760 }
 0x627   : > { %4241 = vrcp.f32 %v1761_v55 }
 0x62d   : > { %v4242_v56 = vpop.eup %4241 }
 0x62e   : > { %v1767_v57 = vmul.f32 %v4242_v56, %v4240_v19  ;;  %v3922_v56 = vld [vmem:[#allocation15 + $0x38] sm:$0xff] }
 0x62f   : > { %1999 = vmatpush.bf16.msrb.mxu0 %v3922_v56  ;;  %v4211_v56 = vld [vmem:[#allocation12 + $0x1] ss:$0 sm:$0xff] }
 0x630   : > { %v1769_v58 = vpack.c.bf16 %v1767_v57, %v1767_v57  ;;  %v3921_v57 = vld [vmem:[#allocation15 + $0x30] sm:$0xff] }
 0x632   : > { %3616 = vmatmul.msk.bf16.vlgmr.msrb.gmra.mxu1 %vm1427_vm9, %v1769_v58 }
 0x633   : > { %2000 = vmatpush.bf16.msrb.mxu0 %v3921_v57 }
 0x642   : > { %3628 = vmatmul.msk.bf16.vlgmr.msra.gmra.mxu1 %vm1388_vm7, %v1879_v59 }
 0x663   : > { %v1696_v54 = vpop.f32.mrf.mxu2 }
 0x66b   : > { %v1698_v34 = vpop.f32.mrf.mxu2 }
 0x66d   : > { %v1662_v60 = vpop.f32.mrf.mxu1 }
 0x66e   : > { %v5269_v61 = vadd.f32 %v1696_v54, %v1662_v60 }
 0x670   : > { %v1752_v62 = vpop.xlane.xlu2 %1751 }
 0x671   : > { %v1754_v63 = vsub.f32 %v1744_v47, %v1752_v62 }
 0x673   : > { %v1757_v0 = vmul.f32 1.442695, %v1754_v63 }
 0x675   : > { %4243 = vpow2.f32 %v1757_v0  ;;  %v5275_v40 = vpop.f32.mrf.mxu1 }
 0x678   : > { %v1793_v21 = vpop.permute.xlu2 %1792 }
 0x679   : > { %v1798_v17 = vsel %vm1455_vm8, %v1793_v21, 0 }
 0x67a   : > { %1807 = vmatpush.bf16.msrb.mxu2 %v1798_v17 }
 0x67b   : > { %v4244_v1 = vpop.eup %4243 }
 0x67c   : > { %v1762_v41 = vsel %vm1427_vm9, %v4244_v1, 0.0 }
 0x67d   : > { %1763 = vadd.xlane.f32.xlu1 %v1762_v41  ;;  %v4209_v41 = vld [vmem:[#allocation16] ss:$0 sm:$0xff] }
 0x680   : > { %v1903_v43 = vpop.xlane.xlu0 %1902 }
 0x681   : > { %v1907_v2 = vsub.f32 %v1875_v51, %v1903_v43 }
 0x683   : > { %v1909_v3 = vmul.f32 1.442695, %v1907_v2 }
 0x685   : > { %4245 = vpow2.f32 %v1909_v3 }
 0x68b   : > { %v4246_v4 = vpop.eup %4245 }
 0x68c   : > { %v1913_v5 = vsel %vm1427_vm9, %v4246_v4, 0.0 }
 0x68d   : > { %1914 = vadd.xlane.f32.xlu1 %v1913_v5 }
 0x693   : > { %v1926_v6 = vpop.permute.xlu0 %1925 }
 0x694   : > { %v1931_v7 = vsel %vm1455_vm8, %v1926_v6, 0 }
 0x695   : > { %1940 = vmatpush.bf16.msra.mxu2 %v1931_v7 }
 0x6af   : > { %v1788_v9 = vpop.f32.mrf.mxu1 }
 0x6b0   : > { %v1813_v36 = vpack.c.bf16 %v1788_v9, %v1788_v9 }
 0x6b2   : > { %v1821_v39 = vunpack.c.l.b16 %v1813_v36 }
 0x6b7   : > { %v1790_v26 = vpop.f32.mrf.mxu1 }
 0x6bf   : > { %v1897_v10 = vpop.f32.mrf.mxu1 }
 0x6c0   : > { %v1898_v11 = vadd.f32 %v5201_v8, %v1897_v10 }
 0x6c2   : > { %v1904_v12 = vsel %vm1427_vm9, %v1898_v11, -inf }
 0x6c3   : > { %1905 = vmax.xlane.f32.xlu2 %v1904_v12 }
 0x6c7   : > { %v1899_v13 = vpop.f32.mrf.mxu1 }
 0x6f0   : > { %v1764_v14 = vpop.xlane.xlu1 %1763 }
 0x6f1   : > { %4247 = vrcp.f32 %v1764_v14  ;;  %v3930_v14 = vld [vmem:[#allocation18 + $0x38] sm:$0xff] }
 0x6f2   : > { %2140 = vmatpush.bf16.msrb.mxu1 %v3930_v14 }
 0x6f7   : > { %v4248_v30 = vpop.eup %4247 }
 0x6f8   : > { %v1768_v18 = vmul.f32 %v4248_v30, %v4244_v1  ;;  %v3928_v30 = vld [vmem:[#allocation18 + $0x28] sm:$0xff] }
 0x6fa   : > { %v1770_v19 = vpack.c.bf16 %v1768_v18, %v1768_v18  ;;  %v3927_v18 = vld [vmem:[#allocation18 + $0x20] sm:$0xff] }
 0x6fc   : > { %3617 = vmatmul.msk.bf16.vlgmr.msrb.gmra.mxu2 %vm1427_vm9, %v1770_v19  ;;  %v3926_v19 = vld [vmem:[#allocation18 + $0x18] sm:$0xff] }
 0x700   : > { %v1915_v20 = vpop.xlane.xlu1 %1914 }
 0x701   : > { %4249 = vrcp.f32 %v1915_v20  ;;  %v3925_v20 = vld [vmem:[#allocation18 + $0x10] sm:$0xff] }
 0x707   : > { %v4250_v22 = vpop.eup %4249 }
 0x708   : > { %v1921_v24 = vmul.f32 %v4250_v22, %v4246_v4  ;;  %v3924_v22 = vld [vmem:[#allocation18 + $0x8] sm:$0xff] }
 0x70a   : > { %v1923_v25 = vpack.c.bf16 %v1921_v24, %v1921_v24 }
 0x70c   : > { %3629 = vmatmul.msk.bf16.vlgmr.msra.gmra.mxu2 %vm1427_vm9, %v1923_v25 }
 0x736   : > { %v1906_v27 = vpop.xlane.xlu2 %1905 }
 0x737   : > { %v1908_v8 = vsub.f32 %v1898_v11, %v1906_v27  ;;  %v3923_v27 = vld [vmem:[#allocation18] sm:$0xff] }
 0x739   : > { %v1911_v28 = vmul.f32 1.442695, %v1908_v8 }
 0x73b   : > { %4251 = vpow2.f32 %v1911_v28  ;;  %v5303_v28 = vld [vmem:[#allocation2] sm:$0xff] }
 0x73c   : > { %v2175_v32 = vsel %vm1388_vm7, %v5303_v28, 0 }
 0x73d   : > { %2184 = vmatpush.bf16.xpose.msrb.mxu2 %v2175_v32 }
 0x741   : > { %v4252_v29 = vpop.eup %4251 }
 0x742   : > { %v1916_v31 = vsel %vm1427_vm9, %v4252_v29, 0.0 }
 0x743   : > { %1917 = vadd.xlane.f32.xlu1 %v1916_v31 }
 0x75c   : > { %1946 = vrot.lane.b32.xlu1 %v5220_v35, %s4834_s14 }
 0x77f   : > { %v1809_v37 = vpop.f32.mrf.mxu2 }
 0x780   : > { %v1814_v38 = vpack.c.bf16 %v1809_v37, %v1809_v37 }
 0x782   : > { %v1822_v42 = vunpack.c.l.b16 %v1814_v38 }
 0x784   : > { %v1823_v44 = vpack.c.b16 %v1822_v42, %v1821_v39 }
 0x786   : > { %3626 = vmatmul.msk.bf16.vlgmr.msrb.gmra.mxu3 %vm1388_vm7, %v1823_v44 }
 0x787   : > { %v1811_v46 = vpop.f32.mrf.mxu2 }
 0x78f   : > { %v1942_v45 = vpop.f32.mrf.mxu2 }
 0x790   : > { %v1967_v59 = vpack.c.bf16 %v1942_v45, %v1942_v45 }
 0x792   : > { %v1975_v62 = vunpack.c.l.b16 %v1967_v59 }
 0x797   : > { %v1944_v47 = vpop.f32.mrf.mxu2 }
 0x7b6   : > { %v1918_v48 = vpop.xlane.xlu1 %1917 }
 0x7b7   : > { %4253 = vrcp.f32 %v1918_v48 }
 0x7bd   : > { %v4254_v49 = vpop.eup %4253 }
 0x7be   : > { %v1922_v35 = vmul.f32 %v4254_v49, %v4252_v29 }
 0x7c0   : > { %v1924_v52 = vpack.c.bf16 %v1922_v35, %v1922_v35 }
 0x7ce   : > { %v1947_v50 = vpop.permute.xlu1 %1946 }
 0x7cf   : > { %v1952_v51 = vsel %vm1455_vm8, %v1947_v50, 0  ;;  %v4210_v50 = vld [vmem:[%s5551_s1 + $0x1] ss:$0 sm:$0xff] }
 0x7d0   : > { %1961 = vmatpush.bf16.msra.mxu3 %v1952_v51 }
 0x7d3   : > { %3630 = vmatmul.msk.bf16.vlgmr.msra.gmra.mxu3 %vm1427_vm9, %v1924_v52 }
 0x809   : > { %v1848_v53 = vpop.f32.mrf.mxu3 }
 0x80a   : > { %v1853_v55 = vadd.f32 %v1848_v53, %v5269_v61  ;;  %v1699_v61 = vadd.f32 %v1698_v34, %v5275_v40 }
 0x811   : > { %v1850_v58 = vpop.f32.mrf.mxu3 }
 0x812   : > { %v1854_v3 = vadd.f32 %v1850_v58, %v1699_v61 }
 0x856   : > { %v1963_v54 = vpop.f32.mrf.mxu3 }
 0x857   : > { %v1968_v60 = vpack.c.bf16 %v1963_v54, %v1963_v54 }
 0x859   : > { %v1976_v63 = vunpack.c.l.b16 %v1968_v60  ;;  %v5313_v60 = vld [vmem:[#allocation2 + $0x8] sm:$0xff] }
 0x85b   : > { %v1977_v0 = vpack.c.b16 %v1976_v63, %v1975_v62  ;;  %v2199_v62 = vsel %vm1388_vm7, %v5313_v60, 0 }
 0x85c   : > { %2208 = vmatpush.bf16.xpose.msrb.mxu3 %v2199_v62 }
 0x85d   : > { %3639 = vmatmul.msk.bf16.vlgmr.msrb.gmra.mxu0 %vm1388_vm7, %v1977_v0 }
 0x85e   : > { %v1965_v21 = vpop.f32.mrf.mxu3 }
 0x85f   : > { %v4212_v21 = vld [vmem:[#allocation19] ss:$0 sm:$0xff] }
 0x8da   : > { %v2002_v17 = vpop.f32.mrf.mxu0 }
 0x8db   : > { %v2007_v1 = vadd.f32 %v2002_v17, %v1853_v55 }
 0x8dd   : > { %v2009_v43 = vadd.f32 %v2007_v1, %v5130_v15 }
 0x8df   : > { %v5291_v2 = vadd.f32 %v4209_v41, %v2009_v43 }
 0x8e1   : > { %2021 = vadd.xlane.f32.xlu2 %v5291_v2 }
 0x8e2   : > { %v2004_v4 = vpop.f32.mrf.mxu0 }
 0x8e3   : > { %v2008_v5 = vadd.f32 %v2004_v4, %v1854_v3 }
 0x8e5   : > { %v2010_v6 = vadd.f32 %v2008_v5, %v5133_v16  ;;  %v3929_v16 = vld [vmem:[#allocation18 + $0x30] sm:$0xff] }
 0x8e6   : > { %2141 = vmatpush.bf16.msrb.mxu1 %v3929_v16 }
 0x8e7   : > { %v5295_v7 = vadd.f32 %v4209_v41, %v2010_v6 }
 0x8e9   : > { %2023 = vadd.xlane.f32.xlu0 %v5295_v7 }
 0x8ea   : > { %2142 = vmatpush.bf16.msrb.mxu1 %v3928_v30 }
 0x8ee   : > { %2143 = vmatpush.bf16.msrb.mxu1 %v3927_v18 }
 0x8f2   : > { %2144 = vmatpush.bf16.msrb.mxu1 %v3926_v19 }
 0x8f6   : > { %2145 = vmatpush.bf16.msrb.mxu1 %v3925_v20 }
 0x8fa   : > { %2146 = vmatpush.bf16.msrb.mxu1 %v3924_v22 }
 0x8fe   : > { %2147 = vmatpush.bf16.msrb.mxu1 %v3923_v27 }
 0x954   : > { %v2022_v9 = vpop.xlane.xlu2 %2021 }
 0x955   : > { %v2025_v26 = vmul.f32 %v2022_v9, %v5136_v23  ;;  %v5327_v9 = vld [vmem:[#allocation3 + $0x8] sm:$0xff] }
 0x956   : > { %2255 = vmatpush.bf16.msra.mxu0 %v5327_v9 }
 0x957   : > { %v2027_v15 = vsub.f32 %v5291_v2, %v2025_v26  ;;  %v4000_v26 = vld [vmem:[#allocation10] sm:$0xff]  }
 0x959   : > { %v2029_v10 = vmul.f32 %v2027_v15, %v2027_v15 }
 0x95b   : > { %2031 = vadd.xlane.f32.xlu2 %v2029_v10 }
 0x95c   : > { %v2024_v40 = vpop.xlane.xlu0 %2023 }
 0x95d   : > { %v2026_v11 = vmul.f32 %v2024_v40, %v5136_v23 }
 0x95f   : > { %v2028_v12 = vsub.f32 %v5295_v7, %v2026_v11 }
 0x961   : > { %v2030_v13 = vmul.f32 %v2028_v12, %v2028_v12 }
 0x963   : > { %2033 = vadd.xlane.f32.xlu1 %v2030_v13 }
 0x973   : > { %2294 = vrot.lane.b32.xlu2 %v5303_v28, %s4832_s17 }
 0x97c   : > { %2320 = vrot.lane.b32.xlu1 %v5313_v60, %s4832_s17 }
 0x9ce   : > { %v2032_v24 = vpop.xlane.xlu2 %2031 }
 0x9cf   : > { %v2035_v25 = vmul.f32 %v2032_v24, %v5136_v23 }
 0x9d1   : > { %v2037_v8 = vadd.f32 1e-05, %v2035_v25 }
 0x9d3   : > { %4255 = vrsqrt.f32 %v2037_v8  ;;  %vm2045_vm11 = vweird.f32 %v2037_v8 }
 0x9d6   : > { %v2034_v29 = vpop.xlane.xlu1 %2033  ;;  %v2295_v63 = vpop.permute.xlu2 %2294 }
 0x9d7   : > { %v2036_v31 = vmul.f32 %v2034_v29, %v5136_v23  ;;  %v2300_v0 = vsel %vm1388_vm7, %v2295_v63, 0 }
 0x9d8   : > { %2309 = vmatpush.bf16.xpose.msra.mxu3 %v2300_v0 }
 0x9d9   : > { %v4256_v33 = vpop.eup %4255  ;;  %v2038_v34 = vadd.f32 1e-05, %v2036_v31 }
 0x9da   : > { %v2040_v36 = vmul.f32 %v4256_v33, %v2037_v8  ;;  %vm2046_vm10 = vweird.f32 %v4256_v33 }
 0x9db   : > { %4257 = vrsqrt.f32 %v2038_v34  ;;  %vm2047_vm12 = vmor %vm2045_vm11, %vm2046_vm10  ;;  %vm2055_vm14 = vweird.f32 %v2038_v34 }
 0x9dc   : > { %v2041_v37 = vmul.f32 %v4256_v33, %v2040_v36 }
 0x9de   : > { %v2042_v38 = vmul.f32 0.5, %v2041_v37 }
 0x9e0   : > { %v2043_v39 = vsub.f32 1.5, %v2042_v38 }
 0x9e1   : > { %v4258_v42 = vpop.eup %4257 }
 0x9e2   : > { %v2044_v44 = vmul.f32 %v4256_v33, %v2043_v39  ;;  %v2050_v46 = vmul.f32 %v4258_v42, %v2038_v34  ;;  %vm2056_vm13 = vweird.f32 %v4258_v42 }
 0x9e3   : > { %vm2057_vm15 = vmor %vm2055_vm14, %vm2056_vm13 }
 0x9e4   : > { %v2051_v45 = vmul.f32 %v4258_v42, %v2050_v46  ;;  %v2048_v47 = vsel %vm2047_vm12, %v4256_v33, %v2044_v44  ;;  %v5347_v33 = vunpack.c.h.bf16 %v4000_v26 }
 0x9e5   : > { %v2059_v35 = vmul.f32 %v2048_v47, %v2027_v15  ;;  %v5330_v15 = vunpack.c.l.bf16 %v4000_v26 }
 0x9e6   : > { %v2052_v48 = vmul.f32 0.5, %v2051_v45 }
 0x9e7   : > { %v2064_v55 = vmul.f32 %v4210_v50, %v2059_v35 }
 0x9e8   : > { %v2053_v49 = vsub.f32 1.5, %v2052_v48 }
 0x9e9   : > { %v2069_v58 = vadd.f32 %v4211_v56, %v2064_v55 }
 0x9ea   : > { %v2054_v51 = vmul.f32 %v4258_v42, %v2053_v49 }
 0x9ec   : > { %v2058_v52 = vsel %vm2057_vm15, %v4258_v42, %v2054_v51 }
 0x9ed   : > { %v2060_v53 = vmul.f32 %v2058_v52, %v2028_v12 }
 0x9ee   : > { %v2321_v38 = vpop.permute.xlu1 %2320 }
 0x9ef   : > { %v2065_v57 = vmul.f32 %v4210_v50, %v2060_v53  ;;  %v2326_v39 = vsel %vm1388_vm7, %v2321_v38, 0 }
 0x9f0   : > { %2335 = vmatpush.bf16.xpose.msrb.mxu0 %v2326_v39 }
 0x9f1   : > { %v2070_v59 = vadd.f32 %v4211_v56, %v2065_v57 }
 0x9f3   : > { %v2071_v54 = vpack.c.bf16 %v2070_v59, %v2069_v58 }
 0x9f5   : > { %2148 = vmatmul.bf16.vlgmr.msrb.gmra.mxu1 %v2071_v54 }
 0xa72   : > { %v2149_v17 = vpop.f32.mrf.mxu1 }
 0xa73   : > { %v2150_v1 = vadd.f32 %v4212_v21, %v2149_v17 }
 0xa75   : > { %v2164_v41 = vpack.c.bf16 %v2150_v1, %v2150_v1 }
 0xa77   : > { %v2290_v43 = vunpack.c.l.b16 %v2164_v41  ;;  %3677 = vmatmul.msk.bf16.vlgmr.msrb.gmra.mxu2 %vm1388_vm7, %v2164_v41 }
 0xa79   : > { %v5321_v61 = vpack.c.b16 %v2290_v43, %v2290_v43 }
 0xa7a   : > { %v2151_v3 = vpop.f32.mrf.mxu1 }
 0xa7b   : > { %v2152_v4 = vadd.f32 %v4212_v21, %v2151_v3  ;;  %2292 = vrot.lane.b32.xlu2 %v5321_v61, %s4832_s17  ;;  %v5363_v21 = vld [vmem:[#allocation3] sm:$0xff] }
 0xa7c   : > { %2277 = vmatpush.bf16.msra.mxu2 %v5363_v21 }
 0xa7d   : > { %v2165_v5 = vpack.c.bf16 %v2152_v4, %v2152_v4 }
 0xa7f   : > { %3682 = vmatmul.msk.bf16.vlgmr.msrb.gmra.mxu3 %vm1388_vm7, %v2165_v5  ;;  %v2316_v29 = vunpack.c.l.b16 %v2165_v5 }
 0xa81   : > { %v5342_v31 = vpack.c.b16 %v2316_v29, %v2316_v29 }
 0xad5   : > { %v2293_v6 = vpop.permute.xlu2 %2292 }
 0xad6   : > { %3693 = vmatmul.msk.bf16.vlgmr.msra.gmra.mxu3 %vm1388_vm7, %v2293_v6 }
 0xafa   : > { %v2186_v10 = vpop.f32.mrf.mxu2 }
 0xafb   : > { %v2187_v40 = vadd.f32 %v5330_v15, %v2186_v10 }
 0xafd   : > { %v2215_v11 = vsel %vm2214_vm0, %v2187_v40, -inf }
 0xafe   : > { %2216 = vmax.xlane.f32.xlu2 %v2215_v11 }
 0xb02   : > { %v2188_v12 = vpop.f32.mrf.mxu2  ;;  %v2210_v13 = vpop.f32.mrf.mxu3 }
 0xb03   : > { %v2211_v36 = vadd.f32 %v5347_v33, %v2210_v13 }
 0xb05   : > { %v2218_v37 = vsel %vm2214_vm0, %v2211_v36, -inf }
 0xb0a   : > { %v2212_v14 = vpop.f32.mrf.mxu3 }
 0xb0b   : > { %v3936_v14 = vld [vmem:[#allocation22 + $0x8] sm:$0xff] }
 0xb16   : > { %2365 = vrot.lane.b32.xlu2 %v5327_v9, %s4832_s17 }
 0xb1e   : > { %2479 = vrot.lane.b32.xlu2 %v5303_v28, %s4833_s19 }
 0xb26   : > { %2477 = vrot.lane.b32.xlu2 %v5321_v61, %s4833_s19 }
 0xb59   : > { %v2311_v16 = vpop.f32.mrf.mxu3 }
 0xb5a   : > { %v2312_v32 = vadd.f32 %v5330_v15, %v2311_v16  ;;  %v3935_v16 = vld [vmem:[#allocation22] sm:$0xff] }
 0xb5c   : > { %v2341_v34 = vsel %vm2214_vm0, %v2312_v32, -inf }
 0xb61   : > { %v2313_v30 = vpop.f32.mrf.mxu3 }
 0xb71   : > { %v2217_v18 = vpop.xlane.xlu2 %2216 }
 0xb72   : > { %v2221_v19 = vsub.f32 %v2187_v40, %v2217_v18 }
 0xb74   : > { %v2223_v20 = vmul.f32 1.442695, %v2221_v19 }
 0xb76   : > { %4259 = vpow2.f32 %v2223_v20 }
 0xb79   : > { %v2366_v22 = vpop.permute.xlu2 %2365 }
 0xb7a   : > { %2378 = vmatpush.bf16.msra.mxu1 %v2366_v22 }
 0xb7c   : > { %v4260_v24 = vpop.eup %4259 }
 0xb7d   : > { %v2227_v25 = vsel %vm2214_vm0, %v4260_v24, 0.0 }
 0xb7e   : > { %2228 = vadd.xlane.f32.xlu0 %v2227_v25 }
 0xb81   : > { %v2480_v27 = vpop.permute.xlu2 %2479 }
 0xb82   : > { %v2485_v8 = vsel %vm1388_vm7, %v2480_v27, 0 }
 0xb83   : > { %2494 = vmatpush.bf16.xpose.msrb.mxu1 %v2485_v8 }
 0xb89   : > { %v2478_v26 = vpop.permute.xlu2 %2477 }
 0xb92   : > { %2318 = vrot.lane.b32.xlu0 %v5342_v31, %s4832_s17 }
 0xbbc   : > { %2342 = vmax.xlane.f32.xlu0 %v2341_v34 }
 0xbc4   : > { %2219 = vmax.xlane.f32.xlu0 %v2218_v37 }
 0xbf1   : > { %v2229_v42 = vpop.xlane.xlu0 %2228 }
 0xbf2   : > { %4261 = vrcp.f32 %v2229_v42 }
 0xbf8   : > { %v4262_v44 = vpop.eup %4261 }
 0xbf9   : > { %v2235_v46 = vmul.f32 %v4262_v44, %v4260_v24 }
 0xbfb   : > { %v2237_v45 = vpack.c.bf16 %v2235_v46, %v2235_v46 }
 0xbfd   : > { %3687 = vmatmul.msk.bf16.vlgmr.msra.gmra.mxu0 %vm2214_vm0, %v2237_v45 }
 0xbfe   : > { %2469 = vmatpush.bf16.msra.mxu0 %v3936_v14 }
 0xc02   : > { %2470 = vmatpush.bf16.msra.mxu0 %v3935_v16 }
 0xc04   : > { %v2319_v47 = vpop.permute.xlu0 %2318 }
 0xc0d   : > { %3694 = vmatmul.msk.bf16.vlgmr.msrb.gmra.mxu0 %vm1388_vm7, %v2319_v47 }
 0xc2f   : > { %v2343_v48 = vpop.xlane.xlu0 %2342 }
 0xc30   : > { %v2347_v49 = vsub.f32 %v2312_v32, %v2343_v48 }
 0xc32   : > { %v2349_v35 = vmul.f32 1.442695, %v2347_v49 }
 0xc34   : > { %4263 = vpow2.f32 %v2349_v35 }
 0xc37   : > { %v2220_v50 = vpop.xlane.xlu0 %2219 }
 0xc38   : > { %v2222_v51 = vsub.f32 %v2211_v36, %v2220_v50 }
 0xc3a   : > { %v4264_v52 = vpop.eup %4263  ;;  %v2225_v53 = vmul.f32 1.442695, %v2222_v51 }
 0xc3b   : > { %v2353_v55 = vsel %vm2214_vm0, %v4264_v52, 0.0 }
 0xc3c   : > { %4265 = vpow2.f32 %v2225_v53  ;;  %2354 = vadd.xlane.f32.xlu1 %v2353_v55  ;;  %v3938_v53 = vld [vmem:[#allocation22 + $0x18] sm:$0xff]  ;;  %v3937_v55 = vld [vmem:[#allocation22 + $0x10] sm:$0xff] }
 0xc3d   : > { %2435 = vmatpush.bf16.msrb.mxu3 %v3938_v53 }
 0xc41   : > { %2436 = vmatpush.bf16.msrb.mxu3 %v3937_v55 }
 0xc42   : > { %v4266_v56 = vpop.eup %4265 }
 0xc43   : > { %v2230_v57 = vsel %vm2214_vm0, %v4266_v56, 0.0 }
 0xc44   : > { %2231 = vadd.xlane.f32.xlu0 %v2230_v57 }
 0xc58   : > { %2502 = vrot.lane.b32.xlu0 %v5313_v60, %s4833_s19 }
 0xc60   : > { %2500 = vrot.lane.b32.xlu0 %v5342_v31, %s4833_s19 }
 0xc7a   : > { %v2257_v58 = vpop.f32.mrf.mxu0 }
 0xc7b   : > { %v2283_v19 = vpack.c.bf16 %v2257_v58, %v2257_v58 }
 0xc7d   : > { %v2445_v25 = vunpack.c.l.b16 %v2283_v19 }
 0xc82   : > { %v2259_v59 = vpop.f32.mrf.mxu0 }
 0xc8a   : > { %v2337_v54 = vpop.f32.mrf.mxu0 }
 0xc8b   : > { %v2338_v62 = vadd.f32 %v5347_v33, %v2337_v54 }
 0xc8d   : > { %v2344_v63 = vsel %vm2214_vm0, %v2338_v62, -inf }
 0xc8e   : > { %2345 = vmax.xlane.f32.xlu1 %v2344_v63 }
 0xc92   : > { %v2339_v0 = vpop.f32.mrf.mxu0 }
 0xca7   : > { %2384 = vrot.lane.b32.xlu1 %v5363_v21, %s4832_s17 }
 0xcaf   : > { %v2355_v17 = vpop.xlane.xlu1 %2354 }
 0xcb0   : > { %4267 = vrcp.f32 %v2355_v17 }
 0xcb6   : > { %v4268_v1 = vpop.eup %4267 }
 0xcb7   : > { %v2361_v41 = vmul.f32 %v4268_v1, %v4264_v52  ;;  %v2232_v43 = vpop.xlane.xlu0 %2231 }
 0xcb8   : > { %4269 = vrcp.f32 %v2232_v43 }
 0xcb9   : > { %v2363_v3 = vpack.c.bf16 %v2361_v41, %v2361_v41 }
 0xcbb   : > { %3695 = vmatmul.msk.bf16.vlgmr.msra.gmra.mxu1 %vm2214_vm0, %v2363_v3 }
 0xcbe   : > { %v4270_v4 = vpop.eup %4269 }
 0xcbf   : > { %v2236_v5 = vmul.f32 %v4270_v4, %v4266_v56 }
 0xcc1   : > { %v2238_v6 = vpack.c.bf16 %v2236_v5, %v2236_v5 }
 0xcc3   : > { %3692 = vmatmul.msk.bf16.vlgmr.msra.gmra.mxu2 %vm2214_vm0, %v2238_v6 }
 0xccb   : > { %3715 = vmatmul.msk.bf16.vlgmr.msrb.gmra.mxu1 %vm1388_vm7, %v2478_v26 }
 0xd01   : > { %v2346_v10 = vpop.xlane.xlu1 %2345 }
 0xd02   : > { %v2348_v40 = vsub.f32 %v2338_v62, %v2346_v10 }
 0xd04   : > { %v2351_v11 = vmul.f32 1.442695, %v2348_v40 }
 0xd06   : > { %4271 = vpow2.f32 %v2351_v11 }
 0xd0c   : > { %v4272_v12 = vpop.eup %4271 }
 0xd0d   : > { %v2356_v13 = vsel %vm2214_vm0, %v4272_v12, 0.0 }
 0xd0e   : > { %2357 = vadd.xlane.f32.xlu2 %v2356_v13 }
 0xd19   : > { %v2385_v37 = vpop.permute.xlu1 %2384 }
 0xd1a   : > { %2397 = vmatpush.bf16.msrb.mxu2 %v2385_v37 }
 0xd26   : > { %2547 = vrot.lane.b32.xlu2 %v5327_v9, %s4833_s19 }
 0xd2e   : > { %2629 = vrot.lane.b32.xlu2 %v5303_v28, %s4834_s14 }
 0xd36   : > { %2627 = vrot.lane.b32.xlu2 %v5321_v61, %s4834_s14  ;;  %v2503_v61 = vpop.permute.xlu0 %2502 }
 0xd37   : > { %v2508_v36 = vsel %vm1388_vm7, %v2503_v61, 0 }
 0xd38   : > { %v2380_v30 = vpop.f32.mrf.mxu1  ;;  %2517 = vmatpush.bf16.xpose.msra.mxu2 %v2508_v36 }
 0xd39   : > { %v2403_v56 = vpack.c.bf16 %v2380_v30, %v2380_v30 }
 0xd3b   : > { %v2411_v59 = vunpack.c.l.b16 %v2403_v56 }
 0xd3e   : > { %v2501_v48 = vpop.permute.xlu0 %2500 }
 0xd40   : > { %v2382_v18 = vpop.f32.mrf.mxu1 }
 0xd46   : > { %v2279_v20 = vpop.f32.mrf.mxu2 }
 0xd47   : > { %v2284_v22 = vpack.c.bf16 %v2279_v20, %v2279_v20 }
 0xd48   : > { %v2496_v24 = vpop.f32.mrf.mxu1 }
 0xd49   : > { %v2446_v27 = vunpack.c.l.b16 %v2284_v22  ;;  %v2497_v8 = vadd.f32 %v5330_v15, %v2496_v24 }
 0xd4b   : > { %v2447_v29 = vpack.c.b16 %v2446_v27, %v2445_v25  ;;  %v2523_v32 = vsel %vm2214_vm0, %v2497_v8, -inf }
 0xd4c   : > { %2524 = vmax.xlane.f32.xlu1 %v2523_v32 }
 0xd4d   : > { %3714 = vmatmul.msk.bf16.vlgmr.msra.gmra.mxu0 %vm1388_vm7, %v2447_v29 }
 0xd4e   : > { %v2281_v28 = vpop.f32.mrf.mxu2 }
 0xd50   : > { %v2498_v34 = vpop.f32.mrf.mxu1 }
 0xd65   : > { %2652 = vrot.lane.b32.xlu1 %v5313_v60, %s4834_s14 }
 0xd81   : > { %v2358_v38 = vpop.xlane.xlu2 %2357 }
 0xd82   : > { %4273 = vrcp.f32 %v2358_v38 }
 0xd88   : > { %v4274_v39 = vpop.eup %4273 }
 0xd89   : > { %v2362_v42 = vmul.f32 %v4274_v39, %v4272_v12  ;;  %v2548_v44 = vpop.permute.xlu2 %2547 }
 0xd8a   : > { %2560 = vmatpush.bf16.msra.mxu3 %v2548_v44 }
 0xd8b   : > { %v2364_v46 = vpack.c.bf16 %v2362_v42, %v2362_v42 }
 0xd8d   : > { %3696 = vmatmul.msk.bf16.vlgmr.msrb.gmra.mxu2 %vm2214_vm0, %v2364_v46 }
 0xd91   : > { %v2630_v45 = vpop.permute.xlu2 %2629 }
 0xd92   : > { %v2635_v47 = vsel %vm1388_vm7, %v2630_v45, 0 }
 0xd93   : > { %2644 = vmatpush.bf16.xpose.msrb.mxu2 %v2635_v47 }
 0xd99   : > { %v2628_v60 = vpop.permute.xlu2 %2627 }
 0xd9d   : > { %3716 = vmatmul.msk.bf16.vlgmr.msra.gmra.mxu2 %vm1388_vm7, %v2501_v48 }
 0xdad   : > { %3728 = vmatmul.msk.bf16.vlgmr.msrb.gmra.mxu2 %vm1388_vm7, %v2628_v60 }
 0xdbf   : > { %v2525_v49 = vpop.xlane.xlu1 %2524 }
 0xdc0   : > { %v2529_v35 = vsub.f32 %v2497_v8, %v2525_v49 }
 0xdc2   : > { %v2531_v50 = vmul.f32 1.442695, %v2529_v35 }
 0xdc4   : > { %4275 = vpow2.f32 %v2531_v50  ;;  %v3940_v50 = vld [vmem:[#allocation22 + $0x28] sm:$0xff] }
 0xdc5   : > { %2617 = vmatpush.bf16.msra.mxu1 %v3940_v50  ;;  %v3954_v50 = vld [vmem:[#allocation24 + $0x54] sm:$0xf0] }
 0xdca   : > { %v4276_v51 = vpop.eup %4275 }
 0xdcb   : > { %v2535_v52 = vsel %vm2214_vm0, %v4276_v51, 0.0 }
 0xdcc   : > { %2536 = vadd.xlane.f32.xlu0 %v2535_v52  ;;  %v2472_v52 = vpop.f32.mrf.mxu0 }
 0xdd4   : > { %v2474_v53 = vpop.f32.mrf.mxu0 }
 0xdd7   : > { %v2653_v41 = vpop.permute.xlu1 %2652 }
 0xdd8   : > { %v2658_v43 = vsel %vm1388_vm7, %v2653_v41, 0 }
 0xde0   : > { %2650 = vrot.lane.b32.xlu0 %v5342_v31, %s4834_s14 }
 0xde8   : > { %2566 = vrot.lane.b32.xlu0 %v5363_v21, %s4833_s19 }
 0xe10   : > { %v2399_v57 = vpop.f32.mrf.mxu2 }
 0xe11   : > { %v2404_v58 = vpack.c.bf16 %v2399_v57, %v2399_v57 }
 0xe13   : > { %v2412_v54 = vunpack.c.l.b16 %v2404_v58 }
 0xe15   : > { %v2413_v62 = vpack.c.b16 %v2412_v54, %v2411_v59 }
 0xe17   : > { %3705 = vmatmul.msk.bf16.vlgmr.msrb.gmra.mxu3 %vm1388_vm7, %v2413_v62 }
 0xe18   : > { %v2401_v63 = vpop.f32.mrf.mxu2  ;;  %2667 = vmatpush.bf16.xpose.msrb.mxu3 %v2658_v43 }
 0xe20   : > { %v2519_v0 = vpop.f32.mrf.mxu2 }
 0xe21   : > { %v2520_v31 = vadd.f32 %v5347_v33, %v2519_v0 }
 0xe23   : > { %v2526_v17 = vsel %vm2214_vm0, %v2520_v31, -inf }
 0xe24   : > { %2527 = vmax.xlane.f32.xlu2 %v2526_v17 }
 0xe28   : > { %v2521_v1 = vpop.f32.mrf.mxu2 }
 0xe30   : > { %v2646_v3 = vpop.f32.mrf.mxu2 }
 0xe31   : > { %v2647_v4 = vadd.f32 %v5330_v15, %v2646_v3 }
 0xe33   : > { %v2673_v5 = vsel %vm2214_vm0, %v2647_v4, -inf }
 0xe34   : > { %2674 = vmax.xlane.f32.xlu0 %v2673_v5  ;;  %v3942_v5 = vld [vmem:[#allocation22 + $0x38] sm:$0xff] }
 0xe35   : > { %2767 = vmatpush.bf16.msra.mxu2 %v3942_v5  ;;  %v3762_v5 = vld [vmem:[#allocation24 + $0x28] sm:$0xf0] }
 0xe38   : > { %v2648_v6 = vpop.f32.mrf.mxu2 }
 0xe39   : > { %v3941_v6 = vld [vmem:[#allocation22 + $0x30] sm:$0xff] }
 0xe3a   : > { %2768 = vmatpush.bf16.msra.mxu2 %v3941_v6 }
 0xe3f   : > { %v2537_v26 = vpop.xlane.xlu0 %2536 }
 0xe40   : > { %4277 = vrcp.f32 %v2537_v26 }
 0xe46   : > { %v4278_v10 = vpop.eup %4277 }
 0xe47   : > { %v2543_v40 = vmul.f32 %v4278_v10, %v4276_v51  ;;  %v3939_v51 = vld [vmem:[#allocation22 + $0x20] sm:$0xff] }
 0xe48   : > { %2618 = vmatpush.bf16.msra.mxu1 %v3939_v51  ;;  %v3953_v51 = vld [vmem:[#allocation24 + $0x54] sm:$0xf] }
 0xe49   : > { %v2545_v11 = vpack.c.bf16 %v2543_v40, %v2543_v40 }
 0xe4b   : > { %3717 = vmatmul.msk.bf16.vlgmr.msra.gmra.mxu3 %vm2214_vm0, %v2545_v11 }
 0xe52   : > { %v2651_v12 = vpop.permute.xlu0 %2650 }
 0xe5a   : > { %v2567_v13 = vpop.permute.xlu0 %2566 }
 0xe5b   : > { %3729 = vmatmul.msk.bf16.vlgmr.msrb.gmra.mxu3 %vm1388_vm7, %v2651_v12  ;;  %2579 = vmatpush.bf16.msrb.mxu0 %v2567_v13 }
 0xe97   : > { %v2528_v14 = vpop.xlane.xlu2 %2527 }
 0xe98   : > { %v2530_v16 = vsub.f32 %v2520_v31, %v2528_v14 }
 0xe9a   : > { %v2533_v30 = vmul.f32 1.442695, %v2530_v16  ;;  %v5402_v19 = vpop.f32.mrf.mxu3 }
 0xe9b   : > { %v2473_v43 = vadd.f32 %v2472_v52, %v5402_v19 }
 0xe9c   : > { %4279 = vpow2.f32 %v2533_v30 }
 0xea2   : > { %v4280_v15 = vpop.eup %4279  ;;  %v5404_v20 = vpop.f32.mrf.mxu3 }
 0xea3   : > { %v2538_v18 = vsel %vm2214_vm0, %v4280_v15, 0.0 }
 0xea4   : > { %2539 = vadd.xlane.f32.xlu1 %v2538_v18  ;;  %v4213_v18 = vld [vmem:[%s5499_s15] ss:$0 sm:$0xff] }
 0xea7   : > { %v2675_v24 = vpop.xlane.xlu0 %2674 }
 0xea8   : > { %v2679_v27 = vsub.f32 %v2647_v4, %v2675_v24 }
 0xeaa   : > { %v2681_v8 = vmul.f32 1.442695, %v2679_v27 }
 0xeac   : > { %4281 = vpow2.f32 %v2681_v8 }
 0xeb2   : > { %v4282_v34 = vpop.eup %4281 }
 0xeb3   : > { %v2685_v36 = vsel %vm2214_vm0, %v4282_v34, 0.0 }
 0xece   : > { %v2562_v22 = vpop.f32.mrf.mxu3 }
 0xecf   : > { %v2585_v55 = vpack.c.bf16 %v2562_v22, %v2562_v22  ;;  %v2475_v22 = vadd.f32 %v2474_v53, %v5404_v20  ;;  %v3786_v53 = vld [vmem:[#allocation24 + $0x58] sm:$0xf0] }
 0xed1   : > { %v2593_v58 = vunpack.c.l.b16 %v2585_v55  ;;  %v3789_v55 = vor.u32 %v3953_v51, %v3786_v53  ;;  %v4214_v51 = vld [vmem:[%s5551_s1 + $0x2] ss:$0 sm:$0xff] }
 0xed6   : > { %v2564_v25 = vpop.f32.mrf.mxu3 }
 0xede   : > { %v2669_v29 = vpop.f32.mrf.mxu3 }
 0xedf   : > { %v2670_v32 = vadd.f32 %v5347_v33, %v2669_v29 }
 0xee1   : > { %v2676_v28 = vsel %vm2214_vm0, %v2670_v32, -inf }
 0xee2   : > { %2677 = vmax.xlane.f32.xlu2 %v2676_v28 }
 0xee6   : > { %v2671_v61 = vpop.f32.mrf.mxu3 }
 0xeea   : > { %2686 = vadd.xlane.f32.xlu2 %v2685_v36 }
 0xf02   : > { %2697 = vrot.lane.b32.xlu2 %v5327_v9, %s4834_s14 }
 0xf17   : > { %v2540_v37 = vpop.xlane.xlu1 %2539 }
 0xf18   : > { %4283 = vrcp.f32 %v2540_v37 }
 0xf1e   : > { %v4284_v38 = vpop.eup %4283 }
 0xf1f   : > { %v2544_v39 = vmul.f32 %v4284_v38, %v4280_v15  ;;  %v3800_v38 = vld [vmem:[#allocation24 + $0x70] sm:$0xf] }
 0xf21   : > { %v2546_v42 = vpack.c.bf16 %v2544_v39, %v2544_v39  ;;  %v3958_v39 = vld [vmem:[#allocation24 + $0x74] sm:$0xf0] }
 0xf23   : > { %3718 = vmatmul.msk.bf16.vlgmr.msrb.gmra.mxu0 %vm2214_vm0, %v2546_v42  ;;  %v3957_v42 = vld [vmem:[#allocation24 + $0x74] sm:$0xf] }
 0xf55   : > { %v2678_v33 = vpop.xlane.xlu2 %2677 }
 0xf56   : > { %v2680_v44 = vsub.f32 %v2670_v32, %v2678_v33  ;;  %v3801_v33 = vor.u32 %v3958_v39, %v3800_v38  ;;  %v3972_v39 = vld [vmem:[#allocation25 + $0x68] sm:$0xff] }
 0xf58   : > { %v2683_v46 = vmul.f32 1.442695, %v2680_v44  ;;  %v3802_v44 = vld [vmem:[#allocation24 + $0x78] sm:$0xf0]  ;;  %2942 = vmatpush.bf16.msra.mxu3 %v3801_v33 }
 0xf5a   : > { %4285 = vpow2.f32 %v2683_v46  ;;  %v3805_v46 = vor.u32 %v3957_v42, %v3802_v44  ;;  %v3964_v42 = vld [vmem:[#allocation25 + $0x28] sm:$0xff] }
 0xf5d   : > { %v2687_v45 = vpop.xlane.xlu2 %2686 }
 0xf5e   : > { %4287 = vrcp.f32 %v2687_v45  ;;  %v3792_v45 = vld [vmem:[#allocation24 + $0x60] sm:$0xf] }
 0xf60   : > { %v4286_v47 = vpop.eup %4285 }
 0xf61   : > { %v2688_v48 = vsel %vm2214_vm0, %v4286_v47, 0.0 }
 0xf62   : > { %2689 = vadd.xlane.f32.xlu1 %v2688_v48  ;;  %v3955_v48 = vld [vmem:[#allocation24 + $0x64] sm:$0xf] }
 0xf64   : > { %v4288_v60 = vpop.eup %4287 }
 0xf65   : > { %v2693_v49 = vmul.f32 %v4288_v60, %v4282_v34  ;;  %v2698_v9 = vpop.permute.xlu2 %2697 }
 0xf66   : > { %2710 = vmatpush.bf16.msra.mxu0 %v2698_v9 }
 0xf67   : > { %v2695_v35 = vpack.c.bf16 %v2693_v49, %v2693_v49  ;;  %v3794_v49 = vld [vmem:[#allocation24 + $0x68] sm:$0xf0] }
 0xf68   : > { %v3797_v9 = vor.u32 %v3955_v48, %v3794_v49 }
 0xf69   : > { %3730 = vmatmul.msk.bf16.vlgmr.msra.gmra.mxu0 %vm2214_vm0, %v2695_v35  ;;  %v3784_v35 = vld [vmem:[#allocation24 + $0x50] sm:$0xf] }
 0xf6a   : > { %2956 = vmatpush.bf16.msrb.mxu0 %v3805_v46  ;;  %v3785_v52 = vor.u32 %v3954_v50, %v3784_v35  ;;  %v3971_v46 = vld [vmem:[#allocation25 + $0x60] sm:$0xff] }
 0xf6e   : > { %2957 = vmatpush.bf16.msrb.mxu0 %v3797_v9 }
 0xf72   : > { %2958 = vmatpush.bf16.msrb.mxu0 %v3789_v55 }
 0xf7b   : > { %2716 = vrot.lane.b32.xlu1 %v5363_v21, %s4834_s14 }
 0xfa0   : > { %v2581_v56 = vpop.f32.mrf.mxu0 }
 0xfa1   : > { %v2586_v57 = vpack.c.bf16 %v2581_v56, %v2581_v56  ;;  %v3776_v56 = vld [vmem:[#allocation24 + $0x40] sm:$0xf] }
 0xfa3   : > { %v2594_v59 = vunpack.c.l.b16 %v2586_v57  ;;  %v3952_v57 = vld [vmem:[#allocation24 + $0x44] sm:$0xf0] }
 0xfa5   : > { %v2595_v54 = vpack.c.b16 %v2594_v59, %v2593_v58  ;;  %v3951_v58 = vld [vmem:[#allocation24 + $0x44] sm:$0xf]  ;;  %v3777_v59 = vor.u32 %v3952_v57, %v3776_v56  ;;  %v4215_v56 = vld [vmem:[#allocation12 + $0x2] ss:$0 sm:$0xff] }
 0xfa7   : > { %3727 = vmatmul.msk.bf16.vlgmr.msra.gmra.mxu1 %vm1388_vm7, %v2595_v54  ;;  %v3778_v54 = vld [vmem:[#allocation24 + $0x48] sm:$0xf0] }
 0xfa8   : > { %v2583_v62 = vpop.f32.mrf.mxu0 }
 0xfa9   : > { %v3781_v62 = vor.u32 %v3951_v58, %v3778_v54 }
 0xfab   : > { %2959 = vmatpush.bf16.msrb.mxu0 %v3781_v62 }
 0xfd5   : > { %v2690_v63 = vpop.xlane.xlu1 %2689 }
 0xfd6   : > { %4289 = vrcp.f32 %v2690_v63  ;;  %v3768_v63 = vld [vmem:[#allocation24 + $0x30] sm:$0xf] }
 0xfdc   : > { %v4290_v31 = vpop.eup %4289 }
 0xfdd   : > { %v2694_v21 = vmul.f32 %v4290_v31, %v4286_v47  ;;  %v3956_v47 = vld [vmem:[#allocation24 + $0x64] sm:$0xf0]  ;;  %v3949_v31 = vld [vmem:[#allocation24 + $0x34] sm:$0xf] }
 0xfde   : > { %v3793_v60 = vor.u32 %v3956_v47, %v3792_v45 }
 0xfdf   : > { %v2696_v41 = vpack.c.bf16 %v2694_v21, %v2694_v21 }
 0xfe0   : > { %2943 = vmatpush.bf16.msra.mxu3 %v3793_v60 }
 0xfe4   : > { %2944 = vmatpush.bf16.msra.mxu3 %v3785_v52 }
 0xfe6   : > { %v2712_v0 = vpop.f32.mrf.mxu0 }
 0xfe7   : > { %v2735_v10 = vpack.c.bf16 %v2712_v0, %v2712_v0  ;;  %v3950_v0 = vld [vmem:[#allocation24 + $0x34] sm:$0xf0] }
 0xfe8   : > { %2945 = vmatpush.bf16.msra.mxu3 %v3777_v59  ;;  %v3769_v21 = vor.u32 %v3950_v0, %v3768_v63  ;;  %v3970_v0 = vld [vmem:[#allocation25 + $0x58] sm:$0xff] }
 0xfe9   : > { %v2743_v12 = vunpack.c.l.b16 %v2735_v10  ;;  %v3946_v10 = vld [vmem:[#allocation24 + $0x14] sm:$0xf0] }
 0xfec   : > { %2946 = vmatpush.bf16.msra.mxu3 %v3769_v21  ;;  %v3969_v21 = vld [vmem:[#allocation25 + $0x50] sm:$0xff] }
 0xfed   : > { %v2717_v17 = vpop.permute.xlu1 %2716 }
 0xfee   : > { %v2714_v1 = vpop.f32.mrf.mxu0  ;;  %2729 = vmatpush.bf16.msrb.mxu1 %v2717_v17  ;;  %v3770_v17 = vld [vmem:[#allocation24 + $0x38] sm:$0xf0] }
 0xfef   : > { %v3773_v1 = vor.u32 %v3949_v31, %v3770_v17  ;;  %v3963_v31 = vld [vmem:[#allocation25 + $0x20] sm:$0xff]  ;;  %v3968_v17 = vld [vmem:[#allocation25 + $0x48] sm:$0xff] }
 0xff1   : > { %3731 = vmatmul.msk.bf16.vlgmr.msrb.gmra.mxu1 %vm2214_vm0, %v2696_v41  ;;  %2960 = vmatpush.bf16.msrb.mxu0 %v3773_v1  ;;  %v3760_v41 = vld [vmem:[#allocation24 + $0x20] sm:$0xf]  ;;  %v3961_v1 = vld [vmem:[#allocation25 + $0x10] sm:$0xff] }
0x1024   : > { %v2620_v3 = vpop.f32.mrf.mxu1 }
0x1025   : > { %v2625_v4 = vadd.f32 %v2620_v3, %v2473_v43  ;;  %v3948_v43 = vld [vmem:[#allocation24 + $0x24] sm:$0xf0]  ;;  %v3947_v3 = vld [vmem:[#allocation24 + $0x24] sm:$0xf] }
0x1026   : > { %v3765_v6 = vor.u32 %v3947_v3, %v3762_v5  ;;  %v2856_v3 = vld [vmem:[%s5552_s11] sm:$0x3] }
0x1027   : > { %v2859_v5 = vperm.slane %v2856_v3, 1 }
0x1028   : > { %2961 = vmatpush.bf16.msrb.mxu0 %v3765_v6 }
0x102c   : > { %v2622_v26 = vpop.f32.mrf.mxu1 }
0x102d   : > { %v2626_v25 = vadd.f32 %v2622_v26, %v2475_v22  ;;  %v3752_v26 = vld [vmem:[#allocation24 + $0x10] sm:$0xf] }
0x106e   : > { %v2731_v40 = vpop.f32.mrf.mxu1 }
0x106f   : > { %v2736_v11 = vpack.c.bf16 %v2731_v40, %v2731_v40  ;;  %v3945_v40 = vld [vmem:[#allocation24 + $0x14] sm:$0xf] }
0x1071   : > { %v2744_v13 = vunpack.c.l.b16 %v2736_v11  ;;  %v3753_v11 = vor.u32 %v3946_v10, %v3752_v26 }
0x1073   : > { %v2745_v14 = vpack.c.b16 %v2744_v13, %v2743_v12  ;;  %v3754_v12 = vld [vmem:[#allocation24 + $0x18] sm:$0xf0] }
0x1075   : > { %3740 = vmatmul.msk.bf16.vlgmr.msra.gmra.mxu2 %vm1388_vm7, %v2745_v14  ;;  %v3757_v14 = vor.u32 %v3945_v40, %v3754_v12  ;;  %v2858_v40 = vperm.slane %v2856_v3, 0 }
0x1076   : > { %v2733_v16 = vpop.f32.mrf.mxu1 }
0x1077   : > { %2962 = vmatpush.bf16.msrb.mxu0 %v3757_v14 }
0x10f8   : > { %v2770_v30 = vpop.f32.mrf.mxu2 }
0x10f9   : > { %v2775_v15 = vadd.f32 %v2770_v30, %v2625_v4  ;;  %v3761_v4 = vor.u32 %v3948_v43, %v3760_v41  ;;  %v3744_v30 = vld [vmem:[#allocation24] sm:$0xf] }
0x10fa   : > { %v3967_v41 = vld [vmem:[#allocation25 + $0x40] sm:$0xff] }
0x10fb   : > { %v2777_v19 = vadd.f32 %v2775_v15, %v5291_v2  ;;  %2947 = vmatpush.bf16.msra.mxu3 %v3761_v4  ;;  %v3944_v15 = vld [vmem:[#allocation24 + $0x4] sm:$0xf0]  ;;  %v3959_v43 = vld [vmem:[#allocation25] sm:$0xff] }
0x10fc   : > { %v3745_v22 = vor.u32 %v3944_v15, %v3744_v30 }
0x10fd   : > { %v5425_v24 = vadd.f32 %v4213_v18, %v2777_v19 }
0x10ff   : > { %2789 = vadd.xlane.f32.xlu0 %v5425_v24  ;;  %2948 = vmatpush.bf16.msra.mxu3 %v3753_v11 }
0x1100   : > { %v2772_v27 = vpop.f32.mrf.mxu2 }
0x1101   : > { %v2776_v8 = vadd.f32 %v2772_v27, %v2626_v25  ;;  %v3746_v25 = vld [vmem:[#allocation24 + $0x8] sm:$0xf0] }
0x1103   : > { %v2778_v29 = vadd.f32 %v2776_v8, %v5295_v7  ;;  %2949 = vmatpush.bf16.msra.mxu3 %v3745_v22  ;;  %v3974_v8 = vld [vmem:[#allocation25 + $0x78] sm:$0xff] }
0x1104   : > { %3118 = vmatpush.bf16.msrb.mxu2 %v3974_v8 }
0x1105   : > { %v5429_v32 = vadd.f32 %v4213_v18, %v2778_v29  ;;  %v3943_v18 = vld [vmem:[#allocation24 + $0x4] sm:$0xf]  ;;  %v3966_v29 = vld [vmem:[#allocation25 + $0x38] sm:$0xff] }
0x1106   : > { %v3749_v27 = vor.u32 %v3943_v18, %v3746_v25  ;;  %3104 = vmatpush.bf16.msra.mxu1 %v3966_v29  ;;  %v4216_v29 = vld [vmem:[%s5553_s4] ss:$0 sm:$0xff] }
0x1107   : > { %2791 = vadd.xlane.f32.xlu0 %v5429_v32 }
0x1108   : > { %2963 = vmatpush.bf16.msrb.mxu0 %v3749_v27 }
0x1172   : > { %v2790_v28 = vpop.xlane.xlu0 %2789 }
0x1173   : > { %v2793_v34 = vmul.f32 %v2790_v28, %v5136_v23 }
0x1175   : > { %v5434_v2 = vsub.f32 %v5425_v24, %v2793_v34 }
0x1177   : > { %v2797_v20 = vmul.f32 %v5434_v2, %v5434_v2 }
0x1179   : > { %2799 = vadd.xlane.f32.xlu2 %v2797_v20  ;;  %v3973_v20 = vld [vmem:[#allocation25 + $0x70] sm:$0xff] }
0x117a   : > { %v2792_v61 = vpop.xlane.xlu0 %2791  ;;  %3119 = vmatpush.bf16.msrb.mxu2 %v3973_v20 }
0x117b   : > { %v2794_v36 = vmul.f32 %v2792_v61, %v5136_v23  ;;  %v3965_v61 = vld [vmem:[#allocation25 + $0x30] sm:$0xff] }
0x117c   : > { %3105 = vmatpush.bf16.msra.mxu1 %v3965_v61 }
0x117d   : > { %v5440_v37 = vsub.f32 %v5429_v32, %v2794_v36 }
0x117e   : > { %3120 = vmatpush.bf16.msrb.mxu2 %v3972_v39 }
0x117f   : > { %v2798_v7 = vmul.f32 %v5440_v37, %v5440_v37 }
0x1180   : > { %3106 = vmatpush.bf16.msra.mxu1 %v3964_v42 }
0x1181   : > { %2801 = vadd.xlane.f32.xlu0 %v2798_v7 }
0x1182   : > { %3121 = vmatpush.bf16.msrb.mxu2 %v3971_v46 }
0x1184   : > { %3107 = vmatpush.bf16.msra.mxu1 %v3963_v31 }
0x1186   : > { %3122 = vmatpush.bf16.msrb.mxu2 %v3970_v0 }
0x118a   : > { %3123 = vmatpush.bf16.msrb.mxu2 %v3969_v21 }
0x118e   : > { %3124 = vmatpush.bf16.msrb.mxu2 %v3968_v17 }
0x1192   : > { %3125 = vmatpush.bf16.msrb.mxu2 %v3967_v41 }
0x11ec   : > { %v2800_v13 = vpop.xlane.xlu2 %2799 }
0x11ed   : > { %v2803_v16 = vmul.f32 %v2800_v13, %v5136_v23 }
0x11ef   : > { %v2805_v19 = vadd.f32 1e-05, %v2803_v16 }
0x11f1   : > { %4291 = vrsqrt.f32 %v2805_v19  ;;  %vm2813_vm2 = vweird.f32 %v2805_v19 }
0x11f4   : > { %v2802_v28 = vpop.xlane.xlu0 %2801 }
0x11f5   : > { %v2804_v34 = vmul.f32 %v2802_v28, %v5136_v23 }
0x11f7   : > { %v4292_v36 = vpop.eup %4291  ;;  %v2806_v7 = vadd.f32 1e-05, %v2804_v34 }
0x11f8   : > { %v2808_v38 = vmul.f32 %v4292_v36, %v2805_v19  ;;  %vm2814_vm1 = vweird.f32 %v4292_v36 }
0x11f9   : > { %4293 = vrsqrt.f32 %v2806_v7  ;;  %vm2815_vm3 = vmor %vm2813_vm2, %vm2814_vm1  ;;  %vm2823_vm5 = vweird.f32 %v2806_v7 }
0x11fa   : > { %v2809_v33 = vmul.f32 %v4292_v36, %v2808_v38 }
0x11fc   : > { %v2810_v44 = vmul.f32 0.5, %v2809_v33 }
0x11fe   : > { %v2811_v45 = vsub.f32 1.5, %v2810_v44 }
0x11ff   : > { %v4294_v47 = vpop.eup %4293 }
0x1200   : > { %v2812_v48 = vmul.f32 %v4292_v36, %v2811_v45  ;;  %v2818_v60 = vmul.f32 %v4294_v47, %v2806_v7  ;;  %vm2824_vm4 = vweird.f32 %v4294_v47 }
0x1201   : > { %vm2825_vm6 = vmor %vm2823_vm5, %vm2824_vm4 }
0x1202   : > { %v2819_v49 = vmul.f32 %v4294_v47, %v2818_v60  ;;  %v2816_v9 = vsel %vm2815_vm3, %v4292_v36, %v2812_v48 }
0x1203   : > { %v2827_v52 = vmul.f32 %v2816_v9, %v5434_v2  ;;  %v3962_v2 = vld [vmem:[#allocation25 + $0x18] sm:$0xff] }
0x1204   : > { %v2820_v35 = vmul.f32 0.5, %v2819_v49  ;;  %3108 = vmatpush.bf16.msra.mxu1 %v3962_v2 }
0x1205   : > { %v2832_v57 = vmul.f32 %v4214_v51, %v2827_v52 }
0x1206   : > { %v2821_v50 = vsub.f32 1.5, %v2820_v35 }
0x1207   : > { %v2837_v54 = vadd.f32 %v4215_v56, %v2832_v57 }
0x1208   : > { %v2822_v53 = vmul.f32 %v4294_v47, %v2821_v50  ;;  %3109 = vmatpush.bf16.msra.mxu1 %v3961_v1 }
0x120a   : > { %v2826_v55 = vsel %vm2825_vm6, %v4294_v47, %v2822_v53 }
0x120b   : > { %v2828_v58 = vmul.f32 %v2826_v55, %v5440_v37  ;;  %v3960_v37 = vld [vmem:[#allocation25 + $0x8] sm:$0xff] }
0x120c   : > { %3110 = vmatpush.bf16.msra.mxu1 %v3960_v37 }
0x120d   : > { %v2833_v59 = vmul.f32 %v4214_v51, %v2828_v58 }
0x120f   : > { %v2838_v62 = vadd.f32 %v4215_v56, %v2833_v59 }
0x1210   : > { %3111 = vmatpush.bf16.msra.mxu1 %v3959_v43 }
0x1211   : > { %v2839_v63 = vpack.c.bf16 %v2838_v62, %v2837_v54 }
0x1213   : > { %2950 = vmatmul.bf16.vlgmr.msra.gmra.mxu3 %v2839_v63  ;;  %2964 = vmatmul.bf16.vlgmr.msrb.gmra.mxu0 %v2839_v63 }
0x1290   : > { %v2965_v4 = vpop.f32.mrf.mxu0 }
0x1291   : > { %v2966_v26 = vadd.f32 %v2965_v4, %v2859_v5 }
0x1293   : > { %v2971_v12 = vmax.f32 %v2966_v26, 0.0 }
0x1296   : > { %v2951_v6 = vpop.f32.mrf.mxu3 }
0x1297   : > { %v2952_v14 = vadd.f32 %v2951_v6, %v2858_v40 }
0x1298   : > { %v2967_v10 = vpop.f32.mrf.mxu0 }
0x1299   : > { %v2968_v11 = vadd.f32 %v2967_v10, %v2859_v5  ;;  %v2970_v18 = vmax.f32 %v2952_v14, 0.0 }
0x129b   : > { %v2973_v13 = vmax.f32 %v2968_v11, 0.0 }
0x129d   : > { %v2975_v16 = vpack.c.bf16 %v2973_v13, %v2971_v12 }
0x129e   : > { %v2953_v30 = vpop.f32.mrf.mxu3 }
0x129f   : > { %v2954_v15 = vadd.f32 %v2953_v30, %v2858_v40  ;;  %3126 = vmatmul.bf16.vlgmr.msrb.gmra.mxu2 %v2975_v16 }
0x12a1   : > { %v2972_v19 = vmax.f32 %v2954_v15, 0.0 }
0x12a3   : > { %v2974_v22 = vpack.c.bf16 %v2972_v19, %v2970_v18 }
0x12a5   : > { %3112 = vmatmul.bf16.vlgmr.msra.gmra.mxu1 %v2974_v22 }
0x1322   : > { %v3113_v25 = vpop.f32.mrf.mxu1  ;;  %v3127_v27 = vpop.f32.mrf.mxu2 }
0x1323   : > { %v3128_v8 = vadd.f32 %v3127_v27, %v3113_v25 }
0x1325   : > { %v3132_v28 = vadd.f32 %v3128_v8, %v5425_v24 }
0x1327   : > { %v3138_v34 = vadd.f32 %v4216_v29, %v3132_v28 }
0x1329   : > { %3140 = vst [vmem:[#allocation27] sm:$0xff] %v3138_v34 }
0x132a   : > { %v3115_v20 = vpop.f32.mrf.mxu1  ;;  %v3129_v61 = vpop.f32.mrf.mxu2 }
0x132b   : > { %v3130_v36 = vadd.f32 %v3129_v61, %v3115_v20 }
0x132d   : > { %v3133_v7 = vadd.f32 %v3130_v36, %v5429_v32  ;;  %3145 = sbr.rel (%p3870_p8) target bundleno = 5189 (0x1445), region = 172 }
0x132f   : > { %v3139_v38 = vadd.f32 %v4216_v29, %v3133_v7 }
0x1331   : > { %3141 = vst [vmem:[#allocation27 + $0x8] sm:$0xff] %v3139_v38 }
0x1332   : > { %3148 = vadd.xlane.f32.xlu0 %v3138_v34  ;;  %v4295_v59 = vld [vmem:[%s5554_s26] ss:$0 sm:$0xff] }
0x1333   : > { %v4296_v63 = vld [vmem:[%s5555_s23] ss:$0 sm:$0xff] }
0x133a   : > { %3150 = vadd.xlane.f32.xlu0 %v3139_v38 }
0x13a5   : > { %v3149_v39 = vpop.xlane.xlu0 %3148 }
0x13a6   : > { %v3152_v42 = vmul.f32 %v3149_v39, %v5136_v23 }
0x13a8   : > { %v3154_v33 = vsub.f32 %v3138_v34, %v3152_v42 }
0x13aa   : > { %v3156_v44 = vmul.f32 %v3154_v33, %v3154_v33 }
0x13ac   : > { %3158 = vadd.xlane.f32.xlu1 %v3156_v44 }
0x13ad   : > { %v3151_v24 = vpop.xlane.xlu0 %3150 }
0x13ae   : > { %v3153_v46 = vmul.f32 %v3151_v24, %v5136_v23 }
0x13b0   : > { %v3155_v45 = vsub.f32 %v3139_v38, %v3153_v46 }
0x13b2   : > { %v3157_v47 = vmul.f32 %v3155_v45, %v3155_v45 }
0x13b4   : > { %3160 = vadd.xlane.f32.xlu1 %v3157_v47 }
0x141f   : > { %v3159_v32 = vpop.xlane.xlu1 %3158 }
0x1420   : > { %v3162_v48 = vmul.f32 %v3159_v32, %v5136_v23 }
0x1422   : > { %v3164_v60 = vadd.f32 1e-05, %v3162_v48 }
0x1424   : > { %4297 = vrsqrt.f32 %v3164_v60  ;;  %vm3172_vm8 = vweird.f32 %v3164_v60 }
0x1427   : > { %v3161_v49 = vpop.xlane.xlu1 %3160 }
0x1428   : > { %v3163_v9 = vmul.f32 %v3161_v49, %v5136_v23 }
0x142a   : > { %v4298_v35 = vpop.eup %4297  ;;  %v3165_v50 = vadd.f32 1e-05, %v3163_v9 }
0x142b   : > { %v3167_v51 = vmul.f32 %v4298_v35, %v3164_v60  ;;  %vm3173_vm7 = vweird.f32 %v4298_v35 }
0x142c   : > { %4299 = vrsqrt.f32 %v3165_v50  ;;  %vm3174_vm9 = vmor %vm3172_vm8, %vm3173_vm7  ;;  %vm3182_vm11 = vweird.f32 %v3165_v50 }
0x142d   : > { %v3168_v52 = vmul.f32 %v4298_v35, %v3167_v51 }
0x142f   : > { %v3169_v53 = vmul.f32 0.5, %v3168_v52 }
0x1431   : > { %v3170_v55 = vsub.f32 1.5, %v3169_v53 }
0x1432   : > { %v4300_v56 = vpop.eup %4299 }
0x1433   : > { %v3171_v57 = vmul.f32 %v4298_v35, %v3170_v55  ;;  %v3177_v58 = vmul.f32 %v4300_v56, %v3165_v50  ;;  %vm3183_vm10 = vweird.f32 %v4300_v56 }
0x1434   : > { %vm3184_vm12 = vmor %vm3182_vm11, %vm3183_vm10 }
0x1435   : > { %v3175_v54 = vsel %vm3174_vm9, %v4298_v35, %v3171_v57  ;;  %v3178_v62 = vmul.f32 %v4300_v56, %v3177_v58 }
0x1436   : > { %v3186_v23 = vmul.f32 %v3175_v54, %v3154_v33 }
0x1437   : > { %v3179_v0 = vmul.f32 0.5, %v3178_v62 }
0x1438   : > { %v3191_v31 = vmul.f32 %v4295_v59, %v3186_v23 }
0x1439   : > { %v3180_v21 = vsub.f32 1.5, %v3179_v0 }
0x143a   : > { %v3196_v2 = vadd.f32 %v4296_v63, %v3191_v31 }
0x143b   : > { %v3181_v17 = vmul.f32 %v4300_v56, %v3180_v21 }
0x143c   : > { %3198 = vst [vmem:[#allocation27] sm:$0xff] %v3196_v2 }
0x143d   : > { %v3185_v1 = vsel %vm3184_vm12, %v4300_v56, %v3181_v17 }
0x143e   : > { %v3187_v41 = vmul.f32 %v3185_v1, %v3155_v45 }
0x1440   : > { %v3192_v37 = vmul.f32 %v4295_v59, %v3187_v41 }
0x1442   : > { %v3197_v43 = vadd.f32 %v4296_v63, %v3192_v37 }
0x1444   : > { %3199 = vst [vmem:[#allocation27 + $0x8] sm:$0xff] %v3197_v43 }
0x1445 PF: > { %s5556_s17 = sld [smem:[#allocation37_spill]]  ;;  %s4835_s2 = smov [#allocation27]  }
0x1446   : > { %s5558_s30 = sld [smem:[#allocation53_spill]]  ;;  %s3208_s9 = sshll.u32 %s4835_s2, 4  ;;  %s3209_s9 = int_to_ptr.vmem [resolvable:$true] %s3208_s9 }
0x1447   : > { %s4836_s29 = smov 128   ;;  %s4837_s20 = smov 8  }
0x144b   : > { %s5557_s19 = sadd.s32 4294967295, %s5556_s17  }
0x144c   : > { %p4152_p9 = scmp.eq.s32.totalorder %s5557_s19, 1  ;;  %s3210_s27 = sshll.u32 %s5558_s30, 4  ;;  %s3211_s27 = int_to_ptr.hbm [resolvable:$true] %s3210_s27 }
0x144e   : > { %4078 = dma.vmem_to_hbm [thread:$0]  (%p4152_p9), %s3209_s9, 256, %s3211_s27, [#allocation6], %s4836_s29, %s4836_s29, %s4837_s20  }
0x144f   : > { %4794 = dma.done.wait (%p4152_p9), [#allocation6], 256  }
0x1450   : > { %4796 = vsyncadd (%p4152_p9), [#allocation6], 4294967040 }
0x1451 PF: > { %s5559_s5 = sld [smem:[#allocation37_spill]]  ;;  %s5561_s3 = smov %s4803_s28 }
0x1452   : > { %s5560_s11 = sld [smem:[#allocation38_spill]] }
0x1457   : > { %s41_s29 = sadd.s32 1, %s5559_s5  }
0x1458   : > { %p38_p10 = scmp.ge.s32.totalorder %s41_s29, 4   ;;  %s5562_s28 = smov %s5560_s11 }
0x145a   :  { %40 = sbr.rel (!%p38_p10) target bundleno = 26 (0x1a), region = 206 }
0x145f   :  { %3227 = vsyncpa [#allocation5], 1 }
0x1460   :  { %3229 = vsyncpa [#allocation5 + $0x1], 1 }
0x1461   :  { %3230 = vsyncpa [#allocation8], 1 }
0x1462   :  { %3231 = vsyncpa [#allocation11], 1 }
0x1463   :  { %3232 = vsyncpa [#allocation14], 1 }
0x1464   :  { %3233 = vsyncpa [#allocation17], 1 }
0x1465   :  { %3234 = vsyncpa [#allocation20], 1 }
0x1466   :  { %3235 = vsyncpa [#allocation23], 1 }
0x1467   :  { %3236 = vsyncpa [#allocation26], 1 }
0x1468   :  { %3237 = vsyncpa [#allocation6], 1 }
0x1469   :  { %3239 = vsyncpa [#allocation6 + $0x1], 1 }

</bundles_post_ra>
